<compile_context>
chip_gen: v5e
topology: v5e:2x2
jax: 0.10.0
libtpu: 0.0.40
codegen_flags: <defaults>
</compile_context>

<pallas_src>
import functools

import jax
import jax.numpy as jnp
from jax.experimental import pallas as pl
from jax.experimental.pallas import tpu as pltpu

LRELU_SLOPE = 0.2
BN_EPS = 1e-5
LANES = 128


def _round_up(x, m):
    return (x + m - 1) // m * m


# --------------------------------------------------------------------------
# Kernels
# --------------------------------------------------------------------------
def _make_conv_kernel(shifts, m_out, use_bn, bn_count):
    """Phase-conv kernel: in-kernel im2col (4 shifted matmuls, f32 accumulate)
    + bias (+ masked training-mode BatchNorm) + LeakyReLU(0.2)."""

    def kernel(*refs):
        if use_bn:
            p_ref, w_ref, b_ref, g_ref, bt_ref, mask_ref, o_ref = refs
        else:
            p_ref, w_ref, b_ref, o_ref = refs

        acc = None
        for t, s in enumerate(shifts):
            x_t = p_ref[pl.ds(s, m_out), :]                    # (M, 128) bf16, lane-dense
            d = jnp.dot(x_t, w_ref[t], preferred_element_type=jnp.float32)
            acc = d if acc is None else acc + d

        x = acc + b_ref[...]                                   # f32 epilogue
        if use_bn:
            mask = mask_ref[...]                               # 1.0 on valid (n,oh,ow) rows
            inv_n = 1.0 / bn_count
            mean = jnp.sum(x * mask, axis=0, keepdims=True) * inv_n
            diff = (x - mean) * mask
            var = jnp.sum(diff * diff, axis=0, keepdims=True) * inv_n
            x = (x - mean) * jax.lax.rsqrt(var + BN_EPS)
            x = x * g_ref[...] + bt_ref[...]
        y = jnp.where(x > 0, x, LRELU_SLOPE * x)
        o_ref[...] = y.astype(o_ref.dtype)

    return kernel


def _make_head_kernel(shifts, m_out, bn_count):
    """conv3 + BN + LeakyReLU with conv4 (4x4 VALID, Cout=1) + sigmoid fused in."""

    def kernel(p_ref, w_ref, b_ref, g_ref, bt_ref, mask_ref,
               w4_ref, sel_ref, b4_ref, o_ref):
        acc = None
        for t, s in enumerate(shifts):
            x_t = p_ref[pl.ds(s, m_out), :]
            d = jnp.dot(x_t, w_ref[t], preferred_element_type=jnp.float32)
            acc = d if acc is None else acc + d

        x = acc + b_ref[...]
        mask = mask_ref[...]
        inv_n = 1.0 / bn_count
        mean = jnp.sum(x * mask, axis=0, keepdims=True) * inv_n
        diff = (x - mean) * mask
        var = jnp.sum(diff * diff, axis=0, keepdims=True) * inv_n
        x = (x - mean) * jax.lax.rsqrt(var + BN_EPS)
        x = x * g_ref[...] + bt_ref[...]
        y = jnp.where(x > 0, x, LRELU_SLOPE * x)               # conv3 activation (M, 128)

        # fused conv4: per-row weighted lane reduction, then per-sample row sums.
        z = jnp.sum(y * w4_ref[...], axis=1, keepdims=True)    # (M, 1)
        logits = jnp.dot(sel_ref[...], z,
                         preferred_element_type=jnp.float32) + b4_ref[...]
        o_ref[...] = 1.0 / (1.0 + jnp.exp(-logits))            # sigmoid

    return kernel


# --------------------------------------------------------------------------
# Host-side glue (pure relayout, ~1x data volume, all plain XLA ops)
# --------------------------------------------------------------------------
def _phase_form(x_nhwc):
    """pad(1) + 2x2 space-to-depth + row flatten.  Appends a few zero rows so
    the in-kernel shifted tap loads stay in bounds.  Returns (flat bf16, QH, QW)."""
    N, H, W, C = x_nhwc.shape
    assert H % 2 == 0 and W % 2 == 0
    xp = jnp.pad(x_nhwc, ((0, 0), (1, 1), (1, 1), (0, 0)))
    QH, QW = (H + 2) // 2, (W + 2) // 2
    ph = xp.reshape(N, QH, 2, QW, 2, C).transpose(0, 1, 3, 2, 4, 5)
    flat = ph.reshape(N * QH * QW, 4 * C)
    m = N * QH * QW
    total = _round_up(m + QW + 1, 8)
    flat = jnp.pad(flat, ((0, total - m), (0, 0)))
    return flat.astype(jnp.bfloat16), QH, QW


def _valid_mask(N, QH, QW, OH, OW):
    mh = (jnp.arange(QH) < OH).astype(jnp.float32)
    mw = (jnp.arange(QW) < OW).astype(jnp.float32)
    m = jnp.broadcast_to((mh[:, None] * mw[None, :])[None], (N, QH, QW))
    return m.reshape(N * QH * QW, 1)


def _pad_channels(x, c_real, c_pad):
    x = x[..., :c_real]
    return jnp.pad(x, ((0, 0), (0, 0), (0, 0), (0, c_pad - c_real)))


# --------------------------------------------------------------------------
# Layer wrappers
# --------------------------------------------------------------------------
def _conv_lrelu(x_nhwc, w_phase, b_pad, g_pad=None, bt_pad=None):
    """4x4 / stride-2 / pad-1 conv (+ optional training-mode BN) + LeakyReLU."""
    N, H, W, _ = x_nhwc.shape
    OH, OW = H // 2, W // 2
    flat, QH, QW = _phase_form(x_nhwc)
    m_out = N * QH * QW
    cout_pad = w_phase.shape[-1]
    shifts = (0, 1, QW, QW + 1)
    use_bn = g_pad is not None

    args = [flat, w_phase, b_pad]
    in_specs = [
        pl.BlockSpec(flat.shape, lambda i: (0, 0)),
        pl.BlockSpec(w_phase.shape, lambda i: (0, 0, 0)),
        pl.BlockSpec((1, cout_pad), lambda i: (0, 0)),
    ]
    bn_count = 1.0
    if use_bn:
        mask = _valid_mask(N, QH, QW, OH, OW)
        bn_count = float(N * OH * OW)
        args += [g_pad, bt_pad, mask]
        in_specs += [
            pl.BlockSpec((1, cout_pad), lambda i: (0, 0)),
            pl.BlockSpec((1, cout_pad), lambda i: (0, 0)),
            pl.BlockSpec((m_out, 1), lambda i: (0, 0)),
        ]

    out = pl.pallas_call(
        _make_conv_kernel(shifts, m_out, use_bn, bn_count),
        out_shape=jax.ShapeDtypeStruct((m_out, cout_pad), jnp.bfloat16),
        grid=(1,),
        in_specs=in_specs,
        out_specs=pl.BlockSpec((m_out, cout_pad), lambda i: (0, 0)),
        compiler_params=pltpu.CompilerParams(dimension_semantics=("arbitrary",)),
    )(*args)
    # Drop the garbage phase-ring row/col; stay NHWC, channel-padded, bf16.
    return out.reshape(N, QH, QW, cout_pad)[:, :OH, :OW, :]


def _conv3_conv4_head(x_nhwc, w3_phase, b3_pad, g3_pad, bt3_pad, w4, b4):
    """conv3 + BN + LeakyReLU + conv4 + sigmoid, fused in one pallas_call."""
    N, H, W, _ = x_nhwc.shape
    OH, OW = H // 2, W // 2
    flat, QH, QW = _phase_form(x_nhwc)
    m_out = N * QH * QW
    cout_pad = w3_phase.shape[-1]
    shifts = (0, 1, QW, QW + 1)
    mask = _valid_mask(N, QH, QW, OH, OW)
    bn_count = float(N * OH * OW)

    cout4, cin4, k4, _kw = w4.shape                 # (1, 4d, 4, 4)
    assert cout4 == 1 and OH == k4 and OW == k4 and cin4 <= cout_pad
    w4map = jnp.zeros((QH, QW, cout_pad), jnp.float32)
    w4map = w4map.at[:k4, :k4, :cin4].set(jnp.transpose(w4[0], (1, 2, 0)))
    w4map = jnp.broadcast_to(w4map[None], (N, QH, QW, cout_pad)).reshape(m_out, cout_pad)
    sel = jnp.kron(jnp.eye(N, dtype=jnp.float32),
                   jnp.ones((1, QH * QW), jnp.float32))          # (N, m_out)
    b4_arr = b4.reshape(1, 1).astype(jnp.float32)

    out = pl.pallas_call(
        _make_head_kernel(shifts, m_out, bn_count),
        out_shape=jax.ShapeDtypeStruct((N, 1), jnp.float32),
        grid=(1,),
        in_specs=[
            pl.BlockSpec(flat.shape, lambda i: (0, 0)),
            pl.BlockSpec(w3_phase.shape, lambda i: (0, 0, 0)),
            pl.BlockSpec((1, cout_pad), lambda i: (0, 0)),
            pl.BlockSpec((1, cout_pad), lambda i: (0, 0)),
            pl.BlockSpec((1, cout_pad), lambda i: (0, 0)),
            pl.BlockSpec((m_out, 1), lambda i: (0, 0)),
            pl.BlockSpec((m_out, cout_pad), lambda i: (0, 0)),
            pl.BlockSpec((N, m_out), lambda i: (0, 0)),
            pl.BlockSpec((1, 1), lambda i: (0, 0)),
        ],
        out_specs=pl.BlockSpec((N, 1), lambda i: (0, 0)),
        compiler_params=pltpu.CompilerParams(dimension_semantics=("arbitrary",)),
    )(flat, w3_phase, b3_pad, g3_pad, bt3_pad, mask, w4map, sel, b4_arr)
    return out


# --------------------------------------------------------------------------
# Parameters (PyTorch layout -> phase/lane-padded layout, done once at init)
# --------------------------------------------------------------------------
def init_params(key, d=16):
    ks = jax.random.split(key, 4)
    std = 0.02

    def conv_w(k, cout, cin, kk):
        return std * jax.random.normal(k, (cout, cin, kk, kk), jnp.float32)

    return {
        "w1": conv_w(ks[0], d // 2, 1, 4),      "b1": jnp.zeros((d // 2,), jnp.float32),
        "w2": conv_w(ks[1], d * 2, d // 2, 4),  "b2": jnp.zeros((d * 2,), jnp.float32),
        "g2": jnp.ones((d * 2,), jnp.float32),  "bt2": jnp.zeros((d * 2,), jnp.float32),
        "w3": conv_w(ks[2], d * 4, d * 2, 4),   "b3": jnp.zeros((d * 4,), jnp.float32),
        "g3": jnp.ones((d * 4,), jnp.float32),  "bt3": jnp.zeros((d * 4,), jnp.float32),
        "w4": conv_w(ks[3], 1, d * 4, 4),       "b4": jnp.zeros((1,), jnp.float32),
    }


def _prep_phase_weight(w):
    """PyTorch conv weight (Cout, Cin, 4, 4) -> bf16 phase-tap weight of shape
    (4 taps (dh,dw), 4*Cin_pad, Cout_pad) with lane-dense (multiple-of-128) dims."""
    cout, cin, kh, kw = w.shape
    assert kh == 4 and kw == 4
    cin_pad = _round_up(cin, LANES // 4)
    cout_pad = _round_up(cout, LANES)
    wp = jnp.zeros((4, 4 * cin_pad, cout_pad), jnp.float32)
    for dh in range(2):
        for dw in range(2):
            t = dh * 2 + dw
            for ph in range(2):
                for pw in range(2):
                    blk = w[:, :, 2 * dh + ph, 2 * dw + pw].T    # (Cin, Cout)
                    c0 = (ph * 2 + pw) * cin_pad
                    wp = wp.at[t, c0:c0 + cin, :cout].set(blk)
    return wp.astype(jnp.bfloat16)


def _pad_row(v, n, fill=0.0):
    return jnp.pad(v, (0, n - v.shape[0]),
                   constant_values=fill).reshape(1, n).astype(jnp.float32)


def prepare_params(p):
    cp1 = _round_up(p["w1"].shape[0], LANES)
    cp2 = _round_up(p["w2"].shape[0], LANES)
    cp3 = _round_up(p["w3"].shape[0], LANES)
    return {
        "w1": _prep_phase_weight(p["w1"]), "b1": _pad_row(p["b1"], cp1),
        "w2": _prep_phase_weight(p["w2"]), "b2": _pad_row(p["b2"], cp2),
        "g2": _pad_row(p["g2"], cp2, 1.0), "bt2": _pad_row(p["bt2"], cp2),
        "w3": _prep_phase_weight(p["w3"]), "b3": _pad_row(p["b3"], cp3),
        "g3": _pad_row(p["g3"], cp3, 1.0), "bt3": _pad_row(p["bt3"], cp3),
        "w4": p["w4"].astype(jnp.float32), "b4": p["b4"].astype(jnp.float32),
    }


# --------------------------------------------------------------------------
# Forward
# --------------------------------------------------------------------------
@functools.partial(jax.jit, static_argnames=("c1", "c2"))
def discriminator_forward(prep, x_nchw, *, c1, c2):
    N = x_nchw.shape[0]
    # NCHW -> NHWC once at the boundary; channels-last for the rest of the net.
    x = jnp.transpose(x_nchw, (0, 2, 3, 1))
    x = _pad_channels(x, x.shape[-1], prep["w1"].shape[1] // 4).astype(jnp.bfloat16)

    y = _conv_lrelu(x, prep["w1"], prep["b1"])                               # conv1_1 + lrelu
    y = _pad_channels(y, c1, prep["w2"].shape[1] // 4)
    y = _conv_lrelu(y, prep["w2"], prep["b2"], prep["g2"], prep["bt2"])      # conv2 + BN + lrelu
    y = _pad_channels(y, c2, prep["w3"].shape[1] // 4)
    out = _conv3_conv4_head(y, prep["w3"], prep["b3"], prep["g3"],
                            prep["bt3"], prep["w4"], prep["b4"])             # conv3+BN+lrelu+conv4+sigmoid
    return out.reshape(N, 1, 1, 1)


if __name__ == "__main__":
    key = jax.random.PRNGKey(0)
    k_param, k_x = jax.random.split(key)
    d = 16                                      # small 'd' (module default is 128)
    raw = init_params(k_param, d=d)
    prep = prepare_params(raw)
    # input: N=2, C=1 (conv1_1 expects 1 channel), 32x32 so conv4 sees 4x4.
    x = jax.random.normal(k_x, (2, 1, 32, 32), jnp.float32)

    out = discriminator_forward(prep, x, c1=d // 2, c2=2 * d)
    out = jax.block_until_ready(out)
    assert out.shape == (2, 1, 1, 1), out.shape
    assert bool(jnp.all(jnp.isfinite(out))), "non-finite output"
    assert bool(jnp.all((out >= 0.0) & (out <= 1.0))), "sigmoid range violated"
    print("KERNEL_OK")
</pallas_src>

<mosaic_0001>
module attributes {stable_mosaic.version = 11 : i64} {
  func.func @kernel(%arg0: i32, %arg1: memref<600x128xbf16, #tpu.memory_space<vmem>>, %arg2: memref<4x128x128xbf16, #tpu.memory_space<vmem>>, %arg3: memref<1x128xf32, #tpu.memory_space<vmem>>, %arg4: memref<578x128xbf16, #tpu.memory_space<vmem>>) attributes {dimension_semantics = [#tpu.dimension_semantics<arbitrary>], iteration_bounds = array<i64: 1>, scalar_prefetch = 0 : i64, scratch_operands = 0 : i64, tpu.core_type = #tpu.core_type<tc>, window_params = [{pipeline_mode = #tpu.pipeline_mode<synchronous>, transform_indices = @transform_0, window_bounds = array<i64: 600, 128>}, {pipeline_mode = #tpu.pipeline_mode<synchronous>, transform_indices = @transform_1, window_bounds = array<i64: 4, 128, 128>}, {pipeline_mode = #tpu.pipeline_mode<synchronous>, transform_indices = @transform_2, window_bounds = array<i64: 1, 128>}, {pipeline_mode = #tpu.pipeline_mode<synchronous>, transform_indices = @transform_3, window_bounds = array<i64: 578, 128>}]} {
    %c0 = arith.constant 0 : index
    %c0_0 = arith.constant 0 : index
    %0 = vector.load %arg1[%c0, %c0_0] : memref<600x128xbf16, #tpu.memory_space<vmem>>, vector<578x128xbf16>
    %c0_1 = arith.constant 0 : index
    %c0_2 = arith.constant 0 : index
    %c0_3 = arith.constant 0 : index
    %1 = vector.load %arg2[%c0_1, %c0_2, %c0_3] : memref<4x128x128xbf16, #tpu.memory_space<vmem>>, vector<1x128x128xbf16>
    %2 = vector.shape_cast %1 : vector<1x128x128xbf16> to vector<128x128xbf16>
    %cst = arith.constant dense<0.000000e+00> : vector<578x128xf32>
    %3 = tpu.matmul %0, %2, %cst {dimension_numbers = #tpu.dot_dimension_numbers<[1], [0], [0], [1], [0, 0, 1, 1], [], []>} : vector<578x128xbf16>, vector<128x128xbf16>, vector<578x128xf32> -> vector<578x128xf32>
    %c1 = arith.constant 1 : index
    %c0_4 = arith.constant 0 : index
    %4 = vector.load %arg1[%c1, %c0_4] : memref<600x128xbf16, #tpu.memory_space<vmem>>, vector<578x128xbf16>
    %c1_5 = arith.constant 1 : index
    %c0_6 = arith.constant 0 : index
    %c0_7 = arith.constant 0 : index
    %5 = vector.load %arg2[%c1_5, %c0_6, %c0_7] : memref<4x128x128xbf16, #tpu.memory_space<vmem>>, vector<1x128x128xbf16>
    %6 = vector.shape_cast %5 : vector<1x128x128xbf16> to vector<128x128xbf16>
    %cst_8 = arith.constant dense<0.000000e+00> : vector<578x128xf32>
    %7 = tpu.matmul %4, %6, %cst_8 {dimension_numbers = #tpu.dot_dimension_numbers<[1], [0], [0], [1], [0, 0, 1, 1], [], []>} : vector<578x128xbf16>, vector<128x128xbf16>, vector<578x128xf32> -> vector<578x128xf32>
    %8 = arith.addf %3, %7 : vector<578x128xf32>
    %c17 = arith.constant 17 : index
    %c0_9 = arith.constant 0 : index
    %9 = vector.load %arg1[%c17, %c0_9] : memref<600x128xbf16, #tpu.memory_space<vmem>>, vector<578x128xbf16>
    %c2 = arith.constant 2 : index
    %c0_10 = arith.constant 0 : index
    %c0_11 = arith.constant 0 : index
    %10 = vector.load %arg2[%c2, %c0_10, %c0_11] : memref<4x128x128xbf16, #tpu.memory_space<vmem>>, vector<1x128x128xbf16>
    %11 = vector.shape_cast %10 : vector<1x128x128xbf16> to vector<128x128xbf16>
    %cst_12 = arith.constant dense<0.000000e+00> : vector<578x128xf32>
    %12 = tpu.matmul %9, %11, %cst_12 {dimension_numbers = #tpu.dot_dimension_numbers<[1], [0], [0], [1], [0, 0, 1, 1], [], []>} : vector<578x128xbf16>, vector<128x128xbf16>, vector<578x128xf32> -> vector<578x128xf32>
    %13 = arith.addf %8, %12 : vector<578x128xf32>
    %c18 = arith.constant 18 : index
    %c0_13 = arith.constant 0 : index
    %14 = vector.load %arg1[%c18, %c0_13] : memref<600x128xbf16, #tpu.memory_space<vmem>>, vector<578x128xbf16>
    %c3 = arith.constant 3 : index
    %c0_14 = arith.constant 0 : index
    %c0_15 = arith.constant 0 : index
    %15 = vector.load %arg2[%c3, %c0_14, %c0_15] : memref<4x128x128xbf16, #tpu.memory_space<vmem>>, vector<1x128x128xbf16>
    %16 = vector.shape_cast %15 : vector<1x128x128xbf16> to vector<128x128xbf16>
    %cst_16 = arith.constant dense<0.000000e+00> : vector<578x128xf32>
    %17 = tpu.matmul %14, %16, %cst_16 {dimension_numbers = #tpu.dot_dimension_numbers<[1], [0], [0], [1], [0, 0, 1, 1], [], []>} : vector<578x128xbf16>, vector<128x128xbf16>, vector<578x128xf32> -> vector<578x128xf32>
    %18 = arith.addf %13, %17 : vector<578x128xf32>
    %c0_17 = arith.constant 0 : index
    %c0_18 = arith.constant 0 : index
    %19 = vector.load %arg3[%c0_17, %c0_18] : memref<1x128xf32, #tpu.memory_space<vmem>>, vector<1x128xf32>
    %20 = vector.broadcast %19 : vector<1x128xf32> to vector<578x128xf32>
    %21 = arith.addf %18, %20 : vector<578x128xf32>
    %cst_19 = arith.constant 0.000000e+00 : f32
    %22 = vector.broadcast %cst_19 : f32 to vector<578x128xf32>
    %23 = arith.cmpf ogt, %21, %22 : vector<578x128xf32>
    %cst_20 = arith.constant 2.000000e-01 : f32
    %24 = vector.broadcast %cst_20 : f32 to vector<578x128xf32>
    %25 = arith.mulf %24, %21 : vector<578x128xf32>
    %26 = arith.select %23, %21, %25 : vector<578x128xi1>, vector<578x128xf32>
    %27 = arith.truncf %26 : vector<578x128xf32> to vector<578x128xbf16>
    %c0_21 = arith.constant 0 : index
    %c0_22 = arith.constant 0 : index
    %28 = vector.load %arg4[%c0_21, %c0_22] : memref<578x128xbf16, #tpu.memory_space<vmem>>, vector<578x128xbf16>
    tpu.vector_store %arg4[%c0_21, %c0_22], %27 {strides = array<i32>} : memref<578x128xbf16, #tpu.memory_space<vmem>>, vector<578x128xbf16>,
    return
  }
  func.func @transform_0(%arg0: i32) -> (i32, i32) {
    %c0_i32 = arith.constant 0 : i32
    %c0_i32_0 = arith.constant 0 : i32
    %c0_i32_1 = arith.constant 0 : i32
    return %c0_i32, %c0_i32_0 : i32, i32
  }
  func.func @transform_1(%arg0: i32) -> (i32, i32, i32) {
    %c0_i32 = arith.constant 0 : i32
    %c0_i32_0 = arith.constant 0 : i32
    %c0_i32_1 = arith.constant 0 : i32
    %c0_i32_2 = arith.constant 0 : i32
    return %c0_i32, %c0_i32_0, %c0_i32_1 : i32, i32, i32
  }
  func.func @transform_2(%arg0: i32) -> (i32, i32) {
    %c0_i32 = arith.constant 0 : i32
    %c0_i32_0 = arith.constant 0 : i32
    %c0_i32_1 = arith.constant 0 : i32
    return %c0_i32, %c0_i32_0 : i32, i32
  }
  func.func @transform_3(%arg0: i32) -> (i32, i32) {
    %c0_i32 = arith.constant 0 : i32
    %c0_i32_0 = arith.constant 0 : i32
    %c0_i32_1 = arith.constant 0 : i32
    return %c0_i32, %c0_i32_0 : i32, i32
  }
}

module attributes {stable_mosaic.version = 11 : i64} {
  func.func @kernel(%arg0: i32, %arg1: memref<176x128xbf16, #tpu.memory_space<vmem>>, %arg2: memref<4x128x128xbf16, #tpu.memory_space<vmem>>, %arg3: memref<1x128xf32, #tpu.memory_space<vmem>>, %arg4: memref<1x128xf32, #tpu.memory_space<vmem>>, %arg5: memref<1x128xf32, #tpu.memory_space<vmem>>, %arg6: memref<162x1xf32, #tpu.memory_space<vmem>>, %arg7: memref<162x128xbf16, #tpu.memory_space<vmem>>) attributes {dimension_semantics = [#tpu.dimension_semantics<arbitrary>], iteration_bounds = array<i64: 1>, scalar_prefetch = 0 : i64, scratch_operands = 0 : i64, tpu.core_type = #tpu.core_type<tc>, window_params = [{pipeline_mode = #tpu.pipeline_mode<synchronous>, transform_indices = @transform_0, window_bounds = array<i64: 176, 128>}, {pipeline_mode = #tpu.pipeline_mode<synchronous>, transform_indices = @transform_1, window_bounds = array<i64: 4, 128, 128>}, {pipeline_mode = #tpu.pipeline_mode<synchronous>, transform_indices = @transform_2, window_bounds = array<i64: 1, 128>}, {pipeline_mode = #tpu.pipeline_mode<synchronous>, transform_indices = @transform_3, window_bounds = array<i64: 1, 128>}, {pipeline_mode = #tpu.pipeline_mode<synchronous>, transform_indices = @transform_4, window_bounds = array<i64: 1, 128>}, {pipeline_mode = #tpu.pipeline_mode<synchronous>, transform_indices = @transform_5, window_bounds = array<i64: 162, 1>}, {pipeline_mode = #tpu.pipeline_mode<synchronous>, transform_indices = @transform_6, window_bounds = array<i64: 162, 128>}]} {
    %c0 = arith.constant 0 : index
    %c0_0 = arith.constant 0 : index
    %0 = vector.load %arg1[%c0, %c0_0] : memref<176x128xbf16, #tpu.memory_space<vmem>>, vector<162x128xbf16>
    %c0_1 = arith.constant 0 : index
    %c0_2 = arith.constant 0 : index
    %c0_3 = arith.constant 0 : index
    %1 = vector.load %arg2[%c0_1, %c0_2, %c0_3] : memref<4x128x128xbf16, #tpu.memory_space<vmem>>, vector<1x128x128xbf16>
    %2 = vector.shape_cast %1 : vector<1x128x128xbf16> to vector<128x128xbf16>
    %cst = arith.constant dense<0.000000e+00> : vector<162x128xf32>
    %3 = tpu.matmul %0, %2, %cst {dimension_numbers = #tpu.dot_dimension_numbers<[1], [0], [0], [1], [0, 0, 1, 1], [], []>} : vector<162x128xbf16>, vector<128x128xbf16>, vector<162x128xf32> -> vector<162x128xf32>
    %c1 = arith.constant 1 : index
    %c0_4 = arith.constant 0 : index
    %4 = vector.load %arg1[%c1, %c0_4] : memref<176x128xbf16, #tpu.memory_space<vmem>>, vector<162x128xbf16>
    %c1_5 = arith.constant 1 : index
    %c0_6 = arith.constant 0 : index
    %c0_7 = arith.constant 0 : index
    %5 = vector.load %arg2[%c1_5, %c0_6, %c0_7] : memref<4x128x128xbf16, #tpu.memory_space<vmem>>, vector<1x128x128xbf16>
    %6 = vector.shape_cast %5 : vector<1x128x128xbf16> to vector<128x128xbf16>
    %cst_8 = arith.constant dense<0.000000e+00> : vector<162x128xf32>
    %7 = tpu.matmul %4, %6, %cst_8 {dimension_numbers = #tpu.dot_dimension_numbers<[1], [0], [0], [1], [0, 0, 1, 1], [], []>} : vector<162x128xbf16>, vector<128x128xbf16>, vector<162x128xf32> -> vector<162x128xf32>
    %8 = arith.addf %3, %7 : vector<162x128xf32>
    %c9 = arith.constant 9 : index
    %c0_9 = arith.constant 0 : index
    %9 = vector.load %arg1[%c9, %c0_9] : memref<176x128xbf16, #tpu.memory_space<vmem>>, vector<162x128xbf16>
    %c2 = arith.constant 2 : index
    %c0_10 = arith.constant 0 : index
    %c0_11 = arith.constant 0 : index
    %10 = vector.load %arg2[%c2, %c0_10, %c0_11] : memref<4x128x128xbf16, #tpu.memory_space<vmem>>, vector<1x128x128xbf16>
    %11 = vector.shape_cast %10 : vector<1x128x128xbf16> to vector<128x128xbf16>
    %cst_12 = arith.constant dense<0.000000e+00> : vector<162x128xf32>
    %12 = tpu.matmul %9, %11, %cst_12 {dimension_numbers = #tpu.dot_dimension_numbers<[1], [0], [0], [1], [0, 0, 1, 1], [], []>} : vector<162x128xbf16>, vector<128x128xbf16>, vector<162x128xf32> -> vector<162x128xf32>
    %13 = arith.addf %8, %12 : vector<162x128xf32>
    %c10 = arith.constant 10 : index
    %c0_13 = arith.constant 0 : index
    %14 = vector.load %arg1[%c10, %c0_13] : memref<176x128xbf16, #tpu.memory_space<vmem>>, vector<162x128xbf16>
    %c3 = arith.constant 3 : index
    %c0_14 = arith.constant 0 : index
    %c0_15 = arith.constant 0 : index
    %15 = vector.load %arg2[%c3, %c0_14, %c0_15] : memref<4x128x128xbf16, #tpu.memory_space<vmem>>, vector<1x128x128xbf16>
    %16 = vector.shape_cast %15 : vector<1x128x128xbf16> to vector<128x128xbf16>
    %cst_16 = arith.constant dense<0.000000e+00> : vector<162x128xf32>
    %17 = tpu.matmul %14, %16, %cst_16 {dimension_numbers = #tpu.dot_dimension_numbers<[1], [0], [0], [1], [0, 0, 1, 1], [], []>} : vector<162x128xbf16>, vector<128x128xbf16>, vector<162x128xf32> -> vector<162x128xf32>
    %18 = arith.addf %13, %17 : vector<162x128xf32>
    %c0_17 = arith.constant 0 : index
    %c0_18 = arith.constant 0 : index
    %19 = vector.load %arg3[%c0_17, %c0_18] : memref<1x128xf32, #tpu.memory_space<vmem>>, vector<1x128xf32>
    %20 = vector.broadcast %19 : vector<1x128xf32> to vector<162x128xf32>
    %21 = arith.addf %18, %20 : vector<162x128xf32>
    %c0_19 = arith.constant 0 : index
    %c0_20 = arith.constant 0 : index
    %22 = vector.load %arg6[%c0_19, %c0_20] : memref<162x1xf32, #tpu.memory_space<vmem>>, vector<162x1xf32>
    %23 = vector.broadcast %22 : vector<162x1xf32> to vector<162x128xf32>
    %24 = arith.mulf %21, %23 : vector<162x128xf32>
    %cst_21 = arith.constant dense<0.000000e+00> : vector<128xf32>
    %25 = vector.multi_reduction <add>, %24, %cst_21 [0] : vector<162x128xf32> to vector<128xf32>
    %26 = vector.shape_cast %25 : vector<128xf32> to vector<1x128xf32>
    %cst_22 = arith.constant 7.812500e-03 : f32
    %27 = vector.broadcast %cst_22 : f32 to vector<1x128xf32>
    %28 = arith.mulf %26, %27 : vector<1x128xf32>
    %29 = vector.broadcast %28 : vector<1x128xf32> to vector<162x128xf32>
    %30 = arith.subf %21, %29 : vector<162x128xf32>
    %31 = vector.broadcast %22 : vector<162x1xf32> to vector<162x128xf32>
    %32 = arith.mulf %30, %31 : vector<162x128xf32>
    %33 = arith.mulf %32, %32 : vector<162x128xf32>
    %cst_23 = arith.constant dense<0.000000e+00> : vector<128xf32>
    %34 = vector.multi_reduction <add>, %33, %cst_23 [0] : vector<162x128xf32> to vector<128xf32>
    %35 = vector.shape_cast %34 : vector<128xf32> to vector<1x128xf32>
    %cst_24 = arith.constant 7.812500e-03 : f32
    %36 = vector.broadcast %cst_24 : f32 to vector<1x128xf32>
    %37 = arith.mulf %35, %36 : vector<1x128xf32>
    %38 = vector.broadcast %28 : vector<1x128xf32> to vector<162x128xf32>
    %39 = arith.subf %21, %38 : vector<162x128xf32>
    %cst_25 = arith.constant 9.99999974E-6 : f32
    %40 = vector.broadcast %cst_25 : f32 to vector<1x128xf32>
    %41 = arith.addf %37, %40 : vector<1x128xf32>
    %42 = math.rsqrt %41 : vector<1x128xf32>
    %43 = vector.broadcast %42 : vector<1x128xf32> to vector<162x128xf32>
    %44 = arith.mulf %39, %43 : vector<162x128xf32>
    %c0_26 = arith.constant 0 : index
    %c0_27 = arith.constant 0 : index
    %45 = vector.load %arg4[%c0_26, %c0_27] : memref<1x128xf32, #tpu.memory_space<vmem>>, vector<1x128xf32>
    %46 = vector.broadcast %45 : vector<1x128xf32> to vector<162x128xf32>
    %47 = arith.mulf %44, %46 : vector<162x128xf32>
    %c0_28 = arith.constant 0 : index
    %c0_29 = arith.constant 0 : index
    %48 = vector.load %arg5[%c0_28, %c0_29] : memref<1x128xf32, #tpu.memory_space<vmem>>, vector<1x128xf32>
    %49 = vector.broadcast %48 : vector<1x128xf32> to vector<162x128xf32>
    %50 = arith.addf %47, %49 : vector<162x128xf32>
    %cst_30 = arith.constant 0.000000e+00 : f32
    %51 = vector.broadcast %cst_30 : f32 to vector<162x128xf32>
    %52 = arith.cmpf ogt, %50, %51 : vector<162x128xf32>
    %cst_31 = arith.constant 2.000000e-01 : f32
    %53 = vector.broadcast %cst_31 : f32 to vector<162x128xf32>
    %54 = arith.mulf %53, %50 : vector<162x128xf32>
    %55 = arith.select %52, %50, %54 : vector<162x128xi1>, vector<162x128xf32>
    %56 = arith.truncf %55 : vector<162x128xf32> to vector<162x128xbf16>
    %c0_32 = arith.constant 0 : index
    %c0_33 = arith.constant 0 : index
    %57 = vector.load %arg7[%c0_32, %c0_33] : memref<162x128xbf16, #tpu.memory_space<vmem>>, vector<162x128xbf16>
    tpu.vector_store %arg7[%c0_32, %c0_33], %56 {strides = array<i32>} : memref<162x128xbf16, #tpu.memory_space<vmem>>, vector<162x128xbf16>,
    return
  }
  func.func @transform_0(%arg0: i32) -> (i32, i32) {
    %c0_i32 = arith.constant 0 : i32
    %c0_i32_0 = arith.constant 0 : i32
    %c0_i32_1 = arith.constant 0 : i32
    return %c0_i32, %c0_i32_0 : i32, i32
  }
  func.func @transform_1(%arg0: i32) -> (i32, i32, i32) {
    %c0_i32 = arith.constant 0 : i32
    %c0_i32_0 = arith.constant 0 : i32
    %c0_i32_1 = arith.constant 0 : i32
    %c0_i32_2 = arith.constant 0 : i32
    return %c0_i32, %c0_i32_0, %c0_i32_1 : i32, i32, i32
  }
  func.func @transform_2(%arg0: i32) -> (i32, i32) {
    %c0_i32 = arith.constant 0 : i32
    %c0_i32_0 = arith.constant 0 : i32
    %c0_i32_1 = arith.constant 0 : i32
    return %c0_i32, %c0_i32_0 : i32, i32
  }
  func.func @transform_3(%arg0: i32) -> (i32, i32) {
    %c0_i32 = arith.constant 0 : i32
    %c0_i32_0 = arith.constant 0 : i32
    %c0_i32_1 = arith.constant 0 : i32
    return %c0_i32, %c0_i32_0 : i32, i32
  }
  func.func @transform_4(%arg0: i32) -> (i32, i32) {
    %c0_i32 = arith.constant 0 : i32
    %c0_i32_0 = arith.constant 0 : i32
    %c0_i32_1 = arith.constant 0 : i32
    return %c0_i32, %c0_i32_0 : i32, i32
  }
  func.func @transform_5(%arg0: i32) -> (i32, i32) {
    %c0_i32 = arith.constant 0 : i32
    %c0_i32_0 = arith.constant 0 : i32
    %c0_i32_1 = arith.constant 0 : i32
    return %c0_i32, %c0_i32_0 : i32, i32
  }
  func.func @transform_6(%arg0: i32) -> (i32, i32) {
    %c0_i32 = arith.constant 0 : i32
    %c0_i32_0 = arith.constant 0 : i32
    %c0_i32_1 = arith.constant 0 : i32
    return %c0_i32, %c0_i32_0 : i32, i32
  }
}

module attributes {stable_mosaic.version = 11 : i64} {
  func.func @kernel(%arg0: i32, %arg1: memref<56x128xbf16, #tpu.memory_space<vmem>>, %arg2: memref<4x128x128xbf16, #tpu.memory_space<vmem>>, %arg3: memref<1x128xf32, #tpu.memory_space<vmem>>, %arg4: memref<1x128xf32, #tpu.memory_space<vmem>>, %arg5: memref<1x128xf32, #tpu.memory_space<vmem>>, %arg6: memref<50x1xf32, #tpu.memory_space<vmem>>, %arg7: memref<50x128xf32, #tpu.memory_space<vmem>>, %arg8: memref<2x50xf32, #tpu.memory_space<vmem>>, %arg9: memref<1x1xf32, #tpu.memory_space<vmem>>, %arg10: memref<2x1xf32, #tpu.memory_space<vmem>>) attributes {dimension_semantics = [#tpu.dimension_semantics<arbitrary>], iteration_bounds = array<i64: 1>, scalar_prefetch = 0 : i64, scratch_operands = 0 : i64, tpu.core_type = #tpu.core_type<tc>, window_params = [{pipeline_mode = #tpu.pipeline_mode<synchronous>, transform_indices = @transform_0, window_bounds = array<i64: 56, 128>}, {pipeline_mode = #tpu.pipeline_mode<synchronous>, transform_indices = @transform_1, window_bounds = array<i64: 4, 128, 128>}, {pipeline_mode = #tpu.pipeline_mode<synchronous>, transform_indices = @transform_2, window_bounds = array<i64: 1, 128>}, {pipeline_mode = #tpu.pipeline_mode<synchronous>, transform_indices = @transform_3, window_bounds = array<i64: 1, 128>}, {pipeline_mode = #tpu.pipeline_mode<synchronous>, transform_indices = @transform_4, window_bounds = array<i64: 1, 128>}, {pipeline_mode = #tpu.pipeline_mode<synchronous>, transform_indices = @transform_5, window_bounds = array<i64: 50, 1>}, {pipeline_mode = #tpu.pipeline_mode<synchronous>, transform_indices = @transform_6, window_bounds = array<i64: 50, 128>}, {pipeline_mode = #tpu.pipeline_mode<synchronous>, transform_indices = @transform_7, window_bounds = array<i64: 2, 50>}, {pipeline_mode = #tpu.pipeline_mode<synchronous>, transform_indices = @transform_8, window_bounds = array<i64: 1, 1>}, {pipeline_mode = #tpu.pipeline_mode<synchronous>, transform_indices = @transform_9, window_bounds = array<i64: 2, 1>}]} {
    %c0 = arith.constant 0 : index
    %c0_0 = arith.constant 0 : index
    %0 = vector.load %arg1[%c0, %c0_0] : memref<56x128xbf16, #tpu.memory_space<vmem>>, vector<50x128xbf16>
    %c0_1 = arith.constant 0 : index
    %c0_2 = arith.constant 0 : index
    %c0_3 = arith.constant 0 : index
    %1 = vector.load %arg2[%c0_1, %c0_2, %c0_3] : memref<4x128x128xbf16, #tpu.memory_space<vmem>>, vector<1x128x128xbf16>
    %2 = vector.shape_cast %1 : vector<1x128x128xbf16> to vector<128x128xbf16>
    %cst = arith.constant dense<0.000000e+00> : vector<50x128xf32>
    %3 = tpu.matmul %0, %2, %cst {dimension_numbers = #tpu.dot_dimension_numbers<[1], [0], [0], [1], [0, 0, 1, 1], [], []>} : vector<50x128xbf16>, vector<128x128xbf16>, vector<50x128xf32> -> vector<50x128xf32>
    %c1 = arith.constant 1 : index
    %c0_4 = arith.constant 0 : index
    %4 = vector.load %arg1[%c1, %c0_4] : memref<56x128xbf16, #tpu.memory_space<vmem>>, vector<50x128xbf16>
    %c1_5 = arith.constant 1 : index
    %c0_6 = arith.constant 0 : index
    %c0_7 = arith.constant 0 : index
    %5 = vector.load %arg2[%c1_5, %c0_6, %c0_7] : memref<4x128x128xbf16, #tpu.memory_space<vmem>>, vector<1x128x128xbf16>
    %6 = vector.shape_cast %5 : vector<1x128x128xbf16> to vector<128x128xbf16>
    %cst_8 = arith.constant dense<0.000000e+00> : vector<50x128xf32>
    %7 = tpu.matmul %4, %6, %cst_8 {dimension_numbers = #tpu.dot_dimension_numbers<[1], [0], [0], [1], [0, 0, 1, 1], [], []>} : vector<50x128xbf16>, vector<128x128xbf16>, vector<50x128xf32> -> vector<50x128xf32>
    %8 = arith.addf %3, %7 : vector<50x128xf32>
    %c5 = arith.constant 5 : index
    %c0_9 = arith.constant 0 : index
    %9 = vector.load %arg1[%c5, %c0_9] : memref<56x128xbf16, #tpu.memory_space<vmem>>, vector<50x128xbf16>
    %c2 = arith.constant 2 : index
    %c0_10 = arith.constant 0 : index
    %c0_11 = arith.constant 0 : index
    %10 = vector.load %arg2[%c2, %c0_10, %c0_11] : memref<4x128x128xbf16, #tpu.memory_space<vmem>>, vector<1x128x128xbf16>
    %11 = vector.shape_cast %10 : vector<1x128x128xbf16> to vector<128x128xbf16>
    %cst_12 = arith.constant dense<0.000000e+00> : vector<50x128xf32>
    %12 = tpu.matmul %9, %11, %cst_12 {dimension_numbers = #tpu.dot_dimension_numbers<[1], [0], [0], [1], [0, 0, 1, 1], [], []>} : vector<50x128xbf16>, vector<128x128xbf16>, vector<50x128xf32> -> vector<50x128xf32>
    %13 = arith.addf %8, %12 : vector<50x128xf32>
    %c6 = arith.constant 6 : index
    %c0_13 = arith.constant 0 : index
    %14 = vector.load %arg1[%c6, %c0_13] : memref<56x128xbf16, #tpu.memory_space<vmem>>, vector<50x128xbf16>
    %c3 = arith.constant 3 : index
    %c0_14 = arith.constant 0 : index
    %c0_15 = arith.constant 0 : index
    %15 = vector.load %arg2[%c3, %c0_14, %c0_15] : memref<4x128x128xbf16, #tpu.memory_space<vmem>>, vector<1x128x128xbf16>
    %16 = vector.shape_cast %15 : vector<1x128x128xbf16> to vector<128x128xbf16>
    %cst_16 = arith.constant dense<0.000000e+00> : vector<50x128xf32>
    %17 = tpu.matmul %14, %16, %cst_16 {dimension_numbers = #tpu.dot_dimension_numbers<[1], [0], [0], [1], [0, 0, 1, 1], [], []>} : vector<50x128xbf16>, vector<128x128xbf16>, vector<50x128xf32> -> vector<50x128xf32>
    %18 = arith.addf %13, %17 : vector<50x128xf32>
    %c0_17 = arith.constant 0 : index
    %c0_18 = arith.constant 0 : index
    %19 = vector.load %arg3[%c0_17, %c0_18] : memref<1x128xf32, #tpu.memory_space<vmem>>, vector<1x128xf32>
    %20 = vector.broadcast %19 : vector<1x128xf32> to vector<50x128xf32>
    %21 = arith.addf %18, %20 : vector<50x128xf32>
    %c0_19 = arith.constant 0 : index
    %c0_20 = arith.constant 0 : index
    %22 = vector.load %arg6[%c0_19, %c0_20] : memref<50x1xf32, #tpu.memory_space<vmem>>, vector<50x1xf32>
    %23 = vector.broadcast %22 : vector<50x1xf32> to vector<50x128xf32>
    %24 = arith.mulf %21, %23 : vector<50x128xf32>
    %cst_21 = arith.constant dense<0.000000e+00> : vector<128xf32>
    %25 = vector.multi_reduction <add>, %24, %cst_21 [0] : vector<50x128xf32> to vector<128xf32>
    %26 = vector.shape_cast %25 : vector<128xf32> to vector<1x128xf32>
    %cst_22 = arith.constant 3.125000e-02 : f32
    %27 = vector.broadcast %cst_22 : f32 to vector<1x128xf32>
    %28 = arith.mulf %26, %27 : vector<1x128xf32>
    %29 = vector.broadcast %28 : vector<1x128xf32> to vector<50x128xf32>
    %30 = arith.subf %21, %29 : vector<50x128xf32>
    %31 = vector.broadcast %22 : vector<50x1xf32> to vector<50x128xf32>
    %32 = arith.mulf %30, %31 : vector<50x128xf32>
    %33 = arith.mulf %32, %32 : vector<50x128xf32>
    %cst_23 = arith.constant dense<0.000000e+00> : vector<128xf32>
    %34 = vector.multi_reduction <add>, %33, %cst_23 [0] : vector<50x128xf32> to vector<128xf32>
    %35 = vector.shape_cast %34 : vector<128xf32> to vector<1x128xf32>
    %cst_24 = arith.constant 3.125000e-02 : f32
    %36 = vector.broadcast %cst_24 : f32 to vector<1x128xf32>
    %37 = arith.mulf %35, %36 : vector<1x128xf32>
    %38 = vector.broadcast %28 : vector<1x128xf32> to vector<50x128xf32>
    %39 = arith.subf %21, %38 : vector<50x128xf32>
    %cst_25 = arith.constant 9.99999974E-6 : f32
    %40 = vector.broadcast %cst_25 : f32 to vector<1x128xf32>
    %41 = arith.addf %37, %40 : vector<1x128xf32>
    %42 = math.rsqrt %41 : vector<1x128xf32>
    %43 = vector.broadcast %42 : vector<1x128xf32> to vector<50x128xf32>
    %44 = arith.mulf %39, %43 : vector<50x128xf32>
    %c0_26 = arith.constant 0 : index
    %c0_27 = arith.constant 0 : index
    %45 = vector.load %arg4[%c0_26, %c0_27] : memref<1x128xf32, #tpu.memory_space<vmem>>, vector<1x128xf32>
    %46 = vector.broadcast %45 : vector<1x128xf32> to vector<50x128xf32>
    %47 = arith.mulf %44, %46 : vector<50x128xf32>
    %c0_28 = arith.constant 0 : index
    %c0_29 = arith.constant 0 : index
    %48 = vector.load %arg5[%c0_28, %c0_29] : memref<1x128xf32, #tpu.memory_space<vmem>>, vector<1x128xf32>
    %49 = vector.broadcast %48 : vector<1x128xf32> to vector<50x128xf32>
    %50 = arith.addf %47, %49 : vector<50x128xf32>
    %cst_30 = arith.constant 0.000000e+00 : f32
    %51 = vector.broadcast %cst_30 : f32 to vector<50x128xf32>
    %52 = arith.cmpf ogt, %50, %51 : vector<50x128xf32>
    %cst_31 = arith.constant 2.000000e-01 : f32
    %53 = vector.broadcast %cst_31 : f32 to vector<50x128xf32>
    %54 = arith.mulf %53, %50 : vector<50x128xf32>
    %55 = arith.select %52, %50, %54 : vector<50x128xi1>, vector<50x128xf32>
    %c0_32 = arith.constant 0 : index
    %c0_33 = arith.constant 0 : index
    %56 = vector.load %arg7[%c0_32, %c0_33] : memref<50x128xf32, #tpu.memory_space<vmem>>, vector<50x128xf32>
    %57 = arith.mulf %55, %56 : vector<50x128xf32>
    %cst_34 = arith.constant dense<0.000000e+00> : vector<50xf32>
    %58 = vector.multi_reduction <add>, %57, %cst_34 [1] : vector<50x128xf32> to vector<50xf32>
    %59 = vector.shape_cast %58 : vector<50xf32> to vector<50x1xf32>
    %c0_35 = arith.constant 0 : index
    %c0_36 = arith.constant 0 : index
    %60 = vector.load %arg8[%c0_35, %c0_36] : memref<2x50xf32, #tpu.memory_space<vmem>>, vector<2x50xf32>
    %cst_37 = arith.constant dense<0.000000e+00> : vector<2x1xf32>
    %61 = tpu.matmul %60, %59, %cst_37 {dimension_numbers = #tpu.dot_dimension_numbers<[1], [0], [0], [1], [0, 0, 1, 1], [], []>} : vector<2x50xf32>, vector<50x1xf32>, vector<2x1xf32> -> vector<2x1xf32>
    %c0_38 = arith.constant 0 : index
    %c0_39 = arith.constant 0 : index
    %62 = vector.load %arg9[%c0_38, %c0_39] : memref<1x1xf32, #tpu.memory_space<vmem>>, vector<1x1xf32>
    %63 = vector.broadcast %62 : vector<1x1xf32> to vector<2x1xf32>
    %64 = arith.addf %61, %63 : vector<2x1xf32>
    %cst_40 = arith.constant 0.000000e+00 : f32
    %65 = vector.broadcast %cst_40 : f32 to vector<2x1xf32>
    %66 = arith.subf %65, %64 : vector<2x1xf32>
    %67 = math.exp %66 : vector<2x1xf32>
    %cst_41 = arith.constant 1.000000e+00 : f32
    %68 = vector.broadcast %cst_41 : f32 to vector<2x1xf32>
    %69 = arith.addf %68, %67 : vector<2x1xf32>
    %cst_42 = arith.constant 1.000000e+00 : f32
    %70 = vector.broadcast %cst_42 : f32 to vector<2x1xf32>
    %71 = arith.divf %70, %69 : vector<2x1xf32>
    %c0_43 = arith.constant 0 : index
    %c0_44 = arith.constant 0 : index
    %72 = vector.load %arg10[%c0_43, %c0_44] : memref<2x1xf32, #tpu.memory_space<vmem>>, vector<2x1xf32>
    tpu.vector_store %arg10[%c0_43, %c0_44], %71 {strides = array<i32>} : memref<2x1xf32, #tpu.memory_space<vmem>>, vector<2x1xf32>,
    return
  }
  func.func @transform_0(%arg0: i32) -> (i32, i32) {
    %c0_i32 = arith.constant 0 : i32
    %c0_i32_0 = arith.constant 0 : i32
    %c0_i32_1 = arith.constant 0 : i32
    return %c0_i32, %c0_i32_0 : i32, i32
  }
  func.func @transform_1(%arg0: i32) -> (i32, i32, i32) {
    %c0_i32 = arith.constant 0 : i32
    %c0_i32_0 = arith.constant 0 : i32
    %c0_i32_1 = arith.constant 0 : i32
    %c0_i32_2 = arith.constant 0 : i32
    return %c0_i32, %c0_i32_0, %c0_i32_1 : i32, i32, i32
  }
  func.func @transform_2(%arg0: i32) -> (i32, i32) {
    %c0_i32 = arith.constant 0 : i32
    %c0_i32_0 = arith.constant 0 : i32
    %c0_i32_1 = arith.constant 0 : i32
    return %c0_i32, %c0_i32_0 : i32, i32
  }
  func.func @transform_3(%arg0: i32) -> (i32, i32) {
    %c0_i32 = arith.constant 0 : i32
    %c0_i32_0 = arith.constant 0 : i32
    %c0_i32_1 = arith.constant 0 : i32
    return %c0_i32, %c0_i32_0 : i32, i32
  }
  func.func @transform_4(%arg0: i32) -> (i32, i32) {
    %c0_i32 = arith.constant 0 : i32
    %c0_i32_0 = arith.constant 0 : i32
    %c0_i32_1 = arith.constant 0 : i32
    return %c0_i32, %c0_i32_0 : i32, i32
  }
  func.func @transform_5(%arg0: i32) -> (i32, i32) {
    %c0_i32 = arith.constant 0 : i32
    %c0_i32_0 = arith.constant 0 : i32
    %c0_i32_1 = arith.constant 0 : i32
    return %c0_i32, %c0_i32_0 : i32, i32
  }
  func.func @transform_6(%arg0: i32) -> (i32, i32) {
    %c0_i32 = arith.constant 0 : i32
    %c0_i32_0 = arith.constant 0 : i32
    %c0_i32_1 = arith.constant 0 : i32
    return %c0_i32, %c0_i32_0 : i32, i32
  }
  func.func @transform_7(%arg0: i32) -> (i32, i32) {
    %c0_i32 = arith.constant 0 : i32
    %c0_i32_0 = arith.constant 0 : i32
    %c0_i32_1 = arith.constant 0 : i32
    return %c0_i32, %c0_i32_0 : i32, i32
  }
  func.func @transform_8(%arg0: i32) -> (i32, i32) {
    %c0_i32 = arith.constant 0 : i32
    %c0_i32_0 = arith.constant 0 : i32
    %c0_i32_1 = arith.constant 0 : i32
    return %c0_i32, %c0_i32_0 : i32, i32
  }
  func.func @transform_9(%arg0: i32) -> (i32, i32) {
    %c0_i32 = arith.constant 0 : i32
    %c0_i32_0 = arith.constant 0 : i32
    %c0_i32_1 = arith.constant 0 : i32
    return %c0_i32, %c0_i32_0 : i32, i32
  }
}

</mosaic_0001>

<bundles_post_ra>
// kernel: discriminator_forward.3
= control target key start
LH: loop header
LB: loop body
LE: loop exit
PB: predicated region body
PF: predicated region fallthrough
CT: control target
= control target key end

     0   :  { %vm304_vm0 = vsmask.f32 7424  ;;  %vm2099_vm1 = vcmask 1046528   ;;  %s4687_s1 = inlined_call_operand.vmem [shape: bf16[4,128,128], index: 1, kind: input, shape index: {}]   ;;  %s4688_s0 = inlined_call_operand.vmem [shape: bf16[600,128], index: 0, kind: input, shape index: {}]   ;;  %s4689_s2 = inlined_call_operand.vmem [shape: f32[1,128], index: 2, kind: input, shape index: {}]   ;;  %s4690_s3 = inlined_call_operand.vmem [shape: bf16[578,128], index: 3, kind: output, shape index: {}]  }
   0x1   :  { %v3481_v0 = vld [vmem:[%s4687_s1 + $0x78] sm:$0xff]  ;;  %v3480_v4 = vld [vmem:[%s4687_s1 + $0x70] sm:$0xff]  ;;  %v3479_v8 = vld [vmem:[%s4687_s1 + $0x68] sm:$0xff] }
   0x2   :  { %v3473_v1 = vld [vmem:[%s4687_s1 + $0x38] sm:$0xff]  ;;  %685 = vmatpush.bf16.msra.mxu0 %v3481_v0  ;;  %v3472_v5 = vld [vmem:[%s4687_s1 + $0x30] sm:$0xff]  ;;  %v3471_v9 = vld [vmem:[%s4687_s1 + $0x28] sm:$0xff] }
   0x3   :  { %v3524_v2 = vld [vmem:[%s4687_s1 + $0xb8] sm:$0xff]  ;;  %966 = vmatpush.bf16.msra.mxu1 %v3473_v1  ;;  %v3523_v6 = vld [vmem:[%s4687_s1 + $0xb0] sm:$0xff]  ;;  %v3522_v10 = vld [vmem:[%s4687_s1 + $0xa8] sm:$0xff] }
   0x4   :  { %v3532_v3 = vld [vmem:[%s4687_s1 + $0xf8] sm:$0xff]  ;;  %1812 = vmatpush.bf16.msra.mxu2 %v3524_v2  ;;  %v3531_v7 = vld [vmem:[%s4687_s1 + $0xf0] sm:$0xff]  ;;  %v3530_v11 = vld [vmem:[%s4687_s1 + $0xe8] sm:$0xff] }
   0x5   :  { %2258 = vmatpush.bf16.msra.mxu3 %v3532_v3  ;;  %v3478_v12 = vld [vmem:[%s4687_s1 + $0x60] sm:$0xff]  ;;  %v3477_v16 = vld [vmem:[%s4687_s1 + $0x58] sm:$0xff]  ;;  %v3717_v21 = vld [vmem:[%s4688_s0 + $0x8] sm:$0xff]  }
   0x6   :  { %686 = vmatpush.bf16.msra.mxu0 %v3480_v4  ;;  %v3470_v13 = vld [vmem:[%s4687_s1 + $0x20] sm:$0xff]  ;;  %v3469_v17 = vld [vmem:[%s4687_s1 + $0x18] sm:$0xff]  ;;  %v3476_v22 = vld [vmem:[%s4687_s1 + $0x50] sm:$0xff]  ;;  %v1435_v29 = vshll.u32 %v3717_v21, 16  ;;  %v1433_v39 = vshrl.u32 %v3717_v21, 16 }
   0x7   :  { %967 = vmatpush.bf16.msra.mxu1 %v3472_v5  ;;  %v3521_v14 = vld [vmem:[%s4687_s1 + $0xa0] sm:$0xff]  ;;  %v3520_v19 = vld [vmem:[%s4687_s1 + $0x98] sm:$0xff]  ;;  %v3468_v23 = vld [vmem:[%s4687_s1 + $0x10] sm:$0xff] }
   0x8   :  { %1813 = vmatpush.bf16.msra.mxu2 %v3523_v6  ;;  %v3529_v15 = vld [vmem:[%s4687_s1 + $0xe0] sm:$0xff]  ;;  %v3528_v20 = vld [vmem:[%s4687_s1 + $0xd8] sm:$0xff]  ;;  %v3854_v24 = vld [vmem:[%s4688_s0 + $0x8] sm:$0xff]  ;;  %v1437_v40 = vrot.slane %v1435_v29, 1 }
   0x9   :  { %2259 = vmatpush.bf16.msra.mxu3 %v3531_v7  ;;  %v3430_v18 = vld [vmem:[%s4688_s0] sm:$0xff]  ;;  %v3519_v26 = vld [vmem:[%s4687_s1 + $0x90] sm:$0xff]  ;;  %v3718_v30 = vld [vmem:[%s4688_s0 + $0x8] sm:$0xf0]  ;;  %v313_v36 = vshll.u32 %v3854_v24, 16  ;;  %v317_v58 = vshrl.u32 %v3854_v24, 16 }
   0xa   :  { %687 = vmatpush.bf16.msra.mxu0 %v3479_v8  ;;  %v308_v25 = vshll.u32 %v3430_v18, 16  ;;  %v3527_v27 = vld [vmem:[%s4687_s1 + $0xd0] sm:$0xff]  ;;  %v3719_v31 = vld [vmem:[%s4688_s0 + $0x8] sm:$0xe]  ;;  %v306_v34 = vshrl.u32 %v3430_v18, 16  ;;  %v3474_v43 = vld [vmem:[%s4687_s1 + $0x40] sm:$0xff]  ;;  %v1438_v49 = vor.u32 %v1437_v40, %v1433_v39 }
   0xb   :  { %968 = vmatpush.bf16.msra.mxu1 %v3471_v9  ;;  %v3482_v28 = vld [vmem:[%s4688_s0 + $0x10] sm:$0xff]  ;;  %v3475_v32 = vld [vmem:[%s4687_s1 + $0x48] sm:$0xff]  ;;  %v3720_v42 = vor.u32 %v3719_v31, %v3718_v30  ;;  %v3466_v44 = vld [vmem:[%s4687_s1] sm:$0xff]  ;;  %v315_v46 = vrot.slane %v313_v36, 1 }
   0xc   :  { %1814 = vmatpush.bf16.msra.mxu2 %v3522_v10  ;;  %v3467_v33 = vld [vmem:[%s4687_s1 + $0x8] sm:$0xff]  ;;  %v310_v35 = vrot.slane %v308_v25, 1  ;;  %v1440_v41 = vshll.u32 %v3482_v28, 16  ;;  %v3517_v47 = vld [vmem:[%s4687_s1 + $0x80] sm:$0xff]  ;;  %v2101_v52 = vrot.slane %v3482_v28, 1  ;;  %v3432_v56 = vld [vmem:[%s4688_s0 + $0x10] sm:$0xff] }
   0xd   :  { %2260 = vmatpush.bf16.msra.mxu3 %v3530_v11  ;;  %v3518_v37 = vld [vmem:[%s4687_s1 + $0x88] sm:$0xff]  ;;  %v3525_v48 = vld [vmem:[%s4687_s1 + $0xc0] sm:$0xff]  ;;  %v2100_v51 = vrot.slane %v3720_v42, 1  ;;  %v3483_v57 = vld [vmem:[%s4688_s0 + $0x18] sm:$0xff]  ;;  %v321_v59 = vshll.u32 %v3432_v56, 16  ;;  %v1444_v60 = vshrl.u32 %v3482_v28, 16  ;;  %v319_v62 = vor.u32 %v317_v58, %v315_v46 }
   0xe   :  { %688 = vmatpush.bf16.msra.mxu0 %v3478_v12  ;;  %v3526_v38 = vld [vmem:[%s4687_s1 + $0xc8] sm:$0xff]  ;;  %v311_v45 = vor.u32 %v310_v35, %v306_v34  ;;  %v1442_v50 = vrot.slane %v1440_v41, 1  ;;  %v1448_v61 = vshll.u32 %v3483_v57, 16  ;;  %v2103_v2 = vrot.slane %v3483_v57, 1  ;;  %v3433_v6 = vld [vmem:[%s4688_s0 + $0x18] sm:$0xff]  ;;  %v3484_v7 = vld [vmem:[%s4688_s0 + $0x20] sm:$0xff] }
   0xf   :  { %969 = vmatpush.bf16.msra.mxu1 %v3470_v13  ;;  %v2102_v55 = vsel %vm2099_vm1, %v2100_v51, %v2101_v52  ;;  %v323_v63 = vrot.slane %v321_v59, 1  ;;  %v325_v8 = vshrl.u32 %v3432_v56, 16  ;;  %v329_v9 = vshll.u32 %v3433_v6, 16  ;;  %v3485_v21 = vld [vmem:[%s4688_s0 + $0x28] sm:$0xff]  ;;  %v3486_v35 = vld [vmem:[%s4688_s0 + $0x30] sm:$0xff] }
  0x10   :  { %1815 = vmatpush.bf16.msra.mxu2 %v3521_v14  ;;  %v316_v53 = vsel %vm304_vm0, %v311_v45, %v315_v46  ;;  %v1443_v54 = vsel %vm304_vm0, %v1438_v49, %v1442_v50  ;;  %v1446_v0 = vor.u32 %v1444_v60, %v1442_v50  ;;  %v1450_v1 = vrot.slane %v1448_v61, 1  ;;  %v3435_v34 = vld [vmem:[%s4688_s0 + $0x28] sm:$0xff]  ;;  %v3487_v49 = vld [vmem:[%s4688_s0 + $0x38] sm:$0xff] }
  0x11   :  { %2261 = vmatpush.bf16.msra.mxu3 %v3529_v15  ;;  %v324_v3 = vsel %vm304_vm0, %v319_v62, %v323_v63  ;;  %v2104_v5 = vsel %vm2099_vm1, %v2101_v52, %v2103_v2  ;;  %v1452_v10 = vshrl.u32 %v3483_v57, 16  ;;  %v1456_v11 = vshll.u32 %v3484_v7, 16  ;;  %v3437_v62 = vld [vmem:[%s4688_s0 + $0x38] sm:$0xff] }
  0x12   :  { %689 = vmatpush.bf16.msra.mxu0 %v3477_v16  ;;  %v1451_v4 = vsel %vm304_vm0, %v1446_v0, %v1450_v1  ;;  %v327_v12 = vor.u32 %v325_v8, %v323_v63  ;;  %v331_v13 = vrot.slane %v329_v9, 1  ;;  %v2105_v16 = vrot.slane %v3484_v7, 1  ;;  %v3488_v63 = vld [vmem:[%s4688_s0 + $0x40] sm:$0xff] }
  0x13   :  { %970 = vmatpush.bf16.msra.mxu1 %v3469_v17  ;;  %v1454_v14 = vor.u32 %v1452_v10, %v1450_v1  ;;  %v1458_v15 = vrot.slane %v1456_v11, 1  ;;  %v1464_v25 = vshll.u32 %v3485_v21, 16  ;;  %v2107_v30 = vrot.slane %v3485_v21, 1 }
  0x14   :  { %1816 = vmatpush.bf16.msra.mxu2 %v3520_v19  ;;  %v332_v17 = vsel %vm304_vm0, %v327_v12, %v331_v13  ;;  %v2106_v19 = vsel %vm2099_vm1, %v2103_v2, %v2105_v16  ;;  %v1472_v39 = vshll.u32 %v3486_v35, 16  ;;  %v349_v50 = vshrl.u32 %v3435_v34, 16  ;;  %v3438_v12 = vld [vmem:[%s4688_s0 + $0x40] sm:$0xff] }
  0x15   :  { %2262 = vmatpush.bf16.msra.mxu3 %v3528_v20  ;;  %v3434_v20 = vld [vmem:[%s4688_s0 + $0x20] sm:$0xff]  ;;  %v1466_v29 = vrot.slane %v1464_v25, 1  ;;  %v1476_v52 = vshrl.u32 %v3486_v35, 16  ;;  %v2111_v58 = vrot.slane %v3487_v49, 1  ;;  %v361_v1 = vshll.u32 %v3437_v62, 16 }
  0x16   :  { %690 = vmatpush.bf16.msra.mxu0 %v3476_v22  ;;  %v333_v22 = vshrl.u32 %v3433_v6, 16  ;;  %v341_v36 = vshrl.u32 %v3434_v20, 16  ;;  %v1484_v2 = vshrl.u32 %v3487_v49, 16  ;;  %v2113_v8 = vrot.slane %v3488_v63, 1 }
  0x17   :  { %971 = vmatpush.bf16.msra.mxu1 %v3468_v23  ;;  %v337_v23 = vshll.u32 %v3434_v20, 16 }
  0x18   :  { %1817 = vmatpush.bf16.msra.mxu2 %v3519_v26  ;;  %v335_v26 = vor.u32 %v333_v22, %v331_v13  ;;  %v2114_v11 = vsel %vm2099_vm1, %v2111_v58, %v2113_v8  ;;  %v3489_v13 = vld [vmem:[%s4688_s0 + $0x48] sm:$0xff] }
  0x19   :  { %2263 = vmatpush.bf16.msra.mxu3 %v3527_v27  ;;  %v339_v27 = vrot.slane %v337_v23, 1  ;;  %v2115_v22 = vrot.slane %v3489_v13, 1 }
  0x1a   :  { %691 = vmatpush.bf16.msra.mxu0 %v3475_v32 }
  0x1b   :  { %972 = vmatpush.bf16.msra.mxu1 %v3467_v33  ;;  %v340_v31 = vsel %vm304_vm0, %v335_v26, %v339_v27  ;;  %v2108_v33 = vsel %vm2099_vm1, %v2105_v16, %v2107_v30  ;;  %v343_v40 = vor.u32 %v341_v36, %v339_v27  ;;  %v1492_v16 = vshrl.u32 %v3488_v63, 16  ;;  %v3439_v26 = vld [vmem:[%s4688_s0 + $0x48] sm:$0xff]  ;;  %v3490_v27 = vld [vmem:[%s4688_s0 + $0x50] sm:$0xff] }
  0x1c   :  { %1818 = vmatpush.bf16.msra.mxu2 %v3518_v37  ;;  %v345_v37 = vshll.u32 %v3435_v34, 16  ;;  %v2116_v25 = vsel %vm2099_vm1, %v2113_v8, %v2115_v22  ;;  %v2117_v36 = vrot.slane %v3490_v27, 1 }
  0x1d   :  { %2264 = vmatpush.bf16.msra.mxu3 %v3526_v38  ;;  %v1468_v38 = vshrl.u32 %v3485_v21, 16 }
  0x1e   :  { %692 = vmatpush.bf16.msra.mxu0 %v3474_v43  ;;  %v347_v41 = vrot.slane %v345_v37, 1  ;;  %v1474_v43 = vrot.slane %v1472_v39, 1 }
  0x1f   :  { %973 = vmatpush.bf16.msra.mxu1 %v3466_v44  ;;  %v1470_v42 = vor.u32 %v1468_v38, %v1466_v29  ;;  %v2109_v44 = vrot.slane %v3486_v35, 1 }
  0x20   :  { %1819 = vmatpush.bf16.msra.mxu2 %v3517_v47  ;;  %v348_v45 = vsel %vm304_vm0, %v343_v40, %v347_v41 }
  0x21   :  { %2265 = vmatpush.bf16.msra.mxu3 %v3525_v48  ;;  %693 = vmatmul.bf16.vlgmr.msra.gmra.mxu0 %v316_v53  ;;  %v1475_v46 = vsel %vm304_vm0, %v1470_v42, %v1474_v43  ;;  %v2110_v47 = vsel %vm2099_vm1, %v2107_v30, %v2109_v44  ;;  %v3436_v48 = vld [vmem:[%s4688_s0 + $0x30] sm:$0xff]  ;;  %v1480_v53 = vshll.u32 %v3487_v49, 16  ;;  %v2112_v61 = vsel %vm2099_vm1, %v2109_v44, %v2111_v58  ;;  %v3981_v44 = vld [vmem:[%s4688_s0 + $0x58] sm:$0xff] }
  0x22   :  { %974 = vmatmul.bf16.vlgmr.msra.gmra.mxu1 %v3430_v18  ;;  %v1459_v18 = vsel %vm304_vm0, %v1454_v14, %v1458_v15  ;;  %v353_v51 = vshll.u32 %v3436_v48, 16  ;;  %v357_v0 = vshrl.u32 %v3436_v48, 16  ;;  %v365_v14 = vshrl.u32 %v3437_v62, 16 }
  0x23   :  { %1820 = vmatmul.bf16.vlgmr.msra.gmra.mxu2 %v1443_v54  ;;  %v351_v54 = vor.u32 %v349_v50, %v347_v41  ;;  %v1482_v57 = vrot.slane %v1480_v53, 1  ;;  %v1500_v30 = vshrl.u32 %v3489_v13, 16  ;;  %v2118_v41 = vsel %vm2099_vm1, %v2115_v22, %v2117_v36 }
  0x24   :  { %2266 = vmatmul.bf16.vlgmr.msra.gmra.mxu3 %v2102_v55  ;;  %v355_v55 = vrot.slane %v353_v51, 1  ;;  %v381_v50 = vshrl.u32 %v3439_v26, 16  ;;  %v1512_v53 = vshll.u32 %v3981_v44, 16 }
  0x26   :  { %v356_v59 = vsel %vm304_vm0, %v351_v54, %v355_v55 }
  0x31   :  { %698 = vmatmul.bf16.gmra.mxu0 %v324_v3  ;;  %v1488_v3 = vshll.u32 %v3488_v63, 16 }
  0x32   :  { %979 = vmatmul.bf16.gmra.mxu1 %v3854_v24  ;;  %v1460_v24 = vshrl.u32 %v3484_v7, 16 }
  0x33   :  { %1825 = vmatmul.bf16.gmra.mxu2 %v1451_v4  ;;  %v359_v4 = vor.u32 %v357_v0, %v355_v55  ;;  %v1490_v7 = vrot.slane %v1488_v3, 1  ;;  %v3988_v55 = vld [vmem:[%s4689_s2] ss:$0 sm:$0xff] }
  0x34   :  { %2271 = vmatmul.bf16.gmra.mxu3 %v2104_v5  ;;  %v1462_v28 = vor.u32 %v1460_v24, %v1458_v15  ;;  %v363_v5 = vrot.slane %v361_v1, 1  ;;  %v369_v15 = vshll.u32 %v3438_v12, 16 }
  0x36   :  { %v1467_v32 = vsel %vm304_vm0, %v1462_v28, %v1466_v29  ;;  %v364_v9 = vsel %vm304_vm0, %v359_v4, %v363_v5  ;;  %v373_v28 = vshrl.u32 %v3438_v12, 16  ;;  %v377_v29 = vshll.u32 %v3439_v26, 16 }
  0x41   :  { %703 = vmatmul.bf16.gmra.mxu0 %v332_v17  ;;  %v1496_v17 = vshll.u32 %v3489_v13, 16 }
  0x42   :  { %984 = vmatmul.bf16.gmra.mxu1 %v3432_v56  ;;  %v1478_v56 = vor.u32 %v1476_v52, %v1474_v43  ;;  %v3976_v43 = vld [vmem:[%s4688_s0 + $0x50] sm:$0xff]  ;;  %v1508_v52 = vshrl.u32 %v3490_v27, 16 }
  0x43   :  { %1830 = vmatmul.bf16.gmra.mxu2 %v1459_v18  ;;  %v367_v18 = vor.u32 %v365_v14, %v363_v5  ;;  %v1498_v21 = vrot.slane %v1496_v17, 1  ;;  %v385_v51 = vshll.u32 %v3976_v43, 16 }
  0x44   :  { %2276 = vmatmul.bf16.gmra.mxu3 %v2106_v19  ;;  %v1483_v60 = vsel %vm304_vm0, %v1478_v56, %v1482_v57  ;;  %v371_v19 = vrot.slane %v369_v15, 1 }
  0x46   :  { %v372_v23 = vsel %vm304_vm0, %v367_v18, %v371_v19 }
  0x51   :  { %708 = vmatmul.bf16.gmra.mxu0 %v340_v31  ;;  %v1504_v31 = vshll.u32 %v3490_v27, 16 }
  0x52   :  { %989 = vmatmul.bf16.gmra.mxu1 %v3433_v6  ;;  %v1486_v6 = vor.u32 %v1484_v2, %v1482_v57  ;;  %v387_v57 = vrot.slane %v385_v51, 1 }
  0x53   :  { %1835 = vmatmul.bf16.gmra.mxu2 %v1467_v32  ;;  %v375_v32 = vor.u32 %v373_v28, %v371_v19  ;;  %v1506_v35 = vrot.slane %v1504_v31, 1 }
  0x54   :  { %2281 = vmatmul.bf16.gmra.mxu3 %v2108_v33  ;;  %v1491_v10 = vsel %vm304_vm0, %v1486_v6, %v1490_v7  ;;  %v379_v33 = vrot.slane %v377_v29, 1 }
  0x55   :  { %v1510_v58 = vor.u32 %v1508_v52, %v1506_v35 }
  0x56   :  { %v380_v39 = vsel %vm304_vm0, %v375_v32, %v379_v33  ;;  %v383_v56 = vor.u32 %v381_v50, %v379_v33 }
  0x58   :  { %v388_v4 = vsel %vm304_vm0, %v383_v56, %v387_v57 }
  0x61   :  { %713 = vmatmul.bf16.gmra.mxu0 %v348_v45 }
  0x62   :  { %994 = vmatmul.bf16.gmra.mxu1 %v3434_v20  ;;  %v1494_v20 = vor.u32 %v1492_v16, %v1490_v7  ;;  %v389_v16 = vshrl.u32 %v3976_v43, 16 }
  0x63   :  { %1840 = vmatmul.bf16.gmra.mxu2 %v1475_v46 }
  0x64   :  { %2286 = vmatmul.bf16.gmra.mxu3 %v2110_v47  ;;  %v1499_v24 = vsel %vm304_vm0, %v1494_v20, %v1498_v21  ;;  %v391_v27 = vor.u32 %v389_v16, %v387_v57 }
  0x71   :  { %718 = vmatmul.bf16.gmra.mxu0 %v356_v59  ;;  %v1514_v59 = vrot.slane %v1512_v53, 1 }
  0x72   :  { %999 = vmatmul.bf16.gmra.mxu1 %v3435_v34  ;;  %v1502_v34 = vor.u32 %v1500_v30, %v1498_v21 }
  0x73   :  { %1845 = vmatmul.bf16.gmra.mxu2 %v1483_v60  ;;  %v2119_v60 = vrot.slane %v3981_v44, 1  ;;  %v1515_v5 = vsel %vm304_vm0, %v1510_v58, %v1514_v59 }
  0x74   :  { %2291 = vmatmul.bf16.gmra.mxu3 %v2112_v61  ;;  %v1507_v40 = vsel %vm304_vm0, %v1502_v34, %v1506_v35 }
  0x75   :  { %v2120_v6 = vsel %vm2099_vm1, %v2117_v36, %v2119_v60 }
  0x81   :  { %723 = vmatmul.bf16.gmra.mxu0 %v364_v9 }
  0x82   :  { %1004 = vmatmul.bf16.gmra.mxu1 %v3436_v48 }
  0x83   :  { %1850 = vmatmul.bf16.gmra.mxu2 %v1491_v10 }
  0x84   :  { %2296 = vmatmul.bf16.gmra.mxu3 %v2114_v11  ;;  %v3999_v11 = vld [vmem:[%s4688_s0 + $0x58] sm:$0xff] }
  0x85   :  { %v393_v22 = vshll.u32 %v3999_v11, 16  ;;  %v397_v51 = vshrl.u32 %v3999_v11, 16 }
  0x87   :  { %v395_v28 = vrot.slane %v393_v22, 1 }
  0x91   :  { %728 = vmatmul.bf16.gmra.mxu0 %v372_v23 }
  0x92   :  { %1009 = vmatmul.bf16.gmra.mxu1 %v3437_v62 }
  0x93   :  { %1855 = vmatmul.bf16.gmra.mxu2 %v1499_v24  ;;  %v1516_v24 = vshrl.u32 %v3981_v44, 16 }
  0x94   :  { %2301 = vmatmul.bf16.gmra.mxu3 %v2116_v25 }
  0x95   :  { %v1518_v29 = vor.u32 %v1516_v24, %v1514_v59 }
  0x9e   :  { %v694_v37 = vpop.f32.mrf.mxu0 }
  0x9f   :  { %v975_v38 = vpop.f32.mrf.mxu1 }
  0xa0   :  { %v976_v42 = vadd.f32 %v975_v38, %v694_v37 }
  0xa1   :  { %733 = vmatmul.bf16.gmra.mxu0 %v380_v39  ;;  %v396_v39 = vsel %vm304_vm0, %v391_v27, %v395_v28 }
  0xa2   :  { %1014 = vmatmul.bf16.gmra.mxu1 %v3438_v12  ;;  %v4004_v12 = vld [vmem:[%s4688_s0 + $0x60] sm:$0xff] }
  0xa3   :  { %1860 = vmatmul.bf16.gmra.mxu2 %v1507_v40  ;;  %v1520_v25 = vshll.u32 %v4004_v12, 16  ;;  %v2121_v31 = vrot.slane %v4004_v12, 1 }
  0xa4   :  { %2306 = vmatmul.bf16.gmra.mxu3 %v2118_v41 }
  0xa5   :  { %v1522_v30 = vrot.slane %v1520_v25, 1  ;;  %v2122_v41 = vsel %vm2099_vm1, %v2119_v60, %v2121_v31  ;;  %v1524_v60 = vshrl.u32 %v4004_v12, 16 }
  0xa6   :  { %v1821_v45 = vpop.f32.mrf.mxu2  ;;  %v696_v48 = vpop.f32.mrf.mxu0 }
  0xa7   :  { %v2267_v46 = vpop.f32.mrf.mxu3  ;;  %v2005_v47 = vadd.f32 %v1821_v45, %v976_v42  ;;  %v977_v49 = vpop.f32.mrf.mxu1  ;;  %v1523_v40 = vsel %vm304_vm0, %v1518_v29, %v1522_v30 }
  0xa8   :  { %v978_v61 = vadd.f32 %v977_v49, %v696_v48  ;;  %v4028_v48 = vld [vmem:[%s4688_s0 + $0x68] sm:$0xff] }
  0xa9   :  { %v2451_v54 = vadd.f32 %v2267_v46, %v2005_v47  ;;  %v4023_v47 = vld [vmem:[%s4688_s0 + $0x60] sm:$0xff] }
  0xaa   :  { %v401_v58 = vshll.u32 %v4023_v47, 16 }
  0xab   :  { %v2528_v0 = vadd.f32 %v3988_v55, %v2451_v54 }
  0xad   :  { %v2674_v8 = vmul.f32 0.2, %v2528_v0  ;;  %vm2601_vm2 = vcmp.gt.f32.partialorder %v2528_v0, 0.0 }
  0xae   :  { %v1823_v62 = vpop.f32.mrf.mxu2  ;;  %v699_v2 = vpop.f32.mrf.mxu0 }
  0xaf   :  { %v2269_v63 = vpop.f32.mrf.mxu3  ;;  %v2006_v1 = vadd.f32 %v1823_v62, %v978_v61  ;;  %v980_v3 = vpop.f32.mrf.mxu1  ;;  %v2747_v17 = vsel %vm2601_vm2, %v2528_v0, %v2674_v8  ;;  %v1528_v61 = vshll.u32 %v4028_v48, 16  ;;  %v403_v0 = vrot.slane %v401_v58, 1 }
  0xb0   :  { %v981_v10 = vadd.f32 %v980_v3, %v699_v2  ;;  %v2123_v3 = vrot.slane %v4028_v48, 1 }
  0xb1   :  { %v2452_v7 = vadd.f32 %v2269_v63, %v2006_v1  ;;  %738 = vmatmul.bf16.gmra.mxu0 %v388_v4  ;;  %v399_v63 = vor.u32 %v397_v51, %v395_v28  ;;  %v1526_v1 = vor.u32 %v1524_v60, %v1522_v30  ;;  %v1530_v2 = vrot.slane %v1528_v61, 1 }
  0xb2   :  { %1019 = vmatmul.bf16.gmra.mxu1 %v3439_v26 }
  0xb3   :  { %v2529_v9 = vadd.f32 %v3988_v55, %v2452_v7  ;;  %1865 = vmatmul.bf16.gmra.mxu2 %v1515_v5  ;;  %v404_v12 = vsel %vm304_vm0, %v399_v63, %v403_v0 }
  0xb4   :  { %2311 = vmatmul.bf16.gmra.mxu3 %v2120_v6 }
  0xb5   :  { %vm2602_vm3 = vcmp.gt.f32.partialorder %v2529_v9, 0.0  ;;  %v2675_v13 = vmul.f32 0.2, %v2529_v9 }
  0xb6   :  { %v1826_v14 = vpop.f32.mrf.mxu2  ;;  %v701_v20 = vpop.f32.mrf.mxu0 }
  0xb7   :  { %v2272_v15 = vpop.f32.mrf.mxu3  ;;  %v2748_v18 = vsel %vm2602_vm3, %v2529_v9, %v2675_v13  ;;  %v2007_v19 = vadd.f32 %v1826_v14, %v981_v10  ;;  %v982_v21 = vpop.f32.mrf.mxu1  ;;  %v1531_v13 = vsel %vm304_vm0, %v1526_v1, %v1530_v2  ;;  %v2124_v14 = vsel %vm2099_vm1, %v2121_v31, %v2123_v3 }
  0xb8   :  { %v3540_v23 = vpack.c.bf16 %v2748_v18, %v2747_v17  ;;  %v983_v32 = vadd.f32 %v982_v21, %v701_v20  ;;  %v4052_v20 = vld [vmem:[%s4688_s0 + $0x70] sm:$0xff]  ;;  %v1532_v31 = vshrl.u32 %v4028_v48, 16 }
  0xb9   :  { %v2453_v26 = vadd.f32 %v2272_v15, %v2007_v19  ;;  %v4047_v19 = vld [vmem:[%s4688_s0 + $0x68] sm:$0xff] }
  0xba   :  { %3541 = vst [vmem:[%s4690_s3] sm:$0xff] %v3540_v23   ;;  %v405_v23 = vshrl.u32 %v4023_v47, 16  ;;  %v409_v29 = vshll.u32 %v4047_v19, 16 }
  0xbb   :  { %v2530_v35 = vadd.f32 %v3988_v55, %v2453_v26 }
  0xbd   :  { %v2676_v44 = vmul.f32 0.2, %v2530_v35  ;;  %vm2603_vm4 = vcmp.gt.f32.partialorder %v2530_v35, 0.0 }
  0xbe   :  { %v1828_v33 = vpop.f32.mrf.mxu2  ;;  %v704_v37 = vpop.f32.mrf.mxu0 }
  0xbf   :  { %v2274_v34 = vpop.f32.mrf.mxu3  ;;  %v2008_v36 = vadd.f32 %v1828_v33, %v983_v32  ;;  %v985_v38 = vpop.f32.mrf.mxu1  ;;  %v2749_v52 = vsel %vm2603_vm4, %v2530_v35, %v2676_v44  ;;  %v1536_v32 = vshll.u32 %v4052_v20, 16  ;;  %v411_v35 = vrot.slane %v409_v29, 1 }
  0xc0   :  { %v986_v46 = vadd.f32 %v985_v38, %v704_v37  ;;  %v2125_v38 = vrot.slane %v4052_v20, 1 }
  0xc1   :  { %v2454_v42 = vadd.f32 %v2274_v34, %v2008_v36  ;;  %743 = vmatmul.bf16.gmra.mxu0 %v396_v39  ;;  %v407_v34 = vor.u32 %v405_v23, %v403_v0  ;;  %v1534_v36 = vor.u32 %v1532_v31, %v1530_v2  ;;  %v1538_v37 = vrot.slane %v1536_v32, 1 }
  0xc2   :  { %1024 = vmatmul.bf16.gmra.mxu1 %v3976_v43 }
  0xc3   :  { %v2531_v45 = vadd.f32 %v3988_v55, %v2454_v42  ;;  %1870 = vmatmul.bf16.gmra.mxu2 %v1523_v40  ;;  %v412_v48 = vsel %vm304_vm0, %v407_v34, %v411_v35 }
  0xc4   :  { %2316 = vmatmul.bf16.gmra.mxu3 %v2122_v41 }
  0xc5   :  { %vm2604_vm5 = vcmp.gt.f32.partialorder %v2531_v45, 0.0  ;;  %v2677_v49 = vmul.f32 0.2, %v2531_v45 }
  0xc6   :  { %v1831_v43 = vpop.f32.mrf.mxu2  ;;  %v706_v56 = vpop.f32.mrf.mxu0 }
  0xc7   :  { %v2277_v50 = vpop.f32.mrf.mxu3  ;;  %v2750_v53 = vsel %vm2604_vm5, %v2531_v45, %v2677_v49  ;;  %v2009_v54 = vadd.f32 %v1831_v43, %v986_v46  ;;  %v987_v57 = vpop.f32.mrf.mxu1  ;;  %v1539_v49 = vsel %vm304_vm0, %v1534_v36, %v1538_v37  ;;  %v2126_v43 = vsel %vm2099_vm1, %v2123_v3, %v2125_v38 }
  0xc8   :  { %v3545_v59 = vpack.c.bf16 %v2750_v53, %v2749_v52  ;;  %v988_v4 = vadd.f32 %v987_v57, %v706_v56  ;;  %v4076_v56 = vld [vmem:[%s4688_s0 + $0x78] sm:$0xff]  ;;  %v1540_v3 = vshrl.u32 %v4052_v20, 16 }
  0xc9   :  { %v2455_v62 = vadd.f32 %v2277_v50, %v2009_v54  ;;  %v4071_v54 = vld [vmem:[%s4688_s0 + $0x70] sm:$0xff] }
  0xca   :  { %3721 = vst [vmem:[%s4690_s3 + $0x8] sm:$0xff] %v3545_v59   ;;  %v413_v59 = vshrl.u32 %v4047_v19, 16  ;;  %v417_v1 = vshll.u32 %v4071_v54, 16 }
  0xcb   :  { %v2532_v7 = vadd.f32 %v3988_v55, %v2455_v62 }
  0xcd   :  { %v2678_v16 = vmul.f32 0.2, %v2532_v7  ;;  %vm2605_vm6 = vcmp.gt.f32.partialorder %v2532_v7, 0.0 }
  0xce   :  { %v1833_v5 = vpop.f32.mrf.mxu2  ;;  %v709_v9 = vpop.f32.mrf.mxu0 }
  0xcf   :  { %v2279_v6 = vpop.f32.mrf.mxu3  ;;  %v2010_v8 = vadd.f32 %v1833_v5, %v988_v4  ;;  %v990_v10 = vpop.f32.mrf.mxu1  ;;  %v2751_v24 = vsel %vm2605_vm6, %v2532_v7, %v2678_v16  ;;  %v1544_v4 = vshll.u32 %v4076_v56, 16  ;;  %v419_v7 = vrot.slane %v417_v1, 1 }
  0xd0   :  { %v991_v18 = vadd.f32 %v990_v10, %v709_v9  ;;  %v2127_v10 = vrot.slane %v4076_v56, 1 }
  0xd1   :  { %v2456_v15 = vadd.f32 %v2279_v6, %v2010_v8  ;;  %748 = vmatmul.bf16.gmra.mxu0 %v404_v12  ;;  %v415_v6 = vor.u32 %v413_v59, %v411_v35  ;;  %v1542_v8 = vor.u32 %v1540_v3, %v1538_v37  ;;  %v1546_v9 = vrot.slane %v1544_v4, 1 }
  0xd2   :  { %1029 = vmatmul.bf16.gmra.mxu1 %v3999_v11 }
  0xd3   :  { %v2533_v17 = vadd.f32 %v3988_v55, %v2456_v15  ;;  %1875 = vmatmul.bf16.gmra.mxu2 %v1531_v13  ;;  %v420_v20 = vsel %vm304_vm0, %v415_v6, %v419_v7 }
  0xd4   :  { %2321 = vmatmul.bf16.gmra.mxu3 %v2124_v14 }
  0xd5   :  { %vm2606_vm7 = vcmp.gt.f32.partialorder %v2533_v17, 0.0  ;;  %v2679_v21 = vmul.f32 0.2, %v2533_v17 }
  0xd6   :  { %v1836_v11 = vpop.f32.mrf.mxu2  ;;  %v711_v27 = vpop.f32.mrf.mxu0 }
  0xd7   :  { %v2282_v22 = vpop.f32.mrf.mxu3  ;;  %v2752_v25 = vsel %vm2606_vm7, %v2533_v17, %v2679_v21  ;;  %v2011_v26 = vadd.f32 %v1836_v11, %v991_v18  ;;  %v992_v28 = vpop.f32.mrf.mxu1  ;;  %v1547_v21 = vsel %vm304_vm0, %v1542_v8, %v1546_v9  ;;  %v2128_v11 = vsel %vm2099_vm1, %v2125_v38, %v2127_v10 }
  0xd8   :  { %v3550_v30 = vpack.c.bf16 %v2752_v25, %v2751_v24  ;;  %v993_v39 = vadd.f32 %v992_v28, %v711_v27  ;;  %v4100_v27 = vld [vmem:[%s4688_s0 + $0x80] sm:$0xff]  ;;  %v1548_v38 = vshrl.u32 %v4076_v56, 16 }
  0xd9   :  { %v2457_v33 = vadd.f32 %v2282_v22, %v2011_v26  ;;  %v4095_v26 = vld [vmem:[%s4688_s0 + $0x78] sm:$0xff] }
  0xda   :  { %3722 = vst [vmem:[%s4690_s3 + $0x10] sm:$0xff] %v3550_v30   ;;  %v421_v30 = vshrl.u32 %v4071_v54, 16  ;;  %v425_v36 = vshll.u32 %v4095_v26, 16 }
  0xdb   :  { %v2534_v42 = vadd.f32 %v3988_v55, %v2457_v33 }
  0xdd   :  { %v2680_v51 = vmul.f32 0.2, %v2534_v42  ;;  %vm2607_vm8 = vcmp.gt.f32.partialorder %v2534_v42, 0.0 }
  0xde   :  { %v1838_v40 = vpop.f32.mrf.mxu2  ;;  %v714_v45 = vpop.f32.mrf.mxu0 }
  0xdf   :  { %v2284_v41 = vpop.f32.mrf.mxu3  ;;  %v2012_v44 = vadd.f32 %v1838_v40, %v993_v39  ;;  %v995_v46 = vpop.f32.mrf.mxu1  ;;  %v2753_v60 = vsel %vm2607_vm8, %v2534_v42, %v2680_v51  ;;  %v1552_v39 = vshll.u32 %v4100_v27, 16  ;;  %v427_v42 = vrot.slane %v425_v36, 1 }
  0xe0   :  { %v996_v53 = vadd.f32 %v995_v46, %v714_v45  ;;  %v2129_v46 = vrot.slane %v4100_v27, 1 }
  0xe1   :  { %v2458_v50 = vadd.f32 %v2284_v41, %v2012_v44  ;;  %753 = vmatmul.bf16.gmra.mxu0 %v412_v48  ;;  %v423_v41 = vor.u32 %v421_v30, %v419_v7  ;;  %v1550_v44 = vor.u32 %v1548_v38, %v1546_v9  ;;  %v1554_v45 = vrot.slane %v1552_v39, 1 }
  0xe2   :  { %1034 = vmatmul.bf16.gmra.mxu1 %v4023_v47 }
  0xe3   :  { %v2535_v52 = vadd.f32 %v3988_v55, %v2458_v50  ;;  %1880 = vmatmul.bf16.gmra.mxu2 %v1539_v49  ;;  %v428_v56 = vsel %vm304_vm0, %v423_v41, %v427_v42 }
  0xe4   :  { %2326 = vmatmul.bf16.gmra.mxu3 %v2126_v43 }
  0xe5   :  { %vm2608_vm9 = vcmp.gt.f32.partialorder %v2535_v52, 0.0  ;;  %v2681_v57 = vmul.f32 0.2, %v2535_v52 }
  0xe6   :  { %v1841_v47 = vpop.f32.mrf.mxu2  ;;  %v716_v63 = vpop.f32.mrf.mxu0 }
  0xe7   :  { %v2287_v58 = vpop.f32.mrf.mxu3  ;;  %v2754_v61 = vsel %vm2608_vm9, %v2535_v52, %v2681_v57  ;;  %v2013_v62 = vadd.f32 %v1841_v47, %v996_v53  ;;  %v997_v0 = vpop.f32.mrf.mxu1  ;;  %v1555_v57 = vsel %vm304_vm0, %v1550_v44, %v1554_v45  ;;  %v2130_v47 = vsel %vm2099_vm1, %v2127_v10, %v2129_v46 }
  0xe8   :  { %v3555_v2 = vpack.c.bf16 %v2754_v61, %v2753_v60  ;;  %v998_v12 = vadd.f32 %v997_v0, %v716_v63  ;;  %v4124_v63 = vld [vmem:[%s4688_s0 + $0x88] sm:$0xff]  ;;  %v1556_v10 = vshrl.u32 %v4100_v27, 16 }
  0xe9   :  { %v2459_v5 = vadd.f32 %v2287_v58, %v2013_v62  ;;  %v4119_v62 = vld [vmem:[%s4688_s0 + $0x80] sm:$0xff] }
  0xea   :  { %3723 = vst [vmem:[%s4690_s3 + $0x18] sm:$0xff] %v3555_v2   ;;  %v429_v2 = vshrl.u32 %v4095_v26, 16  ;;  %v433_v8 = vshll.u32 %v4119_v62, 16 }
  0xeb   :  { %v2536_v15 = vadd.f32 %v3988_v55, %v2459_v5 }
  0xed   :  { %v2682_v23 = vmul.f32 0.2, %v2536_v15  ;;  %vm2609_vm10 = vcmp.gt.f32.partialorder %v2536_v15, 0.0 }
  0xee   :  { %v1843_v13 = vpop.f32.mrf.mxu2  ;;  %v719_v17 = vpop.f32.mrf.mxu0 }
  0xef   :  { %v2289_v14 = vpop.f32.mrf.mxu3  ;;  %v2014_v16 = vadd.f32 %v1843_v13, %v998_v12  ;;  %v1000_v18 = vpop.f32.mrf.mxu1  ;;  %v2755_v31 = vsel %vm2609_vm10, %v2536_v15, %v2682_v23  ;;  %v1560_v12 = vshll.u32 %v4124_v63, 16  ;;  %v435_v15 = vrot.slane %v433_v8, 1 }
  0xf0   :  { %v1001_v25 = vadd.f32 %v1000_v18, %v719_v17  ;;  %v2131_v18 = vrot.slane %v4124_v63, 1 }
  0xf1   :  { %v2460_v22 = vadd.f32 %v2289_v14, %v2014_v16  ;;  %758 = vmatmul.bf16.gmra.mxu0 %v420_v20  ;;  %v431_v14 = vor.u32 %v429_v2, %v427_v42  ;;  %v1558_v16 = vor.u32 %v1556_v10, %v1554_v45  ;;  %v1562_v17 = vrot.slane %v1560_v12, 1 }
  0xf2   :  { %1039 = vmatmul.bf16.gmra.mxu1 %v4047_v19 }
  0xf3   :  { %v2537_v24 = vadd.f32 %v3988_v55, %v2460_v22  ;;  %1885 = vmatmul.bf16.gmra.mxu2 %v1547_v21  ;;  %v436_v27 = vsel %vm304_vm0, %v431_v14, %v435_v15 }
  0xf4   :  { %2331 = vmatmul.bf16.gmra.mxu3 %v2128_v11 }
  0xf5   :  { %vm2610_vm11 = vcmp.gt.f32.partialorder %v2537_v24, 0.0  ;;  %v2683_v28 = vmul.f32 0.2, %v2537_v24 }
  0xf6   :  { %v1846_v19 = vpop.f32.mrf.mxu2  ;;  %v721_v34 = vpop.f32.mrf.mxu0 }
  0xf7   :  { %v2292_v29 = vpop.f32.mrf.mxu3  ;;  %v2756_v32 = vsel %vm2610_vm11, %v2537_v24, %v2683_v28  ;;  %v2015_v33 = vadd.f32 %v1846_v19, %v1001_v25  ;;  %v1002_v35 = vpop.f32.mrf.mxu1  ;;  %v1563_v28 = vsel %vm304_vm0, %v1558_v16, %v1562_v17  ;;  %v2132_v19 = vsel %vm2099_vm1, %v2129_v46, %v2131_v18 }
  0xf8   :  { %v3560_v37 = vpack.c.bf16 %v2756_v32, %v2755_v31  ;;  %v1003_v48 = vadd.f32 %v1002_v35, %v721_v34  ;;  %v4148_v34 = vld [vmem:[%s4688_s0 + $0x90] sm:$0xff]  ;;  %v1564_v46 = vshrl.u32 %v4124_v63, 16 }
  0xf9   :  { %v2461_v40 = vadd.f32 %v2292_v29, %v2015_v33  ;;  %v4143_v33 = vld [vmem:[%s4688_s0 + $0x88] sm:$0xff] }
  0xfa   :  { %3724 = vst [vmem:[%s4690_s3 + $0x20] sm:$0xff] %v3560_v37   ;;  %v437_v37 = vshrl.u32 %v4119_v62, 16  ;;  %v441_v44 = vshll.u32 %v4143_v33, 16 }
  0xfb   :  { %v2538_v50 = vadd.f32 %v3988_v55, %v2461_v40 }
  0xfd   :  { %v2684_v59 = vmul.f32 0.2, %v2538_v50  ;;  %vm2611_vm12 = vcmp.gt.f32.partialorder %v2538_v50, 0.0 }
  0xfe   :  { %v1848_v49 = vpop.f32.mrf.mxu2  ;;  %v724_v52 = vpop.f32.mrf.mxu0 }
  0xff   :  { %v2294_v43 = vpop.f32.mrf.mxu3  ;;  %v2016_v51 = vadd.f32 %v1848_v49, %v1003_v48  ;;  %v1005_v53 = vpop.f32.mrf.mxu1  ;;  %v2757_v3 = vsel %vm2611_vm12, %v2538_v50, %v2684_v59  ;;  %v1568_v48 = vshll.u32 %v4148_v34, 16  ;;  %v443_v50 = vrot.slane %v441_v44, 1 }
 0x100   :  { %v1006_v61 = vadd.f32 %v1005_v53, %v724_v52  ;;  %v2133_v53 = vrot.slane %v4148_v34, 1 }
 0x101   :  { %v2462_v58 = vadd.f32 %v2294_v43, %v2016_v51  ;;  %763 = vmatmul.bf16.gmra.mxu0 %v428_v56  ;;  %v439_v43 = vor.u32 %v437_v37, %v435_v15  ;;  %v1566_v51 = vor.u32 %v1564_v46, %v1562_v17  ;;  %v1570_v52 = vrot.slane %v1568_v48, 1 }
 0x102   :  { %1044 = vmatmul.bf16.gmra.mxu1 %v4071_v54 }
 0x103   :  { %v2539_v60 = vadd.f32 %v3988_v55, %v2462_v58  ;;  %1890 = vmatmul.bf16.gmra.mxu2 %v1555_v57  ;;  %v444_v63 = vsel %vm304_vm0, %v439_v43, %v443_v50 }
 0x104   :  { %2336 = vmatmul.bf16.gmra.mxu3 %v2130_v47 }
 0x105   :  { %vm2612_vm13 = vcmp.gt.f32.partialorder %v2539_v60, 0.0  ;;  %v2685_v0 = vmul.f32 0.2, %v2539_v60 }
 0x106   :  { %v1851_v54 = vpop.f32.mrf.mxu2  ;;  %v726_v6 = vpop.f32.mrf.mxu0 }
 0x107   :  { %v2297_v1 = vpop.f32.mrf.mxu3  ;;  %v2758_v4 = vsel %vm2612_vm13, %v2539_v60, %v2685_v0  ;;  %v2017_v5 = vadd.f32 %v1851_v54, %v1006_v61  ;;  %v1007_v7 = vpop.f32.mrf.mxu1  ;;  %v1571_v0 = vsel %vm304_vm0, %v1566_v51, %v1570_v52  ;;  %v2134_v54 = vsel %vm2099_vm1, %v2131_v18, %v2133_v53 }
 0x108   :  { %v3565_v9 = vpack.c.bf16 %v2758_v4, %v2757_v3  ;;  %v1008_v20 = vadd.f32 %v1007_v7, %v726_v6  ;;  %v4172_v6 = vld [vmem:[%s4688_s0 + $0x98] sm:$0xff]  ;;  %v1572_v18 = vshrl.u32 %v4148_v34, 16 }
 0x109   :  { %v2463_v13 = vadd.f32 %v2297_v1, %v2017_v5  ;;  %v4167_v5 = vld [vmem:[%s4688_s0 + $0x90] sm:$0xff] }
 0x10a   :  { %3725 = vst [vmem:[%s4690_s3 + $0x28] sm:$0xff] %v3565_v9   ;;  %v445_v9 = vshrl.u32 %v4143_v33, 16  ;;  %v449_v16 = vshll.u32 %v4167_v5, 16 }
 0x10b   :  { %v2540_v22 = vadd.f32 %v3988_v55, %v2463_v13 }
 0x10d   :  { %v2686_v30 = vmul.f32 0.2, %v2540_v22  ;;  %vm2613_vm14 = vcmp.gt.f32.partialorder %v2540_v22, 0.0 }
 0x10e   :  { %v1853_v21 = vpop.f32.mrf.mxu2  ;;  %v729_v24 = vpop.f32.mrf.mxu0 }
 0x10f   :  { %v2299_v11 = vpop.f32.mrf.mxu3  ;;  %v2018_v23 = vadd.f32 %v1853_v21, %v1008_v20  ;;  %v1010_v25 = vpop.f32.mrf.mxu1  ;;  %v2759_v38 = vsel %vm2613_vm14, %v2540_v22, %v2686_v30  ;;  %v1576_v20 = vshll.u32 %v4172_v6, 16  ;;  %v451_v22 = vrot.slane %v449_v16, 1 }
 0x110   :  { %v1011_v32 = vadd.f32 %v1010_v25, %v729_v24  ;;  %v2135_v25 = vrot.slane %v4172_v6, 1 }
 0x111   :  { %v2464_v29 = vadd.f32 %v2299_v11, %v2018_v23  ;;  %768 = vmatmul.bf16.gmra.mxu0 %v436_v27  ;;  %v447_v11 = vor.u32 %v445_v9, %v443_v50  ;;  %v1574_v23 = vor.u32 %v1572_v18, %v1570_v52  ;;  %v1578_v24 = vrot.slane %v1576_v20, 1 }
 0x112   :  { %1049 = vmatmul.bf16.gmra.mxu1 %v4095_v26 }
 0x113   :  { %v2541_v31 = vadd.f32 %v3988_v55, %v2464_v29  ;;  %1895 = vmatmul.bf16.gmra.mxu2 %v1563_v28  ;;  %v452_v34 = vsel %vm304_vm0, %v447_v11, %v451_v22 }
 0x114   :  { %2341 = vmatmul.bf16.gmra.mxu3 %v2132_v19 }
 0x115   :  { %vm2614_vm15 = vcmp.gt.f32.partialorder %v2541_v31, 0.0  ;;  %v2687_v35 = vmul.f32 0.2, %v2541_v31 }
 0x116   :  { %v1856_v26 = vpop.f32.mrf.mxu2  ;;  %v731_v41 = vpop.f32.mrf.mxu0 }
 0x117   :  { %v2302_v36 = vpop.f32.mrf.mxu3  ;;  %v2760_v39 = vsel %vm2614_vm15, %v2541_v31, %v2687_v35  ;;  %v2019_v40 = vadd.f32 %v1856_v26, %v1011_v32  ;;  %v1012_v42 = vpop.f32.mrf.mxu1  ;;  %v1579_v35 = vsel %vm304_vm0, %v1574_v23, %v1578_v24  ;;  %v2136_v26 = vsel %vm2099_vm1, %v2133_v53, %v2135_v25 }
 0x118   :  { %v3570_v45 = vpack.c.bf16 %v2760_v39, %v2759_v38  ;;  %v1013_v56 = vadd.f32 %v1012_v42, %v731_v41  ;;  %v4196_v41 = vld [vmem:[%s4688_s0 + $0xa0] sm:$0xff]  ;;  %v1580_v53 = vshrl.u32 %v4172_v6, 16 }
 0x119   :  { %v2465_v49 = vadd.f32 %v2302_v36, %v2019_v40  ;;  %v4191_v40 = vld [vmem:[%s4688_s0 + $0x98] sm:$0xff] }
 0x11a   :  { %3726 = vst [vmem:[%s4690_s3 + $0x30] sm:$0xff] %v3570_v45   ;;  %v453_v45 = vshrl.u32 %v4167_v5, 16  ;;  %v457_v51 = vshll.u32 %v4191_v40, 16 }
 0x11b   :  { %v2542_v58 = vadd.f32 %v3988_v55, %v2465_v49 }
 0x11d   :  { %v2688_v2 = vmul.f32 0.2, %v2542_v58  ;;  %vm2615_vm2 = vcmp.gt.f32.partialorder %v2542_v58, 0.0 }
 0x11e   :  { %v1858_v57 = vpop.f32.mrf.mxu2  ;;  %v734_v60 = vpop.f32.mrf.mxu0 }
 0x11f   :  { %v2304_v47 = vpop.f32.mrf.mxu3  ;;  %v2020_v59 = vadd.f32 %v1858_v57, %v1013_v56  ;;  %v1015_v61 = vpop.f32.mrf.mxu1  ;;  %v2761_v10 = vsel %vm2615_vm2, %v2542_v58, %v2688_v2  ;;  %v1584_v56 = vshll.u32 %v4196_v41, 16  ;;  %v459_v58 = vrot.slane %v457_v51, 1 }
 0x120   :  { %v1016_v4 = vadd.f32 %v1015_v61, %v734_v60  ;;  %v2137_v61 = vrot.slane %v4196_v41, 1 }
 0x121   :  { %v2466_v1 = vadd.f32 %v2304_v47, %v2020_v59  ;;  %773 = vmatmul.bf16.gmra.mxu0 %v444_v63  ;;  %v455_v47 = vor.u32 %v453_v45, %v451_v22  ;;  %v1582_v59 = vor.u32 %v1580_v53, %v1578_v24  ;;  %v1586_v60 = vrot.slane %v1584_v56, 1 }
 0x122   :  { %1054 = vmatmul.bf16.gmra.mxu1 %v4119_v62 }
 0x123   :  { %v2543_v3 = vadd.f32 %v3988_v55, %v2466_v1  ;;  %1900 = vmatmul.bf16.gmra.mxu2 %v1571_v0  ;;  %v460_v6 = vsel %vm304_vm0, %v455_v47, %v459_v58 }
 0x124   :  { %2346 = vmatmul.bf16.gmra.mxu3 %v2134_v54 }
 0x125   :  { %vm2616_vm3 = vcmp.gt.f32.partialorder %v2543_v3, 0.0  ;;  %v2689_v7 = vmul.f32 0.2, %v2543_v3 }
 0x126   :  { %v1861_v62 = vpop.f32.mrf.mxu2  ;;  %v736_v14 = vpop.f32.mrf.mxu0 }
 0x127   :  { %v2307_v8 = vpop.f32.mrf.mxu3  ;;  %v2762_v12 = vsel %vm2616_vm3, %v2543_v3, %v2689_v7  ;;  %v2021_v13 = vadd.f32 %v1861_v62, %v1016_v4  ;;  %v1017_v15 = vpop.f32.mrf.mxu1  ;;  %v1587_v7 = vsel %vm304_vm0, %v1582_v59, %v1586_v60  ;;  %v2138_v62 = vsel %vm2099_vm1, %v2135_v25, %v2137_v61 }
 0x128   :  { %v3575_v17 = vpack.c.bf16 %v2762_v12, %v2761_v10  ;;  %v1018_v27 = vadd.f32 %v1017_v15, %v736_v14  ;;  %v4220_v14 = vld [vmem:[%s4688_s0 + $0xa8] sm:$0xff]  ;;  %v1588_v25 = vshrl.u32 %v4196_v41, 16 }
 0x129   :  { %v2467_v21 = vadd.f32 %v2307_v8, %v2021_v13  ;;  %v4215_v13 = vld [vmem:[%s4688_s0 + $0xa0] sm:$0xff] }
 0x12a   :  { %3727 = vst [vmem:[%s4690_s3 + $0x38] sm:$0xff] %v3575_v17   ;;  %v461_v17 = vshrl.u32 %v4191_v40, 16  ;;  %v465_v23 = vshll.u32 %v4215_v13, 16 }
 0x12b   :  { %v2544_v29 = vadd.f32 %v3988_v55, %v2467_v21 }
 0x12d   :  { %v2690_v37 = vmul.f32 0.2, %v2544_v29  ;;  %vm2617_vm4 = vcmp.gt.f32.partialorder %v2544_v29, 0.0 }
 0x12e   :  { %v1863_v28 = vpop.f32.mrf.mxu2  ;;  %v739_v31 = vpop.f32.mrf.mxu0 }
 0x12f   :  { %v2309_v19 = vpop.f32.mrf.mxu3  ;;  %v2022_v30 = vadd.f32 %v1863_v28, %v1018_v27  ;;  %v1020_v32 = vpop.f32.mrf.mxu1  ;;  %v2763_v46 = vsel %vm2617_vm4, %v2544_v29, %v2690_v37  ;;  %v1592_v27 = vshll.u32 %v4220_v14, 16  ;;  %v467_v29 = vrot.slane %v465_v23, 1 }
 0x130   :  { %v1021_v39 = vadd.f32 %v1020_v32, %v739_v31  ;;  %v2139_v32 = vrot.slane %v4220_v14, 1 }
 0x131   :  { %v2468_v36 = vadd.f32 %v2309_v19, %v2022_v30  ;;  %778 = vmatmul.bf16.gmra.mxu0 %v452_v34  ;;  %v463_v19 = vor.u32 %v461_v17, %v459_v58  ;;  %v1590_v30 = vor.u32 %v1588_v25, %v1586_v60  ;;  %v1594_v31 = vrot.slane %v1592_v27, 1 }
 0x132   :  { %1059 = vmatmul.bf16.gmra.mxu1 %v4143_v33 }
 0x133   :  { %v2545_v38 = vadd.f32 %v3988_v55, %v2468_v36  ;;  %1905 = vmatmul.bf16.gmra.mxu2 %v1579_v35  ;;  %v468_v41 = vsel %vm304_vm0, %v463_v19, %v467_v29 }
 0x134   :  { %2351 = vmatmul.bf16.gmra.mxu3 %v2136_v26 }
 0x135   :  { %vm2618_vm5 = vcmp.gt.f32.partialorder %v2545_v38, 0.0  ;;  %v2691_v42 = vmul.f32 0.2, %v2545_v38 }
 0x136   :  { %v1866_v33 = vpop.f32.mrf.mxu2  ;;  %v741_v43 = vpop.f32.mrf.mxu0 }
 0x137   :  { %v2312_v44 = vpop.f32.mrf.mxu3  ;;  %v2764_v48 = vsel %vm2618_vm5, %v2545_v38, %v2691_v42  ;;  %v2023_v49 = vadd.f32 %v1866_v33, %v1021_v39  ;;  %v1022_v50 = vpop.f32.mrf.mxu1  ;;  %v1595_v42 = vsel %vm304_vm0, %v1590_v30, %v1594_v31  ;;  %v2140_v33 = vsel %vm2099_vm1, %v2137_v61, %v2139_v32 }
 0x138   :  { %v3580_v52 = vpack.c.bf16 %v2764_v48, %v2763_v46  ;;  %v1023_v63 = vadd.f32 %v1022_v50, %v741_v43  ;;  %v4244_v43 = vld [vmem:[%s4688_s0 + $0xb0] sm:$0xff]  ;;  %v1596_v61 = vshrl.u32 %v4220_v14, 16 }
 0x139   :  { %v2469_v57 = vadd.f32 %v2312_v44, %v2023_v49  ;;  %v4239_v49 = vld [vmem:[%s4688_s0 + $0xa8] sm:$0xff] }
 0x13a   :  { %3728 = vst [vmem:[%s4690_s3 + $0x40] sm:$0xff] %v3580_v52   ;;  %v469_v52 = vshrl.u32 %v4215_v13, 16  ;;  %v473_v59 = vshll.u32 %v4239_v49, 16 }
 0x13b   :  { %v2546_v1 = vadd.f32 %v3988_v55, %v2469_v57 }
 0x13d   :  { %v2692_v9 = vmul.f32 0.2, %v2546_v1  ;;  %vm2619_vm6 = vcmp.gt.f32.partialorder %v2546_v1, 0.0 }
 0x13e   :  { %v1868_v0 = vpop.f32.mrf.mxu2  ;;  %v744_v3 = vpop.f32.mrf.mxu0 }
 0x13f   :  { %v2314_v54 = vpop.f32.mrf.mxu3  ;;  %v2024_v2 = vadd.f32 %v1868_v0, %v1023_v63  ;;  %v1025_v4 = vpop.f32.mrf.mxu1  ;;  %v2765_v18 = vsel %vm2619_vm6, %v2546_v1, %v2692_v9  ;;  %v1600_v63 = vshll.u32 %v4244_v43, 16  ;;  %v475_v1 = vrot.slane %v473_v59, 1 }
 0x140   :  { %v1026_v12 = vadd.f32 %v1025_v4, %v744_v3  ;;  %v2141_v4 = vrot.slane %v4244_v43, 1 }
 0x141   :  { %v2470_v8 = vadd.f32 %v2314_v54, %v2024_v2  ;;  %783 = vmatmul.bf16.gmra.mxu0 %v460_v6  ;;  %v471_v54 = vor.u32 %v469_v52, %v467_v29  ;;  %v1598_v2 = vor.u32 %v1596_v61, %v1594_v31  ;;  %v1602_v3 = vrot.slane %v1600_v63, 1 }
 0x142   :  { %1064 = vmatmul.bf16.gmra.mxu1 %v4167_v5  ;;  %v1604_v31 = vshrl.u32 %v4244_v43, 16 }
 0x143   :  { %v2547_v10 = vadd.f32 %v3988_v55, %v2470_v8  ;;  %1910 = vmatmul.bf16.gmra.mxu2 %v1587_v7  ;;  %v476_v14 = vsel %vm304_vm0, %v471_v54, %v475_v1 }
 0x144   :  { %2356 = vmatmul.bf16.gmra.mxu3 %v2138_v62 }
 0x145   :  { %vm2620_vm7 = vcmp.gt.f32.partialorder %v2547_v10, 0.0  ;;  %v2693_v15 = vmul.f32 0.2, %v2547_v10 }
 0x146   :  { %v1871_v5 = vpop.f32.mrf.mxu2  ;;  %v746_v11 = vpop.f32.mrf.mxu0 }
 0x147   :  { %v2317_v16 = vpop.f32.mrf.mxu3  ;;  %v2766_v20 = vsel %vm2620_vm7, %v2547_v10, %v2693_v15  ;;  %v2025_v21 = vadd.f32 %v1871_v5, %v1026_v12  ;;  %v1027_v22 = vpop.f32.mrf.mxu1  ;;  %v1603_v15 = vsel %vm304_vm0, %v1598_v2, %v1602_v3  ;;  %v2142_v5 = vsel %vm2099_vm1, %v2139_v32, %v2141_v4 }
 0x148   :  { %v3585_v24 = vpack.c.bf16 %v2766_v20, %v2765_v18  ;;  %v1028_v34 = vadd.f32 %v1027_v22, %v746_v11  ;;  %v4268_v11 = vld [vmem:[%s4688_s0 + $0xb8] sm:$0xff] }
 0x149   :  { %v2471_v28 = vadd.f32 %v2317_v16, %v2025_v21  ;;  %v4263_v21 = vld [vmem:[%s4688_s0 + $0xb0] sm:$0xff]  ;;  %v1608_v32 = vshll.u32 %v4268_v11, 16 }
 0x14a   :  { %3729 = vst [vmem:[%s4690_s3 + $0x48] sm:$0xff] %v3585_v24   ;;  %v481_v29 = vshll.u32 %v4263_v21, 16 }
 0x14b   :  { %v2548_v36 = vadd.f32 %v3988_v55, %v2471_v28 }
 0x14d   :  { %v2694_v45 = vmul.f32 0.2, %v2548_v36  ;;  %vm2621_vm8 = vcmp.gt.f32.partialorder %v2548_v36, 0.0 }
 0x14e   :  { %v1873_v35 = vpop.f32.mrf.mxu2  ;;  %v749_v38 = vpop.f32.mrf.mxu0 }
 0x14f   :  { %v2319_v26 = vpop.f32.mrf.mxu3  ;;  %v2026_v37 = vadd.f32 %v1873_v35, %v1028_v34  ;;  %v1030_v39 = vpop.f32.mrf.mxu1  ;;  %v2767_v53 = vsel %vm2621_vm8, %v2548_v36, %v2694_v45  ;;  %v1606_v36 = vor.u32 %v1604_v31, %v1602_v3 }
 0x150   :  { %v1031_v48 = vadd.f32 %v1030_v39, %v749_v38  ;;  %v2143_v38 = vrot.slane %v4268_v11, 1 }
 0x151   :  { %v2472_v44 = vadd.f32 %v2319_v26, %v2026_v37  ;;  %788 = vmatmul.bf16.gmra.mxu0 %v468_v41  ;;  %v483_v26 = vrot.slane %v481_v29, 1  ;;  %v1610_v37 = vrot.slane %v1608_v32, 1 }
 0x152   :  { %1069 = vmatmul.bf16.gmra.mxu1 %v4191_v40 }
 0x153   :  { %v2549_v46 = vadd.f32 %v3988_v55, %v2472_v44  ;;  %1915 = vmatmul.bf16.gmra.mxu2 %v1595_v42 }
 0x154   :  { %2361 = vmatmul.bf16.gmra.mxu3 %v2140_v33  ;;  %v4281_v33 = vld [vmem:[%s4689_s2] ss:$0 sm:$0xff] }
 0x155   :  { %vm2622_vm9 = vcmp.gt.f32.partialorder %v2549_v46, 0.0  ;;  %v2695_v50 = vmul.f32 0.2, %v2549_v46 }
 0x156   :  { %v1876_v40 = vpop.f32.mrf.mxu2  ;;  %v751_v47 = vpop.f32.mrf.mxu0 }
 0x157   :  { %v2322_v51 = vpop.f32.mrf.mxu3  ;;  %v2768_v56 = vsel %vm2622_vm9, %v2549_v46, %v2695_v50  ;;  %v2027_v57 = vadd.f32 %v1876_v40, %v1031_v48  ;;  %v1032_v58 = vpop.f32.mrf.mxu1  ;;  %v1611_v50 = vsel %vm304_vm0, %v1606_v36, %v1610_v37  ;;  %v2144_v40 = vsel %vm2099_vm1, %v2141_v4, %v2143_v38 }
 0x158   :  { %v3590_v60 = vpack.c.bf16 %v2768_v56, %v2767_v53  ;;  %v1033_v6 = vadd.f32 %v1032_v58, %v751_v47  ;;  %v4297_v47 = vld [vmem:[%s4688_s0 + $0xc0] sm:$0xff]  ;;  %v1612_v4 = vshrl.u32 %v4268_v11, 16 }
 0x159   :  { %v2473_v0 = vadd.f32 %v2322_v51, %v2027_v57  ;;  %v4292_v57 = vld [vmem:[%s4688_s0 + $0xb8] sm:$0xff] }
 0x15a   :  { %3730 = vst [vmem:[%s4690_s3 + $0x50] sm:$0xff] %v3590_v60   ;;  %v485_v60 = vshrl.u32 %v4263_v21, 16  ;;  %v489_v2 = vshll.u32 %v4292_v57, 16 }
 0x15b   :  { %v2550_v8 = vadd.f32 %v3988_v55, %v2473_v0 }
 0x15d   :  { %v2696_v17 = vmul.f32 0.2, %v2550_v8  ;;  %vm2623_vm10 = vcmp.gt.f32.partialorder %v2550_v8, 0.0 }
 0x15e   :  { %v1878_v7 = vpop.f32.mrf.mxu2  ;;  %v754_v10 = vpop.f32.mrf.mxu0 }
 0x15f   :  { %v2324_v62 = vpop.f32.mrf.mxu3  ;;  %v2028_v9 = vadd.f32 %v1878_v7, %v1033_v6  ;;  %v1035_v12 = vpop.f32.mrf.mxu1  ;;  %v2769_v24 = vsel %vm2623_vm10, %v2550_v8, %v2696_v17  ;;  %v1616_v6 = vshll.u32 %v4297_v47, 16  ;;  %v491_v8 = vrot.slane %v489_v2, 1 }
 0x160   :  { %v1036_v20 = vadd.f32 %v1035_v12, %v754_v10  ;;  %v2145_v12 = vrot.slane %v4297_v47, 1 }
 0x161   :  { %v2474_v16 = vadd.f32 %v2324_v62, %v2028_v9  ;;  %793 = vmatmul.bf16.gmra.mxu0 %v476_v14  ;;  %v487_v62 = vor.u32 %v485_v60, %v483_v26  ;;  %v1614_v9 = vor.u32 %v1612_v4, %v1610_v37  ;;  %v1618_v10 = vrot.slane %v1616_v6, 1 }
 0x162   :  { %1074 = vmatmul.bf16.gmra.mxu1 %v4215_v13 }
 0x163   :  { %v2551_v18 = vadd.f32 %v3988_v55, %v2474_v16  ;;  %1920 = vmatmul.bf16.gmra.mxu2 %v1603_v15  ;;  %v477_v55 = vshrl.u32 %v4239_v49, 16  ;;  %v492_v11 = vsel %vm304_vm0, %v487_v62, %v491_v8 }
 0x164   :  { %2366 = vmatmul.bf16.gmra.mxu3 %v2142_v5 }
 0x165   :  { %vm2624_vm11 = vcmp.gt.f32.partialorder %v2551_v18, 0.0  ;;  %v2697_v22 = vmul.f32 0.2, %v2551_v18  ;;  %v479_v35 = vor.u32 %v477_v55, %v475_v1 }
 0x166   :  { %v1881_v13 = vpop.f32.mrf.mxu2  ;;  %v756_v28 = vpop.f32.mrf.mxu0 }
 0x167   :  { %v2327_v23 = vpop.f32.mrf.mxu3  ;;  %v2770_v25 = vsel %vm2624_vm11, %v2551_v18, %v2697_v22  ;;  %v2029_v27 = vadd.f32 %v1881_v13, %v1036_v20  ;;  %v1037_v19 = vpop.f32.mrf.mxu1  ;;  %v484_v43 = vsel %vm304_vm0, %v479_v35, %v483_v26  ;;  %v1619_v22 = vsel %vm304_vm0, %v1614_v9, %v1618_v10 }
 0x168   :  { %v3595_v30 = vpack.c.bf16 %v2770_v25, %v2769_v24  ;;  %v1038_v39 = vadd.f32 %v1037_v19, %v756_v28  ;;  %v2146_v13 = vsel %vm2099_vm1, %v2143_v38, %v2145_v12  ;;  %v4321_v28 = vld [vmem:[%s4688_s0 + $0xc8] sm:$0xff]  ;;  %v1620_v38 = vshrl.u32 %v4297_v47, 16 }
 0x169   :  { %v2475_v34 = vadd.f32 %v2327_v23, %v2029_v27  ;;  %v4316_v27 = vld [vmem:[%s4688_s0 + $0xc0] sm:$0xff] }
 0x16a   :  { %3731 = vst [vmem:[%s4690_s3 + $0x58] sm:$0xff] %v3595_v30   ;;  %v493_v30 = vshrl.u32 %v4292_v57, 16  ;;  %v497_v36 = vshll.u32 %v4316_v27, 16 }
 0x16b   :  { %v2552_v44 = vadd.f32 %v4281_v33, %v2475_v34 }
 0x16d   :  { %v2698_v52 = vmul.f32 0.2, %v2552_v44  ;;  %vm2625_vm12 = vcmp.gt.f32.partialorder %v2552_v44, 0.0 }
 0x16e   :  { %v1883_v41 = vpop.f32.mrf.mxu2  ;;  %v759_v46 = vpop.f32.mrf.mxu0 }
 0x16f   :  { %v2329_v42 = vpop.f32.mrf.mxu3  ;;  %v2030_v45 = vadd.f32 %v1883_v41, %v1038_v39  ;;  %v1040_v48 = vpop.f32.mrf.mxu1  ;;  %v2771_v61 = vsel %vm2625_vm12, %v2552_v44, %v2698_v52  ;;  %v1624_v39 = vshll.u32 %v4321_v28, 16  ;;  %v499_v44 = vrot.slane %v497_v36, 1 }
 0x170   :  { %v1041_v56 = vadd.f32 %v1040_v48, %v759_v46  ;;  %v2147_v48 = vrot.slane %v4321_v28, 1 }
 0x171   :  { %v2476_v51 = vadd.f32 %v2329_v42, %v2030_v45  ;;  %798 = vmatmul.bf16.gmra.mxu0 %v484_v43  ;;  %v495_v42 = vor.u32 %v493_v30, %v491_v8  ;;  %v1622_v45 = vor.u32 %v1620_v38, %v1618_v10  ;;  %v1626_v46 = vrot.slane %v1624_v39, 1 }
 0x172   :  { %1079 = vmatmul.bf16.gmra.mxu1 %v4239_v49 }
 0x173   :  { %v2553_v53 = vadd.f32 %v4281_v33, %v2476_v51  ;;  %1925 = vmatmul.bf16.gmra.mxu2 %v1611_v50  ;;  %v500_v47 = vsel %vm304_vm0, %v495_v42, %v499_v44 }
 0x174   :  { %2371 = vmatmul.bf16.gmra.mxu3 %v2144_v40 }
 0x175   :  { %vm2626_vm13 = vcmp.gt.f32.partialorder %v2553_v53, 0.0  ;;  %v2699_v58 = vmul.f32 0.2, %v2553_v53 }
 0x176   :  { %v1886_v49 = vpop.f32.mrf.mxu2  ;;  %v761_v54 = vpop.f32.mrf.mxu0 }
 0x177   :  { %v2332_v59 = vpop.f32.mrf.mxu3  ;;  %v2772_v63 = vsel %vm2626_vm13, %v2553_v53, %v2699_v58  ;;  %v2031_v0 = vadd.f32 %v1886_v49, %v1041_v56  ;;  %v1042_v1 = vpop.f32.mrf.mxu1  ;;  %v1627_v58 = vsel %vm304_vm0, %v1622_v45, %v1626_v46  ;;  %v2148_v49 = vsel %vm2099_vm1, %v2145_v12, %v2147_v48 }
 0x178   :  { %v3600_v3 = vpack.c.bf16 %v2772_v63, %v2771_v61  ;;  %v1043_v14 = vadd.f32 %v1042_v1, %v761_v54  ;;  %v4345_v54 = vld [vmem:[%s4688_s0 + $0xd0] sm:$0xff]  ;;  %v1628_v12 = vshrl.u32 %v4321_v28, 16 }
 0x179   :  { %v2477_v7 = vadd.f32 %v2332_v59, %v2031_v0  ;;  %v4340_v0 = vld [vmem:[%s4688_s0 + $0xc8] sm:$0xff] }
 0x17a   :  { %3732 = vst [vmem:[%s4690_s3 + $0x60] sm:$0xff] %v3600_v3   ;;  %v501_v3 = vshrl.u32 %v4316_v27, 16  ;;  %v505_v9 = vshll.u32 %v4340_v0, 16 }
 0x17b   :  { %v2554_v16 = vadd.f32 %v4281_v33, %v2477_v7 }
 0x17d   :  { %v2700_v55 = vmul.f32 0.2, %v2554_v16  ;;  %vm2627_vm14 = vcmp.gt.f32.partialorder %v2554_v16, 0.0 }
 0x17e   :  { %v1888_v15 = vpop.f32.mrf.mxu2  ;;  %v764_v18 = vpop.f32.mrf.mxu0 }
 0x17f   :  { %v2334_v5 = vpop.f32.mrf.mxu3  ;;  %v2032_v17 = vadd.f32 %v1888_v15, %v1043_v14  ;;  %v1045_v20 = vpop.f32.mrf.mxu1  ;;  %v2773_v31 = vsel %vm2627_vm14, %v2554_v16, %v2700_v55  ;;  %v1632_v14 = vshll.u32 %v4345_v54, 16  ;;  %v507_v16 = vrot.slane %v505_v9, 1 }
 0x180   :  { %v1046_v25 = vadd.f32 %v1045_v20, %v764_v18  ;;  %v2149_v20 = vrot.slane %v4345_v54, 1 }
 0x181   :  { %v2478_v23 = vadd.f32 %v2334_v5, %v2032_v17  ;;  %803 = vmatmul.bf16.gmra.mxu0 %v492_v11  ;;  %v503_v5 = vor.u32 %v501_v3, %v499_v44  ;;  %v1630_v17 = vor.u32 %v1628_v12, %v1626_v46  ;;  %v1634_v18 = vrot.slane %v1632_v14, 1 }
 0x182   :  { %1084 = vmatmul.bf16.gmra.mxu1 %v4263_v21 }
 0x183   :  { %v2555_v24 = vadd.f32 %v4281_v33, %v2478_v23  ;;  %1930 = vmatmul.bf16.gmra.mxu2 %v1619_v22  ;;  %v508_v28 = vsel %vm304_vm0, %v503_v5, %v507_v16 }
 0x184   :  { %2376 = vmatmul.bf16.gmra.mxu3 %v2146_v13 }
 0x185   :  { %vm2628_vm15 = vcmp.gt.f32.partialorder %v2555_v24, 0.0  ;;  %v2701_v19 = vmul.f32 0.2, %v2555_v24 }
 0x186   :  { %v1891_v21 = vpop.f32.mrf.mxu2  ;;  %v766_v35 = vpop.f32.mrf.mxu0 }
 0x187   :  { %v2337_v29 = vpop.f32.mrf.mxu3  ;;  %v2774_v32 = vsel %vm2628_vm15, %v2555_v24, %v2701_v19  ;;  %v2033_v34 = vadd.f32 %v1891_v21, %v1046_v25  ;;  %v1047_v26 = vpop.f32.mrf.mxu1  ;;  %v1635_v19 = vsel %vm304_vm0, %v1630_v17, %v1634_v18  ;;  %v2150_v21 = vsel %vm2099_vm1, %v2147_v48, %v2149_v20 }
 0x188   :  { %v3605_v37 = vpack.c.bf16 %v2774_v32, %v2773_v31  ;;  %v1048_v43 = vadd.f32 %v1047_v26, %v766_v35  ;;  %v4369_v35 = vld [vmem:[%s4688_s0 + $0xd8] sm:$0xff]  ;;  %v1636_v48 = vshrl.u32 %v4345_v54, 16 }
 0x189   :  { %v2479_v41 = vadd.f32 %v2337_v29, %v2033_v34  ;;  %v4364_v34 = vld [vmem:[%s4688_s0 + $0xd0] sm:$0xff] }
 0x18a   :  { %3733 = vst [vmem:[%s4690_s3 + $0x68] sm:$0xff] %v3605_v37   ;;  %v509_v37 = vshrl.u32 %v4340_v0, 16  ;;  %v513_v45 = vshll.u32 %v4364_v34, 16 }
 0x18b   :  { %v2556_v51 = vadd.f32 %v4281_v33, %v2479_v41 }
 0x18d   :  { %v2702_v60 = vmul.f32 0.2, %v2556_v51  ;;  %vm2629_vm2 = vcmp.gt.f32.partialorder %v2556_v51, 0.0 }
 0x18e   :  { %v1893_v50 = vpop.f32.mrf.mxu2  ;;  %v769_v53 = vpop.f32.mrf.mxu0 }
 0x18f   :  { %v2339_v40 = vpop.f32.mrf.mxu3  ;;  %v2034_v52 = vadd.f32 %v1893_v50, %v1048_v43  ;;  %v1050_v56 = vpop.f32.mrf.mxu1  ;;  %v2775_v4 = vsel %vm2629_vm2, %v2556_v51, %v2702_v60  ;;  %v1640_v43 = vshll.u32 %v4369_v35, 16  ;;  %v515_v51 = vrot.slane %v513_v45, 1 }
 0x190   :  { %v1051_v63 = vadd.f32 %v1050_v56, %v769_v53  ;;  %v2151_v56 = vrot.slane %v4369_v35, 1 }
 0x191   :  { %v2480_v59 = vadd.f32 %v2339_v40, %v2034_v52  ;;  %808 = vmatmul.bf16.gmra.mxu0 %v500_v47  ;;  %v511_v40 = vor.u32 %v509_v37, %v507_v16  ;;  %v1638_v52 = vor.u32 %v1636_v48, %v1634_v18  ;;  %v1642_v53 = vrot.slane %v1640_v43, 1 }
 0x192   :  { %1089 = vmatmul.bf16.gmra.mxu1 %v4292_v57 }
 0x193   :  { %v2557_v61 = vadd.f32 %v4281_v33, %v2480_v59  ;;  %1935 = vmatmul.bf16.gmra.mxu2 %v1627_v58  ;;  %v516_v54 = vsel %vm304_vm0, %v511_v40, %v515_v51 }
 0x194   :  { %2381 = vmatmul.bf16.gmra.mxu3 %v2148_v49 }
 0x195   :  { %vm2630_vm3 = vcmp.gt.f32.partialorder %v2557_v61, 0.0  ;;  %v2703_v1 = vmul.f32 0.2, %v2557_v61 }
 0x196   :  { %v1896_v57 = vpop.f32.mrf.mxu2  ;;  %v771_v62 = vpop.f32.mrf.mxu0 }
 0x197   :  { %v2342_v2 = vpop.f32.mrf.mxu3  ;;  %v2776_v6 = vsel %vm2630_vm3, %v2557_v61, %v2703_v1  ;;  %v2035_v7 = vadd.f32 %v1896_v57, %v1051_v63  ;;  %v1052_v8 = vpop.f32.mrf.mxu1  ;;  %v1643_v1 = vsel %vm304_vm0, %v1638_v52, %v1642_v53  ;;  %v2152_v57 = vsel %vm2099_vm1, %v2149_v20, %v2151_v56 }
 0x198   :  { %v3610_v10 = vpack.c.bf16 %v2776_v6, %v2775_v4  ;;  %v1053_v11 = vadd.f32 %v1052_v8, %v771_v62  ;;  %v4393_v62 = vld [vmem:[%s4688_s0 + $0xe0] sm:$0xff]  ;;  %v1644_v20 = vshrl.u32 %v4369_v35, 16 }
 0x199   :  { %v2481_v15 = vadd.f32 %v2342_v2, %v2035_v7  ;;  %v4388_v7 = vld [vmem:[%s4688_s0 + $0xd8] sm:$0xff] }
 0x19a   :  { %3734 = vst [vmem:[%s4690_s3 + $0x70] sm:$0xff] %v3610_v10   ;;  %v517_v10 = vshrl.u32 %v4364_v34, 16  ;;  %v521_v17 = vshll.u32 %v4388_v7, 16 }
 0x19b   :  { %v2558_v23 = vadd.f32 %v4281_v33, %v2481_v15 }
 0x19d   :  { %v2704_v30 = vmul.f32 0.2, %v2558_v23  ;;  %vm2631_vm4 = vcmp.gt.f32.partialorder %v2558_v23, 0.0 }
 0x19e   :  { %v1898_v22 = vpop.f32.mrf.mxu2  ;;  %v774_v24 = vpop.f32.mrf.mxu0 }
 0x19f   :  { %v2344_v13 = vpop.f32.mrf.mxu3  ;;  %v2036_v55 = vadd.f32 %v1898_v22, %v1053_v11  ;;  %v1055_v25 = vpop.f32.mrf.mxu1  ;;  %v2777_v38 = vsel %vm2631_vm4, %v2558_v23, %v2704_v30  ;;  %v1648_v11 = vshll.u32 %v4393_v62, 16  ;;  %v523_v23 = vrot.slane %v521_v17, 1 }
 0x1a0   :  { %v1056_v32 = vadd.f32 %v1055_v25, %v774_v24  ;;  %v2153_v25 = vrot.slane %v4393_v62, 1 }
 0x1a1   :  { %v2482_v29 = vadd.f32 %v2344_v13, %v2036_v55  ;;  %813 = vmatmul.bf16.gmra.mxu0 %v508_v28  ;;  %v519_v13 = vor.u32 %v517_v10, %v515_v51  ;;  %v1646_v55 = vor.u32 %v1644_v20, %v1642_v53  ;;  %v1650_v24 = vrot.slane %v1648_v11, 1 }
 0x1a2   :  { %1094 = vmatmul.bf16.gmra.mxu1 %v4316_v27 }
 0x1a3   :  { %v2559_v31 = vadd.f32 %v4281_v33, %v2482_v29  ;;  %1940 = vmatmul.bf16.gmra.mxu2 %v1635_v19  ;;  %v524_v35 = vsel %vm304_vm0, %v519_v13, %v523_v23 }
 0x1a4   :  { %2386 = vmatmul.bf16.gmra.mxu3 %v2150_v21 }
 0x1a5   :  { %vm2632_vm5 = vcmp.gt.f32.partialorder %v2559_v31, 0.0  ;;  %v2705_v26 = vmul.f32 0.2, %v2559_v31 }
 0x1a6   :  { %v1901_v27 = vpop.f32.mrf.mxu2  ;;  %v776_v42 = vpop.f32.mrf.mxu0 }
 0x1a7   :  { %v2347_v36 = vpop.f32.mrf.mxu3  ;;  %v2778_v39 = vsel %vm2632_vm5, %v2559_v31, %v2705_v26  ;;  %v2037_v41 = vadd.f32 %v1901_v27, %v1056_v32  ;;  %v1057_v44 = vpop.f32.mrf.mxu1  ;;  %v1651_v26 = vsel %vm304_vm0, %v1646_v55, %v1650_v24  ;;  %v2154_v27 = vsel %vm2099_vm1, %v2151_v56, %v2153_v25 }
 0x1a8   :  { %v3615_v46 = vpack.c.bf16 %v2778_v39, %v2777_v38  ;;  %v1058_v47 = vadd.f32 %v1057_v44, %v776_v42  ;;  %v4417_v42 = vld [vmem:[%s4688_s0 + $0xe8] sm:$0xff]  ;;  %v1652_v56 = vshrl.u32 %v4393_v62, 16 }
 0x1a9   :  { %v2483_v50 = vadd.f32 %v2347_v36, %v2037_v41  ;;  %v4412_v41 = vld [vmem:[%s4688_s0 + $0xe0] sm:$0xff] }
 0x1aa   :  { %3735 = vst [vmem:[%s4690_s3 + $0x78] sm:$0xff] %v3615_v46   ;;  %v525_v46 = vshrl.u32 %v4388_v7, 16  ;;  %v529_v52 = vshll.u32 %v4412_v41, 16 }
 0x1ab   :  { %v2560_v59 = vadd.f32 %v4281_v33, %v2483_v50 }
 0x1ad   :  { %v2706_v3 = vmul.f32 0.2, %v2560_v59  ;;  %vm2633_vm6 = vcmp.gt.f32.partialorder %v2560_v59, 0.0 }
 0x1ae   :  { %v1903_v58 = vpop.f32.mrf.mxu2  ;;  %v779_v61 = vpop.f32.mrf.mxu0 }
 0x1af   :  { %v2349_v49 = vpop.f32.mrf.mxu3  ;;  %v2038_v60 = vadd.f32 %v1903_v58, %v1058_v47  ;;  %v1060_v63 = vpop.f32.mrf.mxu1  ;;  %v2779_v12 = vsel %vm2633_vm6, %v2560_v59, %v2706_v3  ;;  %v1656_v47 = vshll.u32 %v4417_v42, 16  ;;  %v531_v59 = vrot.slane %v529_v52, 1 }
 0x1b0   :  { %v1061_v6 = vadd.f32 %v1060_v63, %v779_v61  ;;  %v2155_v63 = vrot.slane %v4417_v42, 1 }
 0x1b1   :  { %v2484_v2 = vadd.f32 %v2349_v49, %v2038_v60  ;;  %818 = vmatmul.bf16.gmra.mxu0 %v516_v54  ;;  %v527_v49 = vor.u32 %v525_v46, %v523_v23  ;;  %v1654_v60 = vor.u32 %v1652_v56, %v1650_v24  ;;  %v1658_v61 = vrot.slane %v1656_v47, 1 }
 0x1b2   :  { %1099 = vmatmul.bf16.gmra.mxu1 %v4340_v0 }
 0x1b3   :  { %v2561_v4 = vadd.f32 %v4281_v33, %v2484_v2  ;;  %1945 = vmatmul.bf16.gmra.mxu2 %v1643_v1  ;;  %v532_v62 = vsel %vm304_vm0, %v527_v49, %v531_v59 }
 0x1b4   :  { %2391 = vmatmul.bf16.gmra.mxu3 %v2152_v57 }
 0x1b5   :  { %vm2634_vm7 = vcmp.gt.f32.partialorder %v2561_v4, 0.0  ;;  %v2707_v8 = vmul.f32 0.2, %v2561_v4 }
 0x1b6   :  { %v1906_v0 = vpop.f32.mrf.mxu2  ;;  %v781_v5 = vpop.f32.mrf.mxu0 }
 0x1b7   :  { %v2352_v9 = vpop.f32.mrf.mxu3  ;;  %v2780_v14 = vsel %vm2634_vm7, %v2561_v4, %v2707_v8  ;;  %v2039_v15 = vadd.f32 %v1906_v0, %v1061_v6  ;;  %v1062_v16 = vpop.f32.mrf.mxu1  ;;  %v1659_v8 = vsel %vm304_vm0, %v1654_v60, %v1658_v61  ;;  %v2156_v0 = vsel %vm2099_vm1, %v2153_v25, %v2155_v63 }
 0x1b8   :  { %v3620_v18 = vpack.c.bf16 %v2780_v14, %v2779_v12  ;;  %v1063_v28 = vadd.f32 %v1062_v16, %v781_v5  ;;  %v4441_v5 = vld [vmem:[%s4688_s0 + $0xf0] sm:$0xff]  ;;  %v1660_v25 = vshrl.u32 %v4417_v42, 16 }
 0x1b9   :  { %v2485_v22 = vadd.f32 %v2352_v9, %v2039_v15  ;;  %v4436_v15 = vld [vmem:[%s4688_s0 + $0xe8] sm:$0xff] }
 0x1ba   :  { %3736 = vst [vmem:[%s4690_s3 + $0x80] sm:$0xff] %v3620_v18   ;;  %v533_v18 = vshrl.u32 %v4412_v41, 16  ;;  %v537_v55 = vshll.u32 %v4436_v15, 16 }
 0x1bb   :  { %v2562_v29 = vadd.f32 %v4281_v33, %v2485_v22 }
 0x1bd   :  { %v2708_v37 = vmul.f32 0.2, %v2562_v29  ;;  %vm2635_vm8 = vcmp.gt.f32.partialorder %v2562_v29, 0.0 }
 0x1be   :  { %v1908_v19 = vpop.f32.mrf.mxu2  ;;  %v784_v31 = vpop.f32.mrf.mxu0 }
 0x1bf   :  { %v2354_v21 = vpop.f32.mrf.mxu3  ;;  %v2040_v30 = vadd.f32 %v1908_v19, %v1063_v28  ;;  %v1065_v32 = vpop.f32.mrf.mxu1  ;;  %v2781_v48 = vsel %vm2635_vm8, %v2562_v29, %v2708_v37  ;;  %v1664_v28 = vshll.u32 %v4441_v5, 16  ;;  %v539_v29 = vrot.slane %v537_v55, 1 }
 0x1c0   :  { %v1066_v39 = vadd.f32 %v1065_v32, %v784_v31  ;;  %v2157_v32 = vrot.slane %v4441_v5, 1 }
 0x1c1   :  { %v2486_v36 = vadd.f32 %v2354_v21, %v2040_v30  ;;  %823 = vmatmul.bf16.gmra.mxu0 %v524_v35  ;;  %v535_v21 = vor.u32 %v533_v18, %v531_v59  ;;  %v1662_v30 = vor.u32 %v1660_v25, %v1658_v61  ;;  %v1666_v31 = vrot.slane %v1664_v28, 1 }
 0x1c2   :  { %1104 = vmatmul.bf16.gmra.mxu1 %v4364_v34 }
 0x1c3   :  { %v2563_v38 = vadd.f32 %v4281_v33, %v2486_v36  ;;  %1950 = vmatmul.bf16.gmra.mxu2 %v1651_v26  ;;  %v540_v42 = vsel %vm304_vm0, %v535_v21, %v539_v29 }
 0x1c4   :  { %2396 = vmatmul.bf16.gmra.mxu3 %v2154_v27 }
 0x1c5   :  { %vm2636_vm9 = vcmp.gt.f32.partialorder %v2563_v38, 0.0  ;;  %v2709_v44 = vmul.f32 0.2, %v2563_v38 }
 0x1c6   :  { %v1911_v34 = vpop.f32.mrf.mxu2  ;;  %v786_v40 = vpop.f32.mrf.mxu0 }
 0x1c7   :  { %v2357_v45 = vpop.f32.mrf.mxu3  ;;  %v2782_v43 = vsel %vm2636_vm9, %v2563_v38, %v2709_v44  ;;  %v2041_v50 = vadd.f32 %v1911_v34, %v1066_v39  ;;  %v1067_v51 = vpop.f32.mrf.mxu1  ;;  %v1667_v44 = vsel %vm304_vm0, %v1662_v30, %v1666_v31  ;;  %v2158_v34 = vsel %vm2099_vm1, %v2155_v63, %v2157_v32 }
 0x1c8   :  { %v3625_v53 = vpack.c.bf16 %v2782_v43, %v2781_v48  ;;  %v1068_v54 = vadd.f32 %v1067_v51, %v786_v40  ;;  %v4465_v40 = vld [vmem:[%s4688_s0 + $0xf8] sm:$0xff]  ;;  %v1668_v63 = vshrl.u32 %v4441_v5, 16 }
 0x1c9   :  { %v2487_v58 = vadd.f32 %v2357_v45, %v2041_v50  ;;  %v4460_v50 = vld [vmem:[%s4688_s0 + $0xf0] sm:$0xff] }
 0x1ca   :  { %3737 = vst [vmem:[%s4690_s3 + $0x88] sm:$0xff] %v3625_v53   ;;  %v541_v53 = vshrl.u32 %v4436_v15, 16  ;;  %v545_v60 = vshll.u32 %v4460_v50, 16 }
 0x1cb   :  { %v2564_v2 = vadd.f32 %v4281_v33, %v2487_v58 }
 0x1cd   :  { %v2710_v10 = vmul.f32 0.2, %v2564_v2  ;;  %vm2637_vm10 = vcmp.gt.f32.partialorder %v2564_v2, 0.0 }
 0x1ce   :  { %v1913_v1 = vpop.f32.mrf.mxu2  ;;  %v789_v4 = vpop.f32.mrf.mxu0 }
 0x1cf   :  { %v2359_v57 = vpop.f32.mrf.mxu3  ;;  %v2042_v3 = vadd.f32 %v1913_v1, %v1068_v54  ;;  %v1070_v6 = vpop.f32.mrf.mxu1  ;;  %v2783_v20 = vsel %vm2637_vm10, %v2564_v2, %v2710_v10  ;;  %v1672_v54 = vshll.u32 %v4465_v40, 16  ;;  %v547_v2 = vrot.slane %v545_v60, 1 }
 0x1d0   :  { %v1071_v14 = vadd.f32 %v1070_v6, %v789_v4  ;;  %v2159_v6 = vrot.slane %v4465_v40, 1 }
 0x1d1   :  { %v2488_v9 = vadd.f32 %v2359_v57, %v2042_v3  ;;  %828 = vmatmul.bf16.gmra.mxu0 %v532_v62  ;;  %v543_v57 = vor.u32 %v541_v53, %v539_v29  ;;  %v1670_v3 = vor.u32 %v1668_v63, %v1666_v31  ;;  %v1674_v4 = vrot.slane %v1672_v54, 1 }
 0x1d2   :  { %1109 = vmatmul.bf16.gmra.mxu1 %v4388_v7 }
 0x1d3   :  { %v2565_v12 = vadd.f32 %v4281_v33, %v2488_v9  ;;  %1955 = vmatmul.bf16.gmra.mxu2 %v1659_v8  ;;  %v548_v5 = vsel %vm304_vm0, %v543_v57, %v547_v2 }
 0x1d4   :  { %2401 = vmatmul.bf16.gmra.mxu3 %v2156_v0 }
 0x1d5   :  { %vm2638_vm11 = vcmp.gt.f32.partialorder %v2565_v12, 0.0  ;;  %v2711_v16 = vmul.f32 0.2, %v2565_v12 }
 0x1d6   :  { %v1916_v7 = vpop.f32.mrf.mxu2  ;;  %v791_v13 = vpop.f32.mrf.mxu0 }
 0x1d7   :  { %v2362_v17 = vpop.f32.mrf.mxu3  ;;  %v2784_v11 = vsel %vm2638_vm11, %v2565_v12, %v2711_v16  ;;  %v2043_v22 = vadd.f32 %v1916_v7, %v1071_v14  ;;  %v1072_v23 = vpop.f32.mrf.mxu1  ;;  %v1675_v16 = vsel %vm304_vm0, %v1670_v3, %v1674_v4  ;;  %v2160_v7 = vsel %vm2099_vm1, %v2157_v32, %v2159_v6 }
 0x1d8   :  { %v3630_v24 = vpack.c.bf16 %v2784_v11, %v2783_v20  ;;  %v1073_v35 = vadd.f32 %v1072_v23, %v791_v13  ;;  %v4489_v13 = vld [vmem:[%s4688_s0 + $0x100] sm:$0xff]  ;;  %v1676_v32 = vshrl.u32 %v4465_v40, 16 }
 0x1d9   :  { %v2489_v19 = vadd.f32 %v2362_v17, %v2043_v22  ;;  %v4484_v22 = vld [vmem:[%s4688_s0 + $0xf8] sm:$0xff] }
 0x1da   :  { %3738 = vst [vmem:[%s4690_s3 + $0x90] sm:$0xff] %v3630_v24   ;;  %v549_v24 = vshrl.u32 %v4460_v50, 16  ;;  %v553_v30 = vshll.u32 %v4484_v22, 16 }
 0x1db   :  { %v2566_v36 = vadd.f32 %v4281_v33, %v2489_v19 }
 0x1dd   :  { %v2712_v46 = vmul.f32 0.2, %v2566_v36  ;;  %vm2639_vm12 = vcmp.gt.f32.partialorder %v2566_v36, 0.0 }
 0x1de   :  { %v1918_v26 = vpop.f32.mrf.mxu2  ;;  %v794_v38 = vpop.f32.mrf.mxu0 }
 0x1df   :  { %v2364_v27 = vpop.f32.mrf.mxu3  ;;  %v2044_v37 = vadd.f32 %v1918_v26, %v1073_v35  ;;  %v1075_v39 = vpop.f32.mrf.mxu1  ;;  %v2785_v56 = vsel %vm2639_vm12, %v2566_v36, %v2712_v46  ;;  %v1680_v35 = vshll.u32 %v4489_v13, 16  ;;  %v555_v36 = vrot.slane %v553_v30, 1 }
 0x1e0   :  { %v1076_v43 = vadd.f32 %v1075_v39, %v794_v38  ;;  %v2161_v39 = vrot.slane %v4489_v13, 1 }
 0x1e1   :  { %v2490_v45 = vadd.f32 %v2364_v27, %v2044_v37  ;;  %833 = vmatmul.bf16.gmra.mxu0 %v540_v42  ;;  %v551_v27 = vor.u32 %v549_v24, %v547_v2  ;;  %v1678_v37 = vor.u32 %v1676_v32, %v1674_v4  ;;  %v1682_v38 = vrot.slane %v1680_v35, 1 }
 0x1e2   :  { %1114 = vmatmul.bf16.gmra.mxu1 %v4412_v41 }
 0x1e3   :  { %v2567_v48 = vadd.f32 %v4281_v33, %v2490_v45  ;;  %1960 = vmatmul.bf16.gmra.mxu2 %v1667_v44  ;;  %v556_v40 = vsel %vm304_vm0, %v551_v27, %v555_v36 }
 0x1e4   :  { %2406 = vmatmul.bf16.gmra.mxu3 %v2158_v34 }
 0x1e5   :  { %vm2640_vm13 = vcmp.gt.f32.partialorder %v2567_v48, 0.0  ;;  %v2713_v51 = vmul.f32 0.2, %v2567_v48 }
 0x1e6   :  { %v1921_v41 = vpop.f32.mrf.mxu2  ;;  %v796_v49 = vpop.f32.mrf.mxu0 }
 0x1e7   :  { %v2367_v52 = vpop.f32.mrf.mxu3  ;;  %v2786_v47 = vsel %vm2640_vm13, %v2567_v48, %v2713_v51  ;;  %v2045_v58 = vadd.f32 %v1921_v41, %v1076_v43  ;;  %v1077_v59 = vpop.f32.mrf.mxu1  ;;  %v1683_v51 = vsel %vm304_vm0, %v1678_v37, %v1682_v38  ;;  %v2162_v41 = vsel %vm2099_vm1, %v2159_v6, %v2161_v39 }
 0x1e8   :  { %v3635_v61 = vpack.c.bf16 %v2786_v47, %v2785_v56  ;;  %v1078_v62 = vadd.f32 %v1077_v59, %v796_v49  ;;  %v4513_v49 = vld [vmem:[%s4688_s0 + $0x108] sm:$0xff]  ;;  %v1684_v6 = vshrl.u32 %v4489_v13, 16 }
 0x1e9   :  { %v2491_v1 = vadd.f32 %v2367_v52, %v2045_v58  ;;  %v4508_v58 = vld [vmem:[%s4688_s0 + $0x100] sm:$0xff] }
 0x1ea   :  { %3739 = vst [vmem:[%s4690_s3 + $0x98] sm:$0xff] %v3635_v61   ;;  %v557_v61 = vshrl.u32 %v4484_v22, 16  ;;  %v561_v3 = vshll.u32 %v4508_v58, 16 }
 0x1eb   :  { %v2568_v9 = vadd.f32 %v4281_v33, %v2491_v1 }
 0x1ed   :  { %v2714_v18 = vmul.f32 0.2, %v2568_v9  ;;  %vm2641_vm14 = vcmp.gt.f32.partialorder %v2568_v9, 0.0 }
 0x1ee   :  { %v1923_v8 = vpop.f32.mrf.mxu2  ;;  %v799_v12 = vpop.f32.mrf.mxu0 }
 0x1ef   :  { %v2369_v0 = vpop.f32.mrf.mxu3  ;;  %v2046_v10 = vadd.f32 %v1923_v8, %v1078_v62  ;;  %v1080_v14 = vpop.f32.mrf.mxu1  ;;  %v2787_v25 = vsel %vm2641_vm14, %v2568_v9, %v2714_v18  ;;  %v1688_v62 = vshll.u32 %v4513_v49, 16  ;;  %v563_v9 = vrot.slane %v561_v3, 1 }
 0x1f0   :  { %v1081_v11 = vadd.f32 %v1080_v14, %v799_v12  ;;  %v2163_v14 = vrot.slane %v4513_v49, 1 }
 0x1f1   :  { %v2492_v17 = vadd.f32 %v2369_v0, %v2046_v10  ;;  %838 = vmatmul.bf16.gmra.mxu0 %v548_v5  ;;  %v559_v0 = vor.u32 %v557_v61, %v555_v36  ;;  %v1686_v10 = vor.u32 %v1684_v6, %v1682_v38  ;;  %v1690_v12 = vrot.slane %v1688_v62, 1 }
 0x1f2   :  { %1119 = vmatmul.bf16.gmra.mxu1 %v4436_v15 }
 0x1f3   :  { %v2569_v20 = vadd.f32 %v4281_v33, %v2492_v17  ;;  %1965 = vmatmul.bf16.gmra.mxu2 %v1675_v16  ;;  %v564_v13 = vsel %vm304_vm0, %v559_v0, %v563_v9 }
 0x1f4   :  { %2411 = vmatmul.bf16.gmra.mxu3 %v2160_v7 }
 0x1f5   :  { %vm2642_vm15 = vcmp.gt.f32.partialorder %v2569_v20, 0.0  ;;  %v2715_v23 = vmul.f32 0.2, %v2569_v20 }
 0x1f6   :  { %v1926_v15 = vpop.f32.mrf.mxu2  ;;  %v801_v21 = vpop.f32.mrf.mxu0 }
 0x1f7   :  { %v2372_v55 = vpop.f32.mrf.mxu3  ;;  %v2788_v28 = vsel %vm2642_vm15, %v2569_v20, %v2715_v23  ;;  %v2047_v19 = vadd.f32 %v1926_v15, %v1081_v11  ;;  %v1082_v29 = vpop.f32.mrf.mxu1  ;;  %v1691_v23 = vsel %vm304_vm0, %v1686_v10, %v1690_v12  ;;  %v2164_v15 = vsel %vm2099_vm1, %v2161_v39, %v2163_v14 }
 0x1f8   :  { %v3640_v31 = vpack.c.bf16 %v2788_v28, %v2787_v25  ;;  %v1083_v42 = vadd.f32 %v1082_v29, %v801_v21  ;;  %v4537_v21 = vld [vmem:[%s4688_s0 + $0x110] sm:$0xff]  ;;  %v1692_v39 = vshrl.u32 %v4513_v49, 16 }
 0x1f9   :  { %v2493_v26 = vadd.f32 %v2372_v55, %v2047_v19  ;;  %v4532_v19 = vld [vmem:[%s4688_s0 + $0x108] sm:$0xff] }
 0x1fa   :  { %3740 = vst [vmem:[%s4690_s3 + $0xa0] sm:$0xff] %v3640_v31   ;;  %v565_v31 = vshrl.u32 %v4508_v58, 16  ;;  %v569_v37 = vshll.u32 %v4532_v19, 16 }
 0x1fb   :  { %v2570_v45 = vadd.f32 %v4281_v33, %v2493_v26 }
 0x1fd   :  { %v2716_v53 = vmul.f32 0.2, %v2570_v45  ;;  %vm2643_vm2 = vcmp.gt.f32.partialorder %v2570_v45, 0.0 }
 0x1fe   :  { %v1928_v44 = vpop.f32.mrf.mxu2  ;;  %v804_v48 = vpop.f32.mrf.mxu0 }
 0x1ff   :  { %v2374_v34 = vpop.f32.mrf.mxu3  ;;  %v2048_v46 = vadd.f32 %v1928_v44, %v1083_v42  ;;  %v1085_v43 = vpop.f32.mrf.mxu1  ;;  %v2789_v63 = vsel %vm2643_vm2, %v2570_v45, %v2716_v53  ;;  %v1696_v42 = vshll.u32 %v4537_v21, 16  ;;  %v571_v45 = vrot.slane %v569_v37, 1 }
 0x200   :  { %v1086_v47 = vadd.f32 %v1085_v43, %v804_v48  ;;  %v2165_v43 = vrot.slane %v4537_v21, 1 }
 0x201   :  { %v2494_v52 = vadd.f32 %v2374_v34, %v2048_v46  ;;  %843 = vmatmul.bf16.gmra.mxu0 %v556_v40  ;;  %v567_v34 = vor.u32 %v565_v31, %v563_v9  ;;  %v1694_v46 = vor.u32 %v1692_v39, %v1690_v12  ;;  %v1698_v48 = vrot.slane %v1696_v42, 1 }
 0x202   :  { %1124 = vmatmul.bf16.gmra.mxu1 %v4460_v50 }
 0x203   :  { %v2571_v56 = vadd.f32 %v4281_v33, %v2494_v52  ;;  %1970 = vmatmul.bf16.gmra.mxu2 %v1683_v51  ;;  %v572_v49 = vsel %vm304_vm0, %v567_v34, %v571_v45 }
 0x204   :  { %2416 = vmatmul.bf16.gmra.mxu3 %v2162_v41 }
 0x205   :  { %vm2644_vm3 = vcmp.gt.f32.partialorder %v2571_v56, 0.0  ;;  %v2717_v59 = vmul.f32 0.2, %v2571_v56 }
 0x206   :  { %v1931_v50 = vpop.f32.mrf.mxu2  ;;  %v806_v57 = vpop.f32.mrf.mxu0 }
 0x207   :  { %v2377_v60 = vpop.f32.mrf.mxu3  ;;  %v2790_v54 = vsel %vm2644_vm3, %v2571_v56, %v2717_v59  ;;  %v2049_v1 = vadd.f32 %v1931_v50, %v1086_v47  ;;  %v1087_v2 = vpop.f32.mrf.mxu1  ;;  %v1699_v59 = vsel %vm304_vm0, %v1694_v46, %v1698_v48  ;;  %v2166_v50 = vsel %vm2099_vm1, %v2163_v14, %v2165_v43 }
 0x208   :  { %v3645_v4 = vpack.c.bf16 %v2790_v54, %v2789_v63  ;;  %v1088_v5 = vadd.f32 %v1087_v2, %v806_v57  ;;  %v4561_v57 = vld [vmem:[%s4688_s0 + $0x118] sm:$0xff]  ;;  %v1700_v14 = vshrl.u32 %v4537_v21, 16 }
 0x209   :  { %v2495_v8 = vadd.f32 %v2377_v60, %v2049_v1  ;;  %v4556_v1 = vld [vmem:[%s4688_s0 + $0x110] sm:$0xff] }
 0x20a   :  { %3741 = vst [vmem:[%s4690_s3 + $0xa8] sm:$0xff] %v3645_v4   ;;  %v573_v4 = vshrl.u32 %v4532_v19, 16  ;;  %v577_v10 = vshll.u32 %v4556_v1, 16 }
 0x20b   :  { %v2572_v17 = vadd.f32 %v4281_v33, %v2495_v8 }
 0x20d   :  { %v2718_v24 = vmul.f32 0.2, %v2572_v17  ;;  %vm2645_vm4 = vcmp.gt.f32.partialorder %v2572_v17, 0.0 }
 0x20e   :  { %v1933_v16 = vpop.f32.mrf.mxu2  ;;  %v809_v20 = vpop.f32.mrf.mxu0 }
 0x20f   :  { %v2379_v7 = vpop.f32.mrf.mxu3  ;;  %v2050_v18 = vadd.f32 %v1933_v16, %v1088_v5  ;;  %v1090_v11 = vpop.f32.mrf.mxu1  ;;  %v2791_v32 = vsel %vm2645_vm4, %v2572_v17, %v2718_v24  ;;  %v1704_v5 = vshll.u32 %v4561_v57, 16  ;;  %v579_v17 = vrot.slane %v577_v10, 1 }
 0x210   :  { %v1091_v28 = vadd.f32 %v1090_v11, %v809_v20  ;;  %v2167_v11 = vrot.slane %v4561_v57, 1 }
 0x211   :  { %v2496_v55 = vadd.f32 %v2379_v7, %v2050_v18  ;;  %848 = vmatmul.bf16.gmra.mxu0 %v564_v13  ;;  %v575_v7 = vor.u32 %v573_v4, %v571_v45  ;;  %v1702_v18 = vor.u32 %v1700_v14, %v1698_v48  ;;  %v1706_v20 = vrot.slane %v1704_v5, 1 }
 0x212   :  { %1129 = vmatmul.bf16.gmra.mxu1 %v4484_v22 }
 0x213   :  { %v2573_v25 = vadd.f32 %v4281_v33, %v2496_v55  ;;  %1975 = vmatmul.bf16.gmra.mxu2 %v1691_v23  ;;  %v580_v21 = vsel %vm304_vm0, %v575_v7, %v579_v17 }
 0x214   :  { %2421 = vmatmul.bf16.gmra.mxu3 %v2164_v15 }
 0x215   :  { %vm2646_vm5 = vcmp.gt.f32.partialorder %v2573_v25, 0.0  ;;  %v2719_v29 = vmul.f32 0.2, %v2573_v25 }
 0x216   :  { %v1936_v22 = vpop.f32.mrf.mxu2  ;;  %v811_v27 = vpop.f32.mrf.mxu0 }
 0x217   :  { %v2382_v30 = vpop.f32.mrf.mxu3  ;;  %v2792_v35 = vsel %vm2646_vm5, %v2573_v25, %v2719_v29  ;;  %v2051_v26 = vadd.f32 %v1936_v22, %v1091_v28  ;;  %v1092_v36 = vpop.f32.mrf.mxu1  ;;  %v1707_v29 = vsel %vm304_vm0, %v1702_v18, %v1706_v20  ;;  %v2168_v22 = vsel %vm2099_vm1, %v2165_v43, %v2167_v11 }
 0x218   :  { %v3650_v38 = vpack.c.bf16 %v2792_v35, %v2791_v32  ;;  %v1093_v40 = vadd.f32 %v1092_v36, %v811_v27  ;;  %v4579_v32 = vld [vmem:[%s4689_s2] ss:$0 sm:$0xff]  ;;  %v1708_v43 = vshrl.u32 %v4561_v57, 16 }
 0x219   :  { %v2497_v44 = vadd.f32 %v2382_v30, %v2051_v26  ;;  %v4585_v26 = vld [vmem:[%s4688_s0 + $0x118] sm:$0xff] }
 0x21a   :  { %3742 = vst [vmem:[%s4690_s3 + $0xb0] sm:$0xff] %v3650_v38   ;;  %v581_v38 = vshrl.u32 %v4556_v1, 16  ;;  %v585_v46 = vshll.u32 %v4585_v26, 16 }
 0x21b   :  { %v2574_v52 = vadd.f32 %v4281_v33, %v2497_v44 }
 0x21d   :  { %v2720_v61 = vmul.f32 0.2, %v2574_v52  ;;  %vm2647_vm6 = vcmp.gt.f32.partialorder %v2574_v52, 0.0 }
 0x21e   :  { %v1938_v51 = vpop.f32.mrf.mxu2  ;;  %v814_v56 = vpop.f32.mrf.mxu0 }
 0x21f   :  { %v2384_v41 = vpop.f32.mrf.mxu3  ;;  %v2052_v53 = vadd.f32 %v1938_v51, %v1093_v40  ;;  %v1095_v47 = vpop.f32.mrf.mxu1  ;;  %v2793_v6 = vsel %vm2647_vm6, %v2574_v52, %v2720_v61  ;;  %v587_v52 = vrot.slane %v585_v46, 1 }
 0x220   :  { %v1096_v54 = vadd.f32 %v1095_v47, %v814_v56 }
 0x221   :  { %v2498_v60 = vadd.f32 %v2384_v41, %v2052_v53  ;;  %853 = vmatmul.bf16.gmra.mxu0 %v572_v49  ;;  %v583_v41 = vor.u32 %v581_v38, %v579_v17  ;;  %v1710_v53 = vor.u32 %v1708_v43, %v1706_v20  ;;  %v103_v49 = vld [vmem:[%s4688_s0 + $0x120] sm:$0x3]  ;;  %v589_v17 = vshrl.u32 %v4585_v26, 16 }
 0x222   :  { %1134 = vmatmul.bf16.gmra.mxu1 %v4508_v58 }
 0x223   :  { %v2575_v63 = vadd.f32 %v4281_v33, %v2498_v60  ;;  %1980 = vmatmul.bf16.gmra.mxu2 %v1699_v59 }
 0x224   :  { %2426 = vmatmul.bf16.gmra.mxu3 %v2166_v50  ;;  %v1231_v50 = vld [vmem:[%s4688_s0 + $0x128] sm:$0x3] }
 0x225   :  { %vm2648_vm7 = vcmp.gt.f32.partialorder %v2575_v63, 0.0  ;;  %v2721_v2 = vmul.f32 0.2, %v2575_v63 }
 0x226   :  { %v1941_v58 = vpop.f32.mrf.mxu2  ;;  %v816_v0 = vpop.f32.mrf.mxu0 }
 0x227   :  { %v2387_v3 = vpop.f32.mrf.mxu3  ;;  %v2794_v62 = vsel %vm2648_vm7, %v2575_v63, %v2721_v2  ;;  %v2053_v8 = vadd.f32 %v1941_v58, %v1096_v54  ;;  %v1097_v9 = vpop.f32.mrf.mxu1  ;;  %v588_v58 = vsel %vm304_vm0, %v583_v41, %v587_v52 }
 0x228   :  { %v3655_v12 = vpack.c.bf16 %v2794_v62, %v2793_v6  ;;  %v1098_v13 = vadd.f32 %v1097_v9, %v816_v0  ;;  %v1394_v62 = vunpack.c.l.b16 %v1231_v50 }
 0x229   :  { %v2499_v16 = vadd.f32 %v2387_v3, %v2053_v8  ;;  %v266_v3 = vunpack.c.l.b16 %v103_v49 }
 0x22a   :  { %3743 = vst [vmem:[%s4690_s3 + $0xb8] sm:$0xff] %v3655_v12   ;;  %v4614_v14 = vpack.c.b16 %v1394_v62, %v1394_v62 }
 0x22b   :  { %v2576_v55 = vadd.f32 %v4281_v33, %v2499_v16  ;;  %v4612_v12 = vpack.c.b16 %v266_v3, %v266_v3 }
 0x22d   :  { %v2722_v31 = vmul.f32 0.2, %v2576_v55  ;;  %vm2649_vm8 = vcmp.gt.f32.partialorder %v2576_v55, 0.0  ;;  %v597_v49 = vshrl.u32 %v4612_v12, 16 }
 0x22e   :  { %v1943_v23 = vpop.f32.mrf.mxu2  ;;  %v819_v25 = vpop.f32.mrf.mxu0 }
 0x22f   :  { %v2389_v15 = vpop.f32.mrf.mxu3  ;;  %v2054_v24 = vadd.f32 %v1943_v23, %v1098_v13  ;;  %v1100_v28 = vpop.f32.mrf.mxu1  ;;  %v2795_v39 = vsel %vm2649_vm8, %v2576_v55, %v2722_v31  ;;  %v593_v23 = vshll.u32 %v4612_v12, 16 }
 0x230   :  { %v1101_v35 = vadd.f32 %v1100_v28, %v819_v25  ;;  %v591_v28 = vor.u32 %v589_v17, %v587_v52 }
 0x231   :  { %v2500_v30 = vadd.f32 %v2389_v15, %v2054_v24  ;;  %858 = vmatmul.bf16.gmra.mxu0 %v580_v21  ;;  %v1720_v24 = vshll.u32 %v4614_v14, 16  ;;  %v595_v21 = vrot.slane %v593_v23, 1 }
 0x232   :  { %1139 = vmatmul.bf16.gmra.mxu1 %v4532_v19  ;;  %v4590_v19 = vld [vmem:[%s4688_s0 + $0x120] sm:$0xff] }
 0x233   :  { %v2577_v33 = vadd.f32 %v4579_v32, %v2500_v30  ;;  %1985 = vmatmul.bf16.gmra.mxu2 %v1707_v29  ;;  %v1712_v40 = vshll.u32 %v4590_v19, 16  ;;  %v2169_v47 = vrot.slane %v4590_v19, 1  ;;  %v1716_v55 = vshrl.u32 %v4590_v19, 16 }
 0x234   :  { %2431 = vmatmul.bf16.gmra.mxu3 %v2168_v22  ;;  %v1722_v22 = vrot.slane %v1720_v24, 1  ;;  %v2171_v30 = vrot.slane %v4614_v14, 1  ;;  %v596_v38 = vsel %vm304_vm0, %v591_v28, %v595_v21 }
 0x235   :  { %vm2650_vm9 = vcmp.gt.f32.partialorder %v2577_v33, 0.0  ;;  %v2723_v27 = vmul.f32 0.2, %v2577_v33  ;;  %v1714_v56 = vrot.slane %v1712_v40, 1  ;;  %v2170_v6 = vsel %vm2099_vm1, %v2167_v11, %v2169_v47 }
 0x236   :  { %v1946_v36 = vpop.f32.mrf.mxu2  ;;  %v821_v34 = vpop.f32.mrf.mxu0 }
 0x237   :  { %v2392_v37 = vpop.f32.mrf.mxu3  ;;  %v2796_v42 = vsel %vm2650_vm9, %v2577_v33, %v2723_v27  ;;  %v2055_v44 = vadd.f32 %v1946_v36, %v1101_v35  ;;  %v1102_v45 = vpop.f32.mrf.mxu1  ;;  %v1715_v4 = vsel %vm304_vm0, %v1710_v53, %v1714_v56  ;;  %v1718_v29 = vor.u32 %v1716_v55, %v1714_v56 }
 0x238   :  { %v3660_v48 = vpack.c.bf16 %v2796_v42, %v2795_v39  ;;  %v1103_v59 = vadd.f32 %v1102_v45, %v821_v34  ;;  %v2172_v42 = vsel %vm2099_vm1, %v2169_v47, %v2171_v30 }
 0x239   :  { %v2501_v51 = vadd.f32 %v2392_v37, %v2055_v44  ;;  %v1723_v39 = vsel %vm304_vm0, %v1718_v29, %v1722_v22 }
 0x23a   :  { %3744 = vst [vmem:[%s4690_s3 + $0xc0] sm:$0xff] %v3660_v48  }
 0x23b   :  { %v2578_v63 = vadd.f32 %v4579_v32, %v2501_v51 }
 0x23d   :  { %v2724_v0 = vmul.f32 0.2, %v2578_v63  ;;  %vm2651_vm10 = vcmp.gt.f32.partialorder %v2578_v63, 0.0 }
 0x23e   :  { %v1948_v60 = vpop.f32.mrf.mxu2  ;;  %v824_v57 = vpop.f32.mrf.mxu0 }
 0x23f   :  { %v2394_v61 = vpop.f32.mrf.mxu3  ;;  %v2056_v54 = vadd.f32 %v1948_v60, %v1103_v59  ;;  %v1105_v2 = vpop.f32.mrf.mxu1  ;;  %v2797_v18 = vsel %vm2651_vm10, %v2578_v63, %v2724_v0  ;;  %v1724_v60 = vshrl.u32 %v4614_v14, 16 }
 0x240   :  { %v1106_v10 = vadd.f32 %v1105_v2, %v824_v57  ;;  %v599_v57 = vor.u32 %v597_v49, %v595_v21 }
 0x241   :  { %v2502_v8 = vadd.f32 %v2394_v61, %v2056_v54  ;;  %863 = vmatmul.bf16.gmra.mxu0 %v588_v58  ;;  %v1726_v62 = vor.u32 %v1724_v60, %v1722_v22 }
 0x242   :  { %1144 = vmatmul.bf16.gmra.mxu1 %v4556_v1 }
 0x243   :  { %v2579_v9 = vadd.f32 %v4579_v32, %v2502_v8  ;;  %1990 = vmatmul.bf16.gmra.mxu2 %v1715_v4 }
 0x244   :  { %2436 = vmatmul.bf16.gmra.mxu3 %v2170_v6 }
 0x245   :  { %vm2652_vm11 = vcmp.gt.f32.partialorder %v2579_v9, 0.0  ;;  %v2725_v5 = vmul.f32 0.2, %v2579_v9 }
 0x246   :  { %v1951_v16 = vpop.f32.mrf.mxu2  ;;  %v826_v11 = vpop.f32.mrf.mxu0 }
 0x247   :  { %v2397_v7 = vpop.f32.mrf.mxu3  ;;  %v2798_v20 = vsel %vm2652_vm11, %v2579_v9, %v2725_v5  ;;  %v2057_v1 = vadd.f32 %v1951_v16, %v1106_v10  ;;  %v1107_v13 = vpop.f32.mrf.mxu1 }
 0x248   :  { %v3665_v15 = vpack.c.bf16 %v2798_v20, %v2797_v18  ;;  %v1108_v31 = vadd.f32 %v1107_v13, %v826_v11 }
 0x249   :  { %v2503_v25 = vadd.f32 %v2397_v7, %v2057_v1 }
 0x24a   :  { %3745 = vst [vmem:[%s4690_s3 + $0xc8] sm:$0xff] %v3665_v15  }
 0x24b   :  { %v2580_v27 = vadd.f32 %v4579_v32, %v2503_v25 }
 0x24d   :  { %v2726_v34 = vmul.f32 0.2, %v2580_v27  ;;  %vm2653_vm12 = vcmp.gt.f32.partialorder %v2580_v27, 0.0 }
 0x24e   :  { %v1953_v33 = vpop.f32.mrf.mxu2  ;;  %v829_v19 = vpop.f32.mrf.mxu0 }
 0x24f   :  { %v2399_v35 = vpop.f32.mrf.mxu3  ;;  %v2058_v36 = vadd.f32 %v1953_v33, %v1108_v31  ;;  %v1110_v37 = vpop.f32.mrf.mxu1  ;;  %v2799_v51 = vsel %vm2653_vm12, %v2580_v27, %v2726_v34 }
 0x250   :  { %v1111_v46 = vadd.f32 %v1110_v37, %v829_v19 }
 0x251   :  { %v2504_v44 = vadd.f32 %v2399_v35, %v2058_v36  ;;  %868 = vmatmul.bf16.gmra.mxu0 %v596_v38 }
 0x252   :  { %1149 = vmatmul.bf16.gmra.mxu1 %v4585_v26  ;;  %v86_v26 = vld [vmem:[%s4688_s0 + $0x120] sm:$0x1] }
 0x253   :  { %v2581_v45 = vadd.f32 %v4579_v32, %v2504_v44  ;;  %1995 = vmatmul.bf16.gmra.mxu2 %v1723_v39  ;;  %v879_v59 = vunpack.c.l.b16 %v86_v26 }
 0x254   :  { %2441 = vmatmul.bf16.gmra.mxu3 %v2172_v42 }
 0x255   :  { %vm2654_vm13 = vcmp.gt.f32.partialorder %v2581_v45, 0.0  ;;  %v2727_v48 = vmul.f32 0.2, %v2581_v45  ;;  %v880_v2 = vpack.c.b16 %v879_v59, %v879_v59 }
 0x256   :  { %v1956_v43 = vpop.f32.mrf.mxu2  ;;  %v831_v53 = vpop.f32.mrf.mxu0 }
 0x257   :  { %v2402_v40 = vpop.f32.mrf.mxu3  ;;  %v2800_v41 = vsel %vm2654_vm13, %v2581_v45, %v2727_v48  ;;  %v2059_v52 = vadd.f32 %v1956_v43, %v1111_v46  ;;  %v1112_v56 = vpop.f32.mrf.mxu1 }
 0x258   :  { %v3670_v47 = vpack.c.bf16 %v2800_v41, %v2799_v51  ;;  %v1113_v61 = vadd.f32 %v1112_v56, %v831_v53 }
 0x259   :  { %v2505_v50 = vadd.f32 %v2402_v40, %v2059_v52 }
 0x25a   :  { %3746 = vst [vmem:[%s4690_s3 + $0xd0] sm:$0xff] %v3670_v47  }
 0x25b   :  { %v2582_v58 = vadd.f32 %v4579_v32, %v2505_v50 }
 0x25d   :  { %v2728_v0 = vmul.f32 0.2, %v2582_v58  ;;  %vm2655_vm0 = vcmp.gt.f32.partialorder %v2582_v58, 0.0 }
 0x25e   :  { %v1958_v63 = vpop.f32.mrf.mxu2  ;;  %v834_v4 = vpop.f32.mrf.mxu0 }
 0x25f   :  { %v2404_v54 = vpop.f32.mrf.mxu3  ;;  %v2060_v3 = vadd.f32 %v1958_v63, %v1113_v61  ;;  %v1115_v6 = vpop.f32.mrf.mxu1  ;;  %v2801_v16 = vsel %vm2655_vm0, %v2582_v58, %v2728_v0 }
 0x260   :  { %v1116_v10 = vadd.f32 %v1115_v6, %v834_v4 }
 0x261   :  { %v2506_v8 = vadd.f32 %v2404_v54, %v2060_v3  ;;  %873 = vmatmul.bf16.gmra.mxu0 %v599_v57 }
 0x262   :  { %1154 = vmatmul.bf16.gmra.mxu1 %v880_v2 }
 0x263   :  { %v2583_v9 = vadd.f32 %v4579_v32, %v2506_v8  ;;  %2000 = vmatmul.bf16.gmra.mxu2 %v1726_v62 }
 0x264   :  { %2446 = vmatmul.bf16.gmra.mxu3 %v2171_v30 }
 0x265   :  { %vm2656_vm1 = vcmp.gt.f32.partialorder %v2583_v9, 0.0  ;;  %v2729_v12 = vmul.f32 0.2, %v2583_v9 }
 0x266   :  { %v1961_v14 = vpop.f32.mrf.mxu2  ;;  %v836_v18 = vpop.f32.mrf.mxu0 }
 0x267   :  { %v2407_v5 = vpop.f32.mrf.mxu3  ;;  %v2802_v7 = vsel %vm2656_vm1, %v2583_v9, %v2729_v12  ;;  %v2061_v17 = vadd.f32 %v1961_v14, %v1116_v10  ;;  %v1117_v20 = vpop.f32.mrf.mxu1 }
 0x268   :  { %v3675_v1 = vpack.c.bf16 %v2802_v7, %v2801_v16  ;;  %v1118_v13 = vadd.f32 %v1117_v20, %v836_v18 }
 0x269   :  { %v2507_v11 = vadd.f32 %v2407_v5, %v2061_v17 }
 0x26a   :  { %3747 = vst [vmem:[%s4690_s3 + $0xd8] sm:$0xff] %v3675_v1  }
 0x26b   :  { %v2584_v55 = vadd.f32 %v4579_v32, %v2507_v11 }
 0x26d   :  { %v2730_v29 = vmul.f32 0.2, %v2584_v55  ;;  %vm2657_vm14 = vcmp.gt.f32.partialorder %v2584_v55, 0.0 }
 0x26e   :  { %v1963_v23 = vpop.f32.mrf.mxu2  ;;  %v839_v25 = vpop.f32.mrf.mxu0 }
 0x26f   :  { %v2409_v15 = vpop.f32.mrf.mxu3  ;;  %v2062_v24 = vadd.f32 %v1963_v23, %v1118_v13  ;;  %v1120_v28 = vpop.f32.mrf.mxu1  ;;  %v2803_v27 = vsel %vm2657_vm14, %v2584_v55, %v2730_v29 }
 0x270   :  { %v1121_v30 = vadd.f32 %v1120_v28, %v839_v25 }
 0x271   :  { %v2508_v21 = vadd.f32 %v2409_v15, %v2062_v24 }
 0x273   :  { %v2585_v22 = vadd.f32 %v4579_v32, %v2508_v21 }
 0x275   :  { %vm2658_vm15 = vcmp.gt.f32.partialorder %v2585_v22, 0.0  ;;  %v2731_v31 = vmul.f32 0.2, %v2585_v22 }
 0x276   :  { %v1966_v33 = vpop.f32.mrf.mxu2  ;;  %v841_v37 = vpop.f32.mrf.mxu0 }
 0x277   :  { %v2412_v35 = vpop.f32.mrf.mxu3  ;;  %v2804_v36 = vsel %vm2658_vm15, %v2585_v22, %v2731_v31  ;;  %v2063_v19 = vadd.f32 %v1966_v33, %v1121_v30  ;;  %v1122_v38 = vpop.f32.mrf.mxu1 }
 0x278   :  { %v3680_v39 = vpack.c.bf16 %v2804_v36, %v2803_v27  ;;  %v1123_v44 = vadd.f32 %v1122_v38, %v841_v37 }
 0x279   :  { %v2509_v42 = vadd.f32 %v2412_v35, %v2063_v19 }
 0x27a   :  { %3748 = vst [vmem:[%s4690_s3 + $0xe0] sm:$0xff] %v3680_v39  }
 0x27b   :  { %v2586_v46 = vadd.f32 %v4579_v32, %v2509_v42 }
 0x27d   :  { %v2732_v41 = vmul.f32 0.2, %v2586_v46  ;;  %vm2659_vm2 = vcmp.gt.f32.partialorder %v2586_v46, 0.0 }
 0x27e   :  { %v1968_v34 = vpop.f32.mrf.mxu2  ;;  %v844_v43 = vpop.f32.mrf.mxu0 }
 0x27f   :  { %v2414_v45 = vpop.f32.mrf.mxu3  ;;  %v2064_v48 = vadd.f32 %v1968_v34, %v1123_v44  ;;  %v1125_v40 = vpop.f32.mrf.mxu1  ;;  %v2805_v49 = vsel %vm2659_vm2, %v2586_v46, %v2732_v41 }
 0x280   :  { %v1126_v53 = vadd.f32 %v1125_v40, %v844_v43 }
 0x281   :  { %v2510_v51 = vadd.f32 %v2414_v45, %v2064_v48 }
 0x283   :  { %v2587_v52 = vadd.f32 %v4579_v32, %v2510_v51 }
 0x285   :  { %vm2660_vm3 = vcmp.gt.f32.partialorder %v2587_v52, 0.0  ;;  %v2733_v56 = vmul.f32 0.2, %v2587_v52 }
 0x286   :  { %v1971_v26 = vpop.f32.mrf.mxu2  ;;  %v846_v60 = vpop.f32.mrf.mxu0 }
 0x287   :  { %v2417_v47 = vpop.f32.mrf.mxu3  ;;  %v2806_v59 = vsel %vm2660_vm3, %v2587_v52, %v2733_v56  ;;  %v2065_v50 = vadd.f32 %v1971_v26, %v1126_v53  ;;  %v1127_v61 = vpop.f32.mrf.mxu1 }
 0x288   :  { %v3685_v63 = vpack.c.bf16 %v2806_v59, %v2805_v49  ;;  %v1128_v57 = vadd.f32 %v1127_v61, %v846_v60 }
 0x289   :  { %v2511_v54 = vadd.f32 %v2417_v47, %v2065_v50 }
 0x28a   :  { %3749 = vst [vmem:[%s4690_s3 + $0xe8] sm:$0xff] %v3685_v63  }
 0x28b   :  { %v2588_v3 = vadd.f32 %v4579_v32, %v2511_v54 }
 0x28d   :  { %v2734_v0 = vmul.f32 0.2, %v2588_v3  ;;  %vm2661_vm4 = vcmp.gt.f32.partialorder %v2588_v3, 0.0 }
 0x28e   :  { %v1973_v2 = vpop.f32.mrf.mxu2  ;;  %v849_v6 = vpop.f32.mrf.mxu0 }
 0x28f   :  { %v2419_v58 = vpop.f32.mrf.mxu3  ;;  %v2066_v4 = vadd.f32 %v1973_v2, %v1128_v57  ;;  %v1130_v62 = vpop.f32.mrf.mxu1  ;;  %v2807_v16 = vsel %vm2661_vm4, %v2588_v3, %v2734_v0 }
 0x290   :  { %v1131_v10 = vadd.f32 %v1130_v62, %v849_v6 }
 0x291   :  { %v2512_v8 = vadd.f32 %v2419_v58, %v2066_v4 }
 0x293   :  { %v2589_v9 = vadd.f32 %v4579_v32, %v2512_v8 }
 0x295   :  { %vm2662_vm5 = vcmp.gt.f32.partialorder %v2589_v9, 0.0  ;;  %v2735_v12 = vmul.f32 0.2, %v2589_v9 }
 0x296   :  { %v1976_v14 = vpop.f32.mrf.mxu2  ;;  %v851_v18 = vpop.f32.mrf.mxu0 }
 0x297   :  { %v2422_v5 = vpop.f32.mrf.mxu3  ;;  %v2808_v7 = vsel %vm2662_vm5, %v2589_v9, %v2735_v12  ;;  %v2067_v17 = vadd.f32 %v1976_v14, %v1131_v10  ;;  %v1132_v20 = vpop.f32.mrf.mxu1 }
 0x298   :  { %v3690_v1 = vpack.c.bf16 %v2808_v7, %v2807_v16  ;;  %v1133_v13 = vadd.f32 %v1132_v20, %v851_v18 }
 0x299   :  { %v2513_v11 = vadd.f32 %v2422_v5, %v2067_v17 }
 0x29a   :  { %3750 = vst [vmem:[%s4690_s3 + $0xf0] sm:$0xff] %v3690_v1  }
 0x29b   :  { %v2590_v55 = vadd.f32 %v4579_v32, %v2513_v11 }
 0x29d   :  { %v2736_v29 = vmul.f32 0.2, %v2590_v55  ;;  %vm2663_vm6 = vcmp.gt.f32.partialorder %v2590_v55, 0.0 }
 0x29e   :  { %v1978_v23 = vpop.f32.mrf.mxu2  ;;  %v854_v25 = vpop.f32.mrf.mxu0 }
 0x29f   :  { %v2424_v15 = vpop.f32.mrf.mxu3  ;;  %v2068_v24 = vadd.f32 %v1978_v23, %v1133_v13  ;;  %v1135_v28 = vpop.f32.mrf.mxu1  ;;  %v2809_v27 = vsel %vm2663_vm6, %v2590_v55, %v2736_v29 }
 0x2a0   :  { %v1136_v30 = vadd.f32 %v1135_v28, %v854_v25 }
 0x2a1   :  { %v2514_v21 = vadd.f32 %v2424_v15, %v2068_v24 }
 0x2a3   :  { %v2591_v22 = vadd.f32 %v4579_v32, %v2514_v21 }
 0x2a5   :  { %vm2664_vm7 = vcmp.gt.f32.partialorder %v2591_v22, 0.0  ;;  %v2737_v31 = vmul.f32 0.2, %v2591_v22 }
 0x2a6   :  { %v1981_v33 = vpop.f32.mrf.mxu2  ;;  %v856_v37 = vpop.f32.mrf.mxu0 }
 0x2a7   :  { %v2427_v35 = vpop.f32.mrf.mxu3  ;;  %v2810_v36 = vsel %vm2664_vm7, %v2591_v22, %v2737_v31  ;;  %v2069_v19 = vadd.f32 %v1981_v33, %v1136_v30  ;;  %v1137_v38 = vpop.f32.mrf.mxu1 }
 0x2a8   :  { %v3695_v39 = vpack.c.bf16 %v2810_v36, %v2809_v27  ;;  %v1138_v44 = vadd.f32 %v1137_v38, %v856_v37 }
 0x2a9   :  { %v2515_v42 = vadd.f32 %v2427_v35, %v2069_v19 }
 0x2aa   :  { %3751 = vst [vmem:[%s4690_s3 + $0xf8] sm:$0xff] %v3695_v39  }
 0x2ab   :  { %v2592_v46 = vadd.f32 %v4579_v32, %v2515_v42 }
 0x2ad   :  { %v2738_v41 = vmul.f32 0.2, %v2592_v46  ;;  %vm2665_vm8 = vcmp.gt.f32.partialorder %v2592_v46, 0.0 }
 0x2ae   :  { %v1983_v34 = vpop.f32.mrf.mxu2  ;;  %v859_v43 = vpop.f32.mrf.mxu0 }
 0x2af   :  { %v2429_v45 = vpop.f32.mrf.mxu3  ;;  %v2070_v48 = vadd.f32 %v1983_v34, %v1138_v44  ;;  %v1140_v40 = vpop.f32.mrf.mxu1  ;;  %v2811_v49 = vsel %vm2665_vm8, %v2592_v46, %v2738_v41 }
 0x2b0   :  { %v1141_v53 = vadd.f32 %v1140_v40, %v859_v43 }
 0x2b1   :  { %v2516_v51 = vadd.f32 %v2429_v45, %v2070_v48 }
 0x2b3   :  { %v2593_v52 = vadd.f32 %v4579_v32, %v2516_v51 }
 0x2b5   :  { %vm2666_vm9 = vcmp.gt.f32.partialorder %v2593_v52, 0.0  ;;  %v2739_v56 = vmul.f32 0.2, %v2593_v52 }
 0x2b6   :  { %v1986_v26 = vpop.f32.mrf.mxu2  ;;  %v861_v60 = vpop.f32.mrf.mxu0 }
 0x2b7   :  { %v2432_v47 = vpop.f32.mrf.mxu3  ;;  %v2812_v59 = vsel %vm2666_vm9, %v2593_v52, %v2739_v56  ;;  %v2071_v50 = vadd.f32 %v1986_v26, %v1141_v53  ;;  %v1142_v61 = vpop.f32.mrf.mxu1 }
 0x2b8   :  { %v3700_v63 = vpack.c.bf16 %v2812_v59, %v2811_v49  ;;  %v1143_v57 = vadd.f32 %v1142_v61, %v861_v60 }
 0x2b9   :  { %v2517_v54 = vadd.f32 %v2432_v47, %v2071_v50 }
 0x2ba   :  { %3752 = vst [vmem:[%s4690_s3 + $0x100] sm:$0xff] %v3700_v63  }
 0x2bb   :  { %v2594_v3 = vadd.f32 %v4579_v32, %v2517_v54 }
 0x2bd   :  { %v2740_v0 = vmul.f32 0.2, %v2594_v3  ;;  %vm2667_vm10 = vcmp.gt.f32.partialorder %v2594_v3, 0.0 }
 0x2be   :  { %v1988_v2 = vpop.f32.mrf.mxu2  ;;  %v864_v6 = vpop.f32.mrf.mxu0 }
 0x2bf   :  { %v2434_v58 = vpop.f32.mrf.mxu3  ;;  %v2072_v4 = vadd.f32 %v1988_v2, %v1143_v57  ;;  %v1145_v62 = vpop.f32.mrf.mxu1  ;;  %v2813_v16 = vsel %vm2667_vm10, %v2594_v3, %v2740_v0 }
 0x2c0   :  { %v1146_v10 = vadd.f32 %v1145_v62, %v864_v6 }
 0x2c1   :  { %v2518_v8 = vadd.f32 %v2434_v58, %v2072_v4 }
 0x2c3   :  { %v2595_v9 = vadd.f32 %v4579_v32, %v2518_v8 }
 0x2c5   :  { %vm2668_vm11 = vcmp.gt.f32.partialorder %v2595_v9, 0.0  ;;  %v2741_v12 = vmul.f32 0.2, %v2595_v9 }
 0x2c6   :  { %v1991_v14 = vpop.f32.mrf.mxu2  ;;  %v866_v18 = vpop.f32.mrf.mxu0 }
 0x2c7   :  { %v2437_v5 = vpop.f32.mrf.mxu3  ;;  %v2814_v7 = vsel %vm2668_vm11, %v2595_v9, %v2741_v12  ;;  %v2073_v17 = vadd.f32 %v1991_v14, %v1146_v10  ;;  %v1147_v20 = vpop.f32.mrf.mxu1 }
 0x2c8   :  { %v3705_v1 = vpack.c.bf16 %v2814_v7, %v2813_v16  ;;  %v1148_v13 = vadd.f32 %v1147_v20, %v866_v18 }
 0x2c9   :  { %v2519_v11 = vadd.f32 %v2437_v5, %v2073_v17 }
 0x2ca   :  { %3753 = vst [vmem:[%s4690_s3 + $0x108] sm:$0xff] %v3705_v1  }
 0x2cb   :  { %v2596_v55 = vadd.f32 %v4579_v32, %v2519_v11 }
 0x2cd   :  { %v2742_v29 = vmul.f32 0.2, %v2596_v55  ;;  %vm2669_vm12 = vcmp.gt.f32.partialorder %v2596_v55, 0.0 }
 0x2ce   :  { %v1993_v23 = vpop.f32.mrf.mxu2  ;;  %v869_v25 = vpop.f32.mrf.mxu0 }
 0x2cf   :  { %v2439_v15 = vpop.f32.mrf.mxu3  ;;  %v2074_v24 = vadd.f32 %v1993_v23, %v1148_v13  ;;  %v1150_v28 = vpop.f32.mrf.mxu1  ;;  %v2815_v27 = vsel %vm2669_vm12, %v2596_v55, %v2742_v29 }
 0x2d0   :  { %v1151_v30 = vadd.f32 %v1150_v28, %v869_v25 }
 0x2d1   :  { %v2520_v21 = vadd.f32 %v2439_v15, %v2074_v24 }
 0x2d3   :  { %v2597_v22 = vadd.f32 %v4579_v32, %v2520_v21 }
 0x2d5   :  { %vm2670_vm13 = vcmp.gt.f32.partialorder %v2597_v22, 0.0  ;;  %v2743_v31 = vmul.f32 0.2, %v2597_v22 }
 0x2d6   :  { %v1996_v33 = vpop.f32.mrf.mxu2  ;;  %v871_v37 = vpop.f32.mrf.mxu0 }
 0x2d7   :  { %v2442_v35 = vpop.f32.mrf.mxu3  ;;  %v2816_v36 = vsel %vm2670_vm13, %v2597_v22, %v2743_v31  ;;  %v2075_v19 = vadd.f32 %v1996_v33, %v1151_v30  ;;  %v1152_v38 = vpop.f32.mrf.mxu1 }
 0x2d8   :  { %v3710_v39 = vpack.c.bf16 %v2816_v36, %v2815_v27  ;;  %v1153_v44 = vadd.f32 %v1152_v38, %v871_v37 }
 0x2d9   :  { %v2521_v42 = vadd.f32 %v2442_v35, %v2075_v19 }
 0x2da   :  { %3754 = vst [vmem:[%s4690_s3 + $0x110] sm:$0xff] %v3710_v39  }
 0x2db   :  { %v2598_v46 = vadd.f32 %v4579_v32, %v2521_v42 }
 0x2dd   :  { %v2744_v41 = vmul.f32 0.2, %v2598_v46  ;;  %vm2671_vm0 = vcmp.gt.f32.partialorder %v2598_v46, 0.0 }
 0x2de   :  { %v1998_v34 = vpop.f32.mrf.mxu2  ;;  %v874_v43 = vpop.f32.mrf.mxu0 }
 0x2df   :  { %v2444_v45 = vpop.f32.mrf.mxu3  ;;  %v2076_v48 = vadd.f32 %v1998_v34, %v1153_v44  ;;  %v1155_v40 = vpop.f32.mrf.mxu1  ;;  %v2817_v49 = vsel %vm2671_vm0, %v2598_v46, %v2744_v41 }
 0x2e0   :  { %v1156_v53 = vadd.f32 %v1155_v40, %v874_v43 }
 0x2e1   :  { %v2522_v51 = vadd.f32 %v2444_v45, %v2076_v48 }
 0x2e3   :  { %v2599_v52 = vadd.f32 %v4579_v32, %v2522_v51 }
 0x2e5   :  { %vm2672_vm1 = vcmp.gt.f32.partialorder %v2599_v52, 0.0  ;;  %v2745_v56 = vmul.f32 0.2, %v2599_v52 }
 0x2e6   :  { %v2001_v26 = vpop.f32.mrf.mxu2  ;;  %v876_v60 = vpop.f32.mrf.mxu0 }
 0x2e7   :  { %v2447_v47 = vpop.f32.mrf.mxu3  ;;  %v2818_v59 = vsel %vm2672_vm1, %v2599_v52, %v2745_v56  ;;  %v2077_v50 = vadd.f32 %v2001_v26, %v1156_v53  ;;  %v1157_v61 = vpop.f32.mrf.mxu1 }
 0x2e8   :  { %v3715_v63 = vpack.c.bf16 %v2818_v59, %v2817_v49 }
 0x2e9   :  { %v2523_v54 = vadd.f32 %v2447_v47, %v2077_v50 }
 0x2ea   :  { %3755 = vst [vmem:[%s4690_s3 + $0x118] sm:$0xff] %v3715_v63  }
 0x2eb   :  { %v2600_v57 = vadd.f32 %v4579_v32, %v2523_v54 }
 0x2ed   :  { %vm2673_vm14 = vcmp.gt.f32.partialorder %v2600_v57, 0.0  ;;  %v2746_v2 = vmul.f32 0.2, %v2600_v57 }
 0x2ee   :  { %v2003_v58 = vpop.f32.mrf.mxu2 }
 0x2ef   :  { %v2449_v3 = vpop.f32.mrf.mxu3  ;;  %v2819_v4 = vsel %vm2673_vm14, %v2600_v57, %v2746_v2 }
 0x2f0   :  { %v2892_v6 = vpack.c.bf16 %v2819_v4, %v2819_v4 }
 0x2f2   :  { %2965 = vst [vmem:[%s4690_s3 + $0x120] sm:$0x1] %v2892_v6 }

// kernel: discriminator_forward.4
= control target key start
LH: loop header
LB: loop body
LE: loop exit
PB: predicated region body
PF: predicated region fallthrough
CT: control target
= control target key end

     0   :  { %v1830_v33 = vmov 0   ;;  %vm131_vm0 = vsmask.f32 7424  ;;  %vm808_vm1 = vcmask 1046528   ;;  %vm1164_vm2 = vcmask 1041408   ;;  %s2524_s1 = inlined_call_operand.vmem [shape: bf16[4,128,128], index: 1, kind: input, shape index: {}]   ;;  %s2525_s0 = inlined_call_operand.vmem [shape: bf16[176,128], index: 0, kind: input, shape index: {}]   ;;  %s2526_s5 = inlined_call_operand.vmem [shape: f32[162,1], index: 5, kind: input, shape index: {}]   ;;  %s2527_s2 = inlined_call_operand.vmem [shape: f32[1,128], index: 2, kind: input, shape index: {}]   ;;  %s2528_s3 = inlined_call_operand.vmem [shape: f32[1,128], index: 3, kind: input, shape index: {}]   ;;  %s2529_s4 = inlined_call_operand.vmem [shape: f32[1,128], index: 4, kind: input, shape index: {}]   ;;  %s2530_s6 = inlined_call_operand.vmem [shape: bf16[162,128], index: 6, kind: output, shape index: {}]  }
   0x1   :  { %v1733_v0 = vld [vmem:[%s2524_s1 + $0x78] sm:$0xff]  ;;  %v1732_v4 = vld [vmem:[%s2524_s1 + $0x70] sm:$0xff]  ;;  %v1731_v8 = vld [vmem:[%s2524_s1 + $0x68] sm:$0xff]  ;;  %1819 = vset.pattern.permute.xlu0 %v1830_v33  ;;  %1820 = vset.pattern.permute.xlu1 %v1830_v33 }
   0x2   :  { %v1725_v1 = vld [vmem:[%s2524_s1 + $0x38] sm:$0xff]  ;;  %278 = vmatpush.bf16.msra.mxu0 %v1733_v0  ;;  %v1724_v5 = vld [vmem:[%s2524_s1 + $0x30] sm:$0xff]  ;;  %v1723_v9 = vld [vmem:[%s2524_s1 + $0x28] sm:$0xff]  ;;  %1821 = vset.pattern.permute.xlu2 %v1830_v33 }
   0x3   :  { %v1750_v2 = vld [vmem:[%s2524_s1 + $0xb8] sm:$0xff]  ;;  %403 = vmatpush.bf16.msra.mxu1 %v1725_v1  ;;  %v1749_v6 = vld [vmem:[%s2524_s1 + $0xb0] sm:$0xff]  ;;  %v1748_v10 = vld [vmem:[%s2524_s1 + $0xa8] sm:$0xff] }
   0x4   :  { %v1758_v3 = vld [vmem:[%s2524_s1 + $0xf8] sm:$0xff]  ;;  %703 = vmatpush.bf16.msra.mxu2 %v1750_v2  ;;  %v1757_v7 = vld [vmem:[%s2524_s1 + $0xf0] sm:$0xff]  ;;  %v1756_v11 = vld [vmem:[%s2524_s1 + $0xe8] sm:$0xff] }
   0x5   :  { %889 = vmatpush.bf16.msra.mxu3 %v1758_v3  ;;  %v1730_v12 = vld [vmem:[%s2524_s1 + $0x60] sm:$0xff]  ;;  %v1827_v17 = vld [vmem:[%s2525_s0 + $0x4] sm:$0xf0]  ;;  %v1729_v18 = vld [vmem:[%s2524_s1 + $0x58] sm:$0xff] }
   0x6   :  { %279 = vmatpush.bf16.msra.mxu0 %v1732_v4  ;;  %v1722_v13 = vld [vmem:[%s2524_s1 + $0x20] sm:$0xff]  ;;  %v1721_v19 = vld [vmem:[%s2524_s1 + $0x18] sm:$0xff]  ;;  %v1728_v24 = vld [vmem:[%s2524_s1 + $0x50] sm:$0xff] }
   0x7   :  { %404 = vmatpush.bf16.msra.mxu1 %v1724_v5  ;;  %v1747_v14 = vld [vmem:[%s2524_s1 + $0xa0] sm:$0xff]  ;;  %v1746_v21 = vld [vmem:[%s2524_s1 + $0x98] sm:$0xff]  ;;  %v1720_v25 = vld [vmem:[%s2524_s1 + $0x10] sm:$0xff] }
   0x8   :  { %704 = vmatpush.bf16.msra.mxu2 %v1749_v6  ;;  %v1755_v15 = vld [vmem:[%s2524_s1 + $0xe0] sm:$0xff]  ;;  %v1754_v22 = vld [vmem:[%s2524_s1 + $0xd8] sm:$0xff]  ;;  %v1949_v26 = vld [vmem:[%s2525_s0 + $0x8] sm:$0xff] }
   0x9   :  { %890 = vmatpush.bf16.msra.mxu3 %v1757_v7  ;;  %v466_v16 = vld [vmem:[%s2525_s0 + $0x4] sm:$0xff]   ;;  %v1745_v29 = vld [vmem:[%s2524_s1 + $0x90] sm:$0xff]  ;;  %v140_v38 = vshll.u32 %v1949_v26, 16  ;;  %v144_v62 = vshrl.u32 %v1949_v26, 16  ;;  %v1001_v2 = vld [vmem:[%s2526_s5 + $0x18] sm:$0xff] }
   0xa   :  { %280 = vmatpush.bf16.msra.mxu0 %v1731_v8  ;;  %v1929_v20 = vld [vmem:[%s2525_s0] sm:$0xff]  ;;  %v1753_v30 = vld [vmem:[%s2524_s1 + $0xd0] sm:$0xff]  ;;  %v560_v32 = vshll.u32 %v466_v16, 16  ;;  %v1727_v34 = vld [vmem:[%s2524_s1 + $0x48] sm:$0xff]  ;;  %v558_v41 = vshrl.u32 %v466_v16, 16 }
   0xb   :  { %405 = vmatpush.bf16.msra.mxu1 %v1723_v9  ;;  %v1828_v23 = vld [vmem:[%s2525_s0 + $0x4] sm:$0xe]  ;;  %v135_v27 = vshll.u32 %v1929_v20, 16  ;;  %v1964_v31 = vld [vmem:[%s2525_s0 + $0xc] sm:$0xff]  ;;  %v133_v36 = vshrl.u32 %v1929_v20, 16  ;;  %v142_v48 = vrot.slane %v140_v38, 1 }
   0xc   :  { %705 = vmatpush.bf16.msra.mxu2 %v1748_v10  ;;  %v998_v28 = vld [vmem:[%s2526_s5] sm:$0xff]  ;;  %v1719_v35 = vld [vmem:[%s2524_s1 + $0x8] sm:$0xff]  ;;  %v562_v42 = vrot.slane %v560_v32, 1  ;;  %v565_v43 = vshll.u32 %v1964_v31, 16  ;;  %v1829_v44 = vor.u32 %v1828_v23, %v1827_v17  ;;  %v810_v55 = vrot.slane %v1964_v31, 1  ;;  %v1710_v59 = vld [vmem:[%s2525_s0 + $0x10] sm:$0xff] }
   0xd   :  { %891 = vmatpush.bf16.msra.mxu3 %v1756_v11  ;;  %1021 = vperm.xlu0 %1819, %v998_v28   ;;  %v137_v37 = vrot.slane %v135_v27, 1  ;;  %v1744_v39 = vld [vmem:[%s2524_s1 + $0x88] sm:$0xff]  ;;  %v1726_v45 = vld [vmem:[%s2524_s1 + $0x40] sm:$0xff]  ;;  %v1000_v60 = vld [vmem:[%s2526_s5 + $0x10] sm:$0xff]  ;;  %v148_v63 = vshll.u32 %v1710_v59, 16  ;;  %v569_v0 = vshrl.u32 %v1964_v31, 16  ;;  %v146_v3 = vor.u32 %v144_v62, %v142_v48 }
   0xe   :  { %281 = vmatpush.bf16.msra.mxu0 %v1730_v12  ;;  %v1752_v40 = vld [vmem:[%s2524_s1 + $0xc8] sm:$0xff]  ;;  %v1718_v46 = vld [vmem:[%s2524_s1] sm:$0xff]  ;;  %v563_v52 = vor.u32 %v562_v42, %v558_v41  ;;  %v567_v53 = vrot.slane %v565_v43, 1  ;;  %v809_v54 = vrot.slane %v1829_v44, 1  ;;  %v1735_v61 = vld [vmem:[%s2525_s0 + $0x14] sm:$0xff]  ;;  %1031 = vperm.xlu1 %1820, %v1000_v60  }
   0xf   :  { %406 = vmatpush.bf16.msra.mxu1 %v1722_v13  ;;  %v138_v47 = vor.u32 %v137_v37, %v133_v36  ;;  %v999_v49 = vld [vmem:[%s2526_s5 + $0x8] sm:$0xff]  ;;  %v1743_v50 = vld [vmem:[%s2524_s1 + $0x80] sm:$0xff]  ;;  %v573_v1 = vshll.u32 %v1735_v61, 16  ;;  %v150_v4 = vrot.slane %v148_v63, 1  ;;  %v812_v7 = vrot.slane %v1735_v61, 1  ;;  %v1711_v11 = vld [vmem:[%s2525_s0 + $0x18] sm:$0xff] }
  0x10   :  { %706 = vmatpush.bf16.msra.mxu2 %v1747_v14  ;;  %v1751_v51 = vld [vmem:[%s2524_s1 + $0xc0] sm:$0xff]  ;;  %v568_v57 = vsel %vm131_vm0, %v563_v52, %v567_v53  ;;  %v811_v58 = vsel %vm808_vm1, %v809_v54, %v810_v55  ;;  %v571_v5 = vor.u32 %v569_v0, %v567_v53  ;;  %v152_v13 = vshrl.u32 %v1710_v59, 16  ;;  %v1005_v28 = vld [vmem:[%s2526_s5 + $0x38] sm:$0xff]  ;;  %v1713_v42 = vld [vmem:[%s2525_s0 + $0x28] sm:$0xff] }
  0x11   :  { %892 = vmatpush.bf16.msra.mxu3 %v1755_v15  ;;  %v143_v56 = vsel %vm131_vm0, %v138_v47, %v142_v48  ;;  %v575_v6 = vrot.slane %v573_v1, 1  ;;  %v151_v8 = vsel %vm131_vm0, %v146_v3, %v150_v4  ;;  %v813_v10 = vsel %vm808_vm1, %v810_v55, %v812_v7  ;;  %v1736_v12 = vld [vmem:[%s2525_s0 + $0x1c] sm:$0xff]  ;;  %v1003_v43 = vld [vmem:[%s2526_s5 + $0x28] sm:$0xff] }
  0x12   :  { %282 = vmatpush.bf16.msra.mxu0 %v1729_v18  ;;  %v156_v14 = vshll.u32 %v1711_v11, 16  ;;  %v577_v15 = vshrl.u32 %v1735_v61, 16  ;;  %v581_v16 = vshll.u32 %v1736_v12, 16  ;;  %v154_v17 = vor.u32 %v152_v13, %v150_v4  ;;  %v1002_v27 = vld [vmem:[%s2526_s5 + $0x20] sm:$0xff]  ;;  %v1007_v44 = vld [vmem:[%s2526_s5 + $0x48] sm:$0xff]  ;;  %v1739_v61 = vld [vmem:[%s2525_s0 + $0x34] sm:$0xff] }
  0x13   :  { %407 = vmatpush.bf16.msra.mxu1 %v1721_v19  ;;  %v576_v9 = vsel %vm131_vm0, %v571_v5, %v575_v6  ;;  %1041 = vperm.xlu2 %1821, %v1002_v27   ;;  %v585_v32 = vshrl.u32 %v1736_v12, 16  ;;  %v172_v47 = vshll.u32 %v1713_v42, 16  ;;  %v1006_v60 = vld [vmem:[%s2526_s5 + $0x40] sm:$0xff]  ;;  %v176_v62 = vshrl.u32 %v1713_v42, 16 }
  0x14   :  { %707 = vmatpush.bf16.msra.mxu2 %v1746_v21  ;;  %v158_v18 = vrot.slane %v156_v14, 1  ;;  %v579_v19 = vor.u32 %v577_v15, %v575_v6  ;;  %v814_v21 = vrot.slane %v1736_v12, 1  ;;  %v605_v1 = vshll.u32 %v1739_v61, 16  ;;  %v1011_v12 = vld [vmem:[%s2526_s5 + $0x68] sm:$0xff]  ;;  %v1740_v13 = vld [vmem:[%s2525_s0 + $0x3c] sm:$0xff] }
  0x15   :  { %893 = vmatpush.bf16.msra.mxu3 %v1754_v22  ;;  %1026 = vperm.xlu0 %1819, %v999_v49   ;;  %v820_v6 = vrot.slane %v1739_v61, 1  ;;  %v1014_v27 = vld [vmem:[%s2526_s5 + $0x80] sm:$0xff] }
  0x16   :  { %283 = vmatpush.bf16.msra.mxu0 %v1728_v24  ;;  %1036 = vperm.xlu1 %1820, %v1001_v2   ;;  %v159_v22 = vsel %vm131_vm0, %v154_v17, %v158_v18  ;;  %v815_v24 = vsel %vm808_vm1, %v812_v7, %v814_v21  ;;  %v607_v5 = vrot.slane %v605_v1, 1  ;;  %v613_v17 = vshll.u32 %v1740_v13, 16 }
  0x17   :  { %408 = vmatpush.bf16.msra.mxu1 %v1720_v25  ;;  %v1712_v25 = vld [vmem:[%s2525_s0 + $0x20] sm:$0xff] }
  0x18   :  { %708 = vmatpush.bf16.msra.mxu2 %v1745_v29  ;;  %v1737_v29 = vld [vmem:[%s2525_s0 + $0x24] sm:$0xff]  ;;  %v164_v31 = vshll.u32 %v1712_v25, 16 }
  0x19   :  { %894 = vmatpush.bf16.msra.mxu3 %v1753_v30  ;;  %v160_v30 = vshrl.u32 %v1711_v11, 16  ;;  %v589_v33 = vshll.u32 %v1737_v29, 16  ;;  %v816_v38 = vrot.slane %v1737_v29, 1  ;;  %v593_v48 = vshrl.u32 %v1737_v29, 16  ;;  %v1741_v29 = vld [vmem:[%s2525_s0 + $0x44] sm:$0xff] }
  0x1a   :  { %284 = vmatpush.bf16.msra.mxu0 %v1727_v34 }
  0x1b   :  { %409 = vmatpush.bf16.msra.mxu1 %v1719_v35  ;;  %v162_v34 = vor.u32 %v160_v30, %v158_v18  ;;  %v166_v35 = vrot.slane %v164_v31, 1  ;;  %v591_v37 = vrot.slane %v589_v33, 1  ;;  %v817_v41 = vsel %vm808_vm1, %v814_v21, %v816_v38  ;;  %1046 = vperm.xlu2 %1821, %v1003_v43   ;;  %v1013_v18 = vld [vmem:[%s2526_s5 + $0x78] sm:$0xff]  ;;  %v1016_v30 = vld [vmem:[%s2526_s5 + $0x90] sm:$0xff] }
  0x1c   :  { %709 = vmatpush.bf16.msra.mxu2 %v1744_v39  ;;  %v617_v33 = vshrl.u32 %v1740_v13, 16 }
  0x1d   :  { %895 = vmatpush.bf16.msra.mxu3 %v1752_v40  ;;  %v167_v39 = vsel %vm131_vm0, %v162_v34, %v166_v35  ;;  %v595_v52 = vor.u32 %v593_v48, %v591_v37  ;;  %v621_v34 = vshll.u32 %v1741_v29, 16 }
  0x1e   :  { %285 = vmatpush.bf16.msra.mxu0 %v1726_v45  ;;  %1056 = vperm.xlu1 %1820, %v1005_v28   ;;  %v1738_v45 = vld [vmem:[%s2525_s0 + $0x2c] sm:$0xff]  ;;  %v1716_v28 = vld [vmem:[%s2525_s0 + $0x40] sm:$0xff] }
  0x1f   :  { %410 = vmatpush.bf16.msra.mxu1 %v1718_v46  ;;  %v168_v46 = vshrl.u32 %v1712_v25, 16  ;;  %v597_v49 = vshll.u32 %v1738_v45, 16  ;;  %v818_v54 = vrot.slane %v1738_v45, 1  ;;  %v601_v0 = vshrl.u32 %v1738_v45, 16  ;;  %v1012_v45 = vld [vmem:[%s2526_s5 + $0x70] sm:$0xff] }
  0x20   :  { %710 = vmatpush.bf16.msra.mxu2 %v1743_v50  ;;  %v200_v48 = vshrl.u32 %v1716_v28, 16 }
  0x21   :  { %896 = vmatpush.bf16.msra.mxu3 %v1751_v51  ;;  %286 = vmatmul.bf16.vlgmr.msra.gmra.mxu0 %v143_v56  ;;  %v170_v50 = vor.u32 %v168_v46, %v166_v35  ;;  %v174_v51 = vrot.slane %v172_v47, 1  ;;  %v599_v53 = vrot.slane %v597_v49, 1  ;;  %v1017_v35 = vld [vmem:[%s2526_s5 + $0x98] sm:$0xff]  ;;  %v1717_v46 = vld [vmem:[%s2525_s0 + $0x48] sm:$0xff] }
  0x22   :  { %411 = vmatmul.bf16.vlgmr.msra.gmra.mxu1 %v1929_v20  ;;  %v583_v20 = vrot.slane %v581_v16, 1  ;;  %v609_v16 = vshrl.u32 %v1739_v61, 16  ;;  %v1742_v47 = vld [vmem:[%s2525_s0 + $0x4c] sm:$0xff]  ;;  %v204_v49 = vshll.u32 %v1717_v46, 16 }
  0x23   :  { %711 = vmatmul.bf16.vlgmr.msra.gmra.mxu2 %v568_v57  ;;  %v175_v55 = vsel %vm131_vm0, %v170_v50, %v174_v51  ;;  %v600_v56 = vsel %vm131_vm0, %v595_v52, %v599_v53  ;;  %v819_v57 = vsel %vm808_vm1, %v816_v38, %v818_v54  ;;  %1061 = vperm.xlu2 %1821, %v1006_v60   ;;  %v625_v50 = vshrl.u32 %v1741_v29, 16  ;;  %v1015_v52 = vld [vmem:[%s2526_s5 + $0x88] sm:$0xff] }
  0x24   :  { %897 = vmatmul.bf16.vlgmr.msra.gmra.mxu3 %v811_v58  ;;  %v584_v23 = vsel %vm131_vm0, %v579_v19, %v583_v20  ;;  %v587_v36 = vor.u32 %v585_v32, %v583_v20  ;;  %v1714_v58 = vld [vmem:[%s2525_s0 + $0x30] sm:$0xff]  ;;  %v178_v2 = vor.u32 %v176_v62, %v174_v51  ;;  %v603_v4 = vor.u32 %v601_v0, %v599_v53 }
  0x25   :  { %v180_v63 = vshll.u32 %v1714_v58, 16  ;;  %v184_v14 = vshrl.u32 %v1714_v58, 16  ;;  %v611_v21 = vor.u32 %v609_v16, %v607_v5  ;;  %v196_v32 = vshll.u32 %v1716_v28, 16 }
  0x26   :  { %v592_v40 = vsel %vm131_vm0, %v587_v36, %v591_v37  ;;  %v1009_v36 = vld [vmem:[%s2526_s5 + $0x58] sm:$0xff]  ;;  %v629_v51 = vshll.u32 %v1742_v47, 16  ;;  %v633_v16 = vshrl.u32 %v1742_v47, 16 }
  0x27   :  { %v182_v3 = vrot.slane %v180_v63, 1  ;;  %v198_v38 = vrot.slane %v196_v32, 1 }
  0x29   :  { %v183_v7 = vsel %vm131_vm0, %v178_v2, %v182_v3  ;;  %v186_v19 = vor.u32 %v184_v14, %v182_v3  ;;  %v202_v53 = vor.u32 %v200_v48, %v198_v38 }
  0x2b   :  { %1076 = vperm.xlu2 %1821, %v1009_v36  }
  0x31   :  { %291 = vmatmul.bf16.gmra.mxu0 %v151_v8  ;;  %v608_v8 = vsel %vm131_vm0, %v603_v4, %v607_v5  ;;  %v1018_v4 = vld [vmem:[%s2526_s5 + $0xa0] sm:$0x3] }
  0x32   :  { %416 = vmatmul.bf16.gmra.mxu1 %v1949_v26  ;;  %v1004_v26 = vld [vmem:[%s2526_s5 + $0x30] sm:$0xff] }
  0x33   :  { %716 = vmatmul.bf16.gmra.mxu2 %v576_v9  ;;  %1051 = vperm.xlu0 %1819, %v1004_v26   ;;  %v821_v9 = vsel %vm808_vm1, %v818_v54, %v820_v6  ;;  %v206_v54 = vrot.slane %v204_v49, 1 }
  0x34   :  { %902 = vmatmul.bf16.gmra.mxu3 %v813_v10  ;;  %v1715_v10 = vld [vmem:[%s2525_s0 + $0x38] sm:$0xff]  ;;  %1091 = vperm.xlu2 %1821, %v1012_v45  }
  0x35   :  { %v188_v15 = vshll.u32 %v1715_v10, 16  ;;  %v192_v31 = vshrl.u32 %v1715_v10, 16  ;;  %v207_v62 = vsel %vm131_vm0, %v202_v53, %v206_v54 }
  0x37   :  { %v190_v20 = vrot.slane %v188_v15, 1 }
  0x39   :  { %v194_v37 = vor.u32 %v192_v31, %v190_v20 }
  0x3b   :  { %1066 = vperm.xlu0 %1819, %v1007_v44  }
  0x3c   :  { %1106 = vperm.xlu2 %1821, %v1015_v52  }
  0x41   :  { %296 = vmatmul.bf16.gmra.mxu0 %v159_v22  ;;  %v615_v22 = vrot.slane %v613_v17, 1 }
  0x42   :  { %421 = vmatmul.bf16.gmra.mxu1 %v1710_v59  ;;  %v1008_v59 = vld [vmem:[%s2526_s5 + $0x50] sm:$0xff] }
  0x43   :  { %721 = vmatmul.bf16.gmra.mxu2 %v584_v23  ;;  %1071 = vperm.xlu1 %1820, %v1008_v59   ;;  %v822_v23 = vrot.slane %v1740_v13, 1  ;;  %v486_v59 = vld [vmem:[%s2525_s0 + $0x54] sm:$0x3] }
  0x44   :  { %907 = vmatmul.bf16.gmra.mxu3 %v815_v24  ;;  %v191_v24 = vsel %vm131_vm0, %v186_v19, %v190_v20  ;;  %v545_v3 = vunpack.c.l.b16 %v486_v59  ;;  %1121 = vperm.xlu2 %1821, %v1018_v4  }
  0x45   :  { %v823_v26 = vsel %vm808_vm1, %v820_v6, %v822_v23 }
  0x46   :  { %v2139_v6 = vpack.c.b16 %v545_v3, %v545_v3 }
  0x48   :  { %v637_v17 = vshll.u32 %v2139_v6, 16  ;;  %v641_v53 = vshrl.u32 %v2139_v6, 16 }
  0x4b   :  { %1086 = vperm.xlu1 %1820, %v1011_v12   ;;  %v208_v12 = vshrl.u32 %v1717_v46, 16 }
  0x4d   :  { %v210_v19 = vor.u32 %v208_v12, %v206_v54 }
  0x51   :  { %301 = vmatmul.bf16.gmra.mxu0 %v167_v39  ;;  %v619_v39 = vor.u32 %v617_v33, %v615_v22 }
  0x52   :  { %426 = vmatmul.bf16.gmra.mxu1 %v1711_v11  ;;  %v1010_v11 = vld [vmem:[%s2526_s5 + $0x60] sm:$0xff] }
  0x53   :  { %726 = vmatmul.bf16.gmra.mxu2 %v592_v40  ;;  %1081 = vperm.xlu0 %1819, %v1010_v11   ;;  %v623_v40 = vrot.slane %v621_v34, 1 }
  0x54   :  { %912 = vmatmul.bf16.gmra.mxu3 %v817_v41  ;;  %1101 = vperm.xlu1 %1820, %v1014_v27   ;;  %v824_v41 = vrot.slane %v1741_v29, 1 }
  0x55   :  { %v624_v43 = vsel %vm131_vm0, %v619_v39, %v623_v40 }
  0x56   :  { %v825_v44 = vsel %vm808_vm1, %v822_v23, %v824_v41  ;;  %v828_v23 = vrot.slane %v2139_v6, 1 }
  0x5b   :  { %1096 = vperm.xlu0 %1819, %v1013_v18  }
  0x5c   :  { %1116 = vperm.xlu1 %1820, %v1017_v35  }
  0x61   :  { %306 = vmatmul.bf16.gmra.mxu0 %v175_v55  ;;  %v627_v55 = vor.u32 %v625_v50, %v623_v40 }
  0x62   :  { %431 = vmatmul.bf16.gmra.mxu1 %v1712_v25  ;;  %v616_v25 = vsel %vm131_vm0, %v611_v21, %v615_v22  ;;  %v639_v22 = vrot.slane %v637_v17, 1 }
  0x63   :  { %731 = vmatmul.bf16.gmra.mxu2 %v600_v56  ;;  %1111 = vperm.xlu0 %1819, %v1016_v30   ;;  %v631_v56 = vrot.slane %v629_v51, 1 }
  0x64   :  { %917 = vmatmul.bf16.gmra.mxu3 %v819_v57  ;;  %v826_v57 = vrot.slane %v1742_v47, 1 }
  0x65   :  { %v632_v1 = vsel %vm131_vm0, %v627_v55, %v631_v56  ;;  %v635_v21 = vor.u32 %v633_v16, %v631_v56 }
  0x66   :  { %v827_v2 = vsel %vm808_vm1, %v824_v41, %v826_v57  ;;  %v829_v33 = vsel %vm808_vm1, %v826_v57, %v828_v23 }
  0x67   :  { %v640_v32 = vsel %vm131_vm0, %v635_v21, %v639_v22 }
  0x6d   :  { %v2183_v12 = vpop.permute.xlu2 %1041 }
  0x71   :  { %311 = vmatmul.bf16.gmra.mxu0 %v183_v7 }
  0x72   :  { %436 = vmatmul.bf16.gmra.mxu1 %v1713_v42  ;;  %v199_v42 = vsel %vm131_vm0, %v194_v37, %v198_v38 }
  0x73   :  { %736 = vmatmul.bf16.gmra.mxu2 %v608_v8 }
  0x74   :  { %922 = vmatmul.bf16.gmra.mxu3 %v821_v9 }
  0x7f   :  { %v2141_v15 = vpop.permute.xlu0 %1021 }
  0x80   :  { %v2168_v48 = vpop.permute.xlu1 %1031 }
  0x81   :  { %316 = vmatmul.bf16.gmra.mxu0 %v191_v24  ;;  %v2148_v24 = vld [vmem:[%s2527_s2] ss:$0 sm:$0xff] }
  0x82   :  { %441 = vmatmul.bf16.gmra.mxu1 %v1714_v58  ;;  %v60_v58 = vld [vmem:[%s2525_s0 + $0x50] sm:$0x3] }
  0x83   :  { %741 = vmatmul.bf16.gmra.mxu2 %v616_v25  ;;  %v119_v63 = vunpack.c.l.b16 %v60_v58 }
  0x84   :  { %927 = vmatmul.bf16.gmra.mxu3 %v823_v26 }
  0x85   :  { %v130_v5 = vpack.c.b16 %v119_v63, %v119_v63  ;;  %v643_v63 = vor.u32 %v641_v53, %v639_v22 }
  0x87   :  { %v212_v13 = vshll.u32 %v130_v5, 16  ;;  %v2156_v36 = vpop.permute.xlu0 %1026  ;;  %v216_v50 = vshrl.u32 %v130_v5, 16 }
  0x89   :  { %v214_v20 = vrot.slane %v212_v13, 1 }
  0x8b   :  { %v215_v30 = vsel %vm131_vm0, %v210_v19, %v214_v20  ;;  %v218_v57 = vor.u32 %v216_v50, %v214_v20 }
  0x91   :  { %321 = vmatmul.bf16.gmra.mxu0 %v199_v42 }
  0x92   :  { %446 = vmatmul.bf16.gmra.mxu1 %v1715_v10 }
  0x93   :  { %746 = vmatmul.bf16.gmra.mxu2 %v624_v43 }
  0x94   :  { %932 = vmatmul.bf16.gmra.mxu3 %v825_v44 }
  0x9e   :  { %v287_v60 = vpop.f32.mrf.mxu0 }
  0x9f   :  { %v412_v61 = vpop.f32.mrf.mxu1 }
  0xa0   :  { %v413_v0 = vadd.f32 %v412_v61, %v287_v60 }
  0xa1   :  { %326 = vmatmul.bf16.gmra.mxu0 %v207_v62 }
  0xa2   :  { %451 = vmatmul.bf16.gmra.mxu1 %v1716_v28 }
  0xa3   :  { %751 = vmatmul.bf16.gmra.mxu2 %v632_v1 }
  0xa4   :  { %937 = vmatmul.bf16.gmra.mxu3 %v827_v2  ;;  %v2176_v2 = vpop.permute.xlu1 %1036 }
  0xa6   :  { %v712_v7 = vpop.f32.mrf.mxu2  ;;  %v289_v10 = vpop.f32.mrf.mxu0 }
  0xa7   :  { %v898_v8 = vpop.f32.mrf.mxu3  ;;  %v766_v9 = vadd.f32 %v712_v7, %v413_v0  ;;  %v414_v11 = vpop.f32.mrf.mxu1 }
  0xa8   :  { %v415_v14 = vadd.f32 %v414_v11, %v289_v10 }
  0xa9   :  { %v952_v18 = vadd.f32 %v898_v8, %v766_v9 }
  0xab   :  { %v2154_v34 = vadd.f32 %v2148_v24, %v952_v18 }
  0xac   :  { %v2204_v53 = vpop.permute.xlu1 %1056 }
  0xad   :  { %v1124_v38 = vmul.f32 %v2141_v15, %v2154_v34 }
  0xae   :  { %v714_v25 = vpop.f32.mrf.mxu2  ;;  %v292_v28 = vpop.f32.mrf.mxu0 }
  0xaf   :  { %v900_v26 = vpop.f32.mrf.mxu3  ;;  %v767_v27 = vadd.f32 %v714_v25, %v415_v14  ;;  %v417_v29 = vpop.f32.mrf.mxu1 }
  0xb0   :  { %v418_v31 = vadd.f32 %v417_v29, %v292_v28 }
  0xb1   :  { %v953_v35 = vadd.f32 %v900_v26, %v767_v27  ;;  %331 = vmatmul.bf16.gmra.mxu0 %v215_v30  ;;  %v2190_v26 = vpop.permute.xlu2 %1046 }
  0xb2   :  { %456 = vmatmul.bf16.gmra.mxu1 %v1717_v46  ;;  %v43_v46 = vld [vmem:[%s2525_s0 + $0x50] sm:$0x1] }
  0xb3   :  { %v2159_v37 = vadd.f32 %v2148_v24, %v953_v35  ;;  %756 = vmatmul.bf16.gmra.mxu2 %v640_v32  ;;  %v342_v51 = vunpack.c.l.b16 %v43_v46 }
  0xb4   :  { %942 = vmatmul.bf16.gmra.mxu3 %v829_v33 }
  0xb5   :  { %v1125_v39 = vmul.f32 %v2156_v36, %v2159_v37  ;;  %v343_v58 = vpack.c.b16 %v342_v51, %v342_v51 }
  0xb6   :  { %v717_v40 = vpop.f32.mrf.mxu2  ;;  %v294_v44 = vpop.f32.mrf.mxu0 }
  0xb7   :  { %v903_v41 = vpop.f32.mrf.mxu3  ;;  %v1145_v42 = vadd.f32 %v1125_v39, %v1124_v38  ;;  %v768_v43 = vadd.f32 %v717_v40, %v418_v31  ;;  %v419_v45 = vpop.f32.mrf.mxu1 }
  0xb8   :  { %v420_v47 = vadd.f32 %v419_v45, %v294_v44  ;;  %v2197_v40 = vpop.permute.xlu0 %1051 }
  0xb9   :  { %v954_v49 = vadd.f32 %v903_v41, %v768_v43 }
  0xbb   :  { %v2171_v52 = vadd.f32 %v2148_v24, %v954_v49 }
  0xbd   :  { %v1126_v54 = vmul.f32 %v2168_v48, %v2171_v52 }
  0xbe   :  { %v719_v55 = vpop.f32.mrf.mxu2  ;;  %v297_v61 = vpop.f32.mrf.mxu0 }
  0xbf   :  { %v905_v56 = vpop.f32.mrf.mxu3  ;;  %v1146_v59 = vadd.f32 %v1145_v42, %v1126_v54  ;;  %v769_v60 = vadd.f32 %v719_v55, %v420_v47  ;;  %v422_v62 = vpop.f32.mrf.mxu1 }
  0xc0   :  { %v423_v0 = vadd.f32 %v422_v62, %v297_v61 }
  0xc1   :  { %v955_v1 = vadd.f32 %v905_v56, %v769_v60  ;;  %336 = vmatmul.bf16.gmra.mxu0 %v218_v57 }
  0xc2   :  { %461 = vmatmul.bf16.gmra.mxu1 %v343_v58 }
  0xc3   :  { %v2179_v3 = vadd.f32 %v2148_v24, %v955_v1  ;;  %761 = vmatmul.bf16.gmra.mxu2 %v643_v63 }
  0xc4   :  { %947 = vmatmul.bf16.gmra.mxu3 %v828_v23 }
  0xc5   :  { %v1127_v4 = vmul.f32 %v2176_v2, %v2179_v3 }
  0xc6   :  { %v722_v5 = vpop.f32.mrf.mxu2  ;;  %v299_v9 = vpop.f32.mrf.mxu0 }
  0xc7   :  { %v908_v6 = vpop.f32.mrf.mxu3  ;;  %v1147_v7 = vadd.f32 %v1146_v59, %v1127_v4  ;;  %v770_v8 = vadd.f32 %v722_v5, %v423_v0  ;;  %v424_v10 = vpop.f32.mrf.mxu1 }
  0xc8   :  { %v425_v11 = vadd.f32 %v424_v10, %v299_v9  ;;  %v2211_v0 = vpop.permute.xlu2 %1061 }
  0xc9   :  { %v956_v13 = vadd.f32 %v908_v6, %v770_v8 }
  0xcb   :  { %v2186_v14 = vadd.f32 %v2148_v24, %v956_v13 }
  0xcd   :  { %v1128_v16 = vmul.f32 %v2183_v12, %v2186_v14 }
  0xce   :  { %v724_v17 = vpop.f32.mrf.mxu2  ;;  %v302_v21 = vpop.f32.mrf.mxu0 }
  0xcf   :  { %v910_v18 = vpop.f32.mrf.mxu3  ;;  %v1148_v19 = vadd.f32 %v1147_v7, %v1128_v16  ;;  %v771_v20 = vadd.f32 %v724_v17, %v425_v11  ;;  %v427_v22 = vpop.f32.mrf.mxu1 }
  0xd0   :  { %v428_v23 = vadd.f32 %v427_v22, %v302_v21  ;;  %v2218_v16 = vpop.permute.xlu0 %1066 }
  0xd1   :  { %v957_v25 = vadd.f32 %v910_v18, %v771_v20 }
  0xd3   :  { %v2193_v27 = vadd.f32 %v2148_v24, %v957_v25 }
  0xd5   :  { %v1129_v28 = vmul.f32 %v2190_v26, %v2193_v27 }
  0xd6   :  { %v727_v29 = vpop.f32.mrf.mxu2  ;;  %v304_v33 = vpop.f32.mrf.mxu0 }
  0xd7   :  { %v913_v30 = vpop.f32.mrf.mxu3  ;;  %v1149_v31 = vadd.f32 %v1148_v19, %v1129_v28  ;;  %v772_v32 = vadd.f32 %v727_v29, %v428_v23  ;;  %v429_v35 = vpop.f32.mrf.mxu1 }
  0xd8   :  { %v430_v38 = vadd.f32 %v429_v35, %v304_v33 }
  0xd9   :  { %v958_v39 = vadd.f32 %v913_v30, %v772_v32  ;;  %v2225_v30 = vpop.permute.xlu1 %1071 }
  0xdb   :  { %v2200_v41 = vadd.f32 %v2148_v24, %v958_v39 }
  0xdd   :  { %v1130_v42 = vmul.f32 %v2197_v40, %v2200_v41 }
  0xde   :  { %v729_v43 = vpop.f32.mrf.mxu2  ;;  %v307_v47 = vpop.f32.mrf.mxu0 }
  0xdf   :  { %v915_v44 = vpop.f32.mrf.mxu3  ;;  %v1150_v45 = vadd.f32 %v1149_v31, %v1130_v42  ;;  %v773_v46 = vadd.f32 %v729_v43, %v430_v38  ;;  %v432_v49 = vpop.f32.mrf.mxu1 }
  0xe0   :  { %v433_v50 = vadd.f32 %v432_v49, %v307_v47 }
  0xe1   :  { %v959_v51 = vadd.f32 %v915_v44, %v773_v46  ;;  %v2232_v46 = vpop.permute.xlu2 %1076 }
  0xe3   :  { %v2207_v54 = vadd.f32 %v2148_v24, %v959_v51 }
  0xe5   :  { %v1131_v55 = vmul.f32 %v2204_v53, %v2207_v54 }
  0xe6   :  { %v732_v56 = vpop.f32.mrf.mxu2  ;;  %v309_v60 = vpop.f32.mrf.mxu0 }
  0xe7   :  { %v918_v57 = vpop.f32.mrf.mxu3  ;;  %v1151_v58 = vadd.f32 %v1150_v45, %v1131_v55  ;;  %v774_v59 = vadd.f32 %v732_v56, %v433_v50  ;;  %v434_v61 = vpop.f32.mrf.mxu1 }
  0xe8   :  { %v435_v62 = vadd.f32 %v434_v61, %v309_v60 }
  0xe9   :  { %v960_v63 = vadd.f32 %v918_v57, %v774_v59 }
  0xeb   :  { %v2214_v1 = vadd.f32 %v2148_v24, %v960_v63 }
  0xed   :  { %v1132_v4 = vmul.f32 %v2211_v0, %v2214_v1 }
  0xee   :  { %v734_v5 = vpop.f32.mrf.mxu2  ;;  %v312_v9 = vpop.f32.mrf.mxu0 }
  0xef   :  { %v920_v6 = vpop.f32.mrf.mxu3  ;;  %v1152_v7 = vadd.f32 %v1151_v58, %v1132_v4  ;;  %v775_v8 = vadd.f32 %v734_v5, %v435_v62  ;;  %v437_v10 = vpop.f32.mrf.mxu1 }
  0xf0   :  { %v438_v11 = vadd.f32 %v437_v10, %v312_v9  ;;  %v2242_v62 = vpop.permute.xlu0 %1081 }
  0xf1   :  { %v961_v13 = vadd.f32 %v920_v6, %v775_v8 }
  0xf3   :  { %v2221_v17 = vadd.f32 %v2148_v24, %v961_v13 }
  0xf5   :  { %v1133_v18 = vmul.f32 %v2218_v16, %v2221_v17 }
  0xf6   :  { %v737_v19 = vpop.f32.mrf.mxu2  ;;  %v314_v23 = vpop.f32.mrf.mxu0 }
  0xf7   :  { %v923_v20 = vpop.f32.mrf.mxu3  ;;  %v1153_v21 = vadd.f32 %v1152_v7, %v1133_v18  ;;  %v776_v22 = vadd.f32 %v737_v19, %v438_v11  ;;  %v439_v25 = vpop.f32.mrf.mxu1 }
  0xf8   :  { %v440_v28 = vadd.f32 %v439_v25, %v314_v23  ;;  %v2249_v18 = vpop.permute.xlu1 %1086 }
  0xf9   :  { %v962_v29 = vadd.f32 %v923_v20, %v776_v22 }
  0xfb   :  { %v2228_v31 = vadd.f32 %v2148_v24, %v962_v29 }
  0xfd   :  { %v1134_v32 = vmul.f32 %v2225_v30, %v2228_v31 }
  0xfe   :  { %v739_v33 = vpop.f32.mrf.mxu2  ;;  %v317_v42 = vpop.f32.mrf.mxu0 }
  0xff   :  { %v925_v35 = vpop.f32.mrf.mxu3  ;;  %v1154_v38 = vadd.f32 %v1153_v21, %v1134_v32  ;;  %v777_v39 = vadd.f32 %v739_v33, %v440_v28  ;;  %v442_v43 = vpop.f32.mrf.mxu1 }
 0x100   :  { %v443_v44 = vadd.f32 %v442_v43, %v317_v42 }
 0x101   :  { %v963_v45 = vadd.f32 %v925_v35, %v777_v39  ;;  %v2256_v35 = vpop.permute.xlu2 %1091 }
 0x103   :  { %v2235_v47 = vadd.f32 %v2148_v24, %v963_v45 }
 0x105   :  { %v1135_v49 = vmul.f32 %v2232_v46, %v2235_v47 }
 0x106   :  { %v742_v50 = vpop.f32.mrf.mxu2  ;;  %v319_v57 = vpop.f32.mrf.mxu0 }
 0x107   :  { %v928_v51 = vpop.f32.mrf.mxu3  ;;  %v1155_v55 = vadd.f32 %v1154_v38, %v1135_v49  ;;  %v778_v56 = vadd.f32 %v742_v50, %v443_v44  ;;  %v444_v58 = vpop.f32.mrf.mxu1 }
 0x108   :  { %v445_v59 = vadd.f32 %v444_v58, %v319_v57 }
 0x109   :  { %v964_v60 = vadd.f32 %v928_v51, %v778_v56 }
 0x10b   :  { %v2240_v61 = vadd.f32 %v2148_v24, %v964_v60 }
 0x10d   :  { %v1136_v63 = vmul.f32 %v2242_v62, %v2240_v61 }
 0x10e   :  { %v744_v4 = vpop.f32.mrf.mxu2  ;;  %v322_v8 = vpop.f32.mrf.mxu0 }
 0x10f   :  { %v930_v5 = vpop.f32.mrf.mxu3  ;;  %v1156_v6 = vadd.f32 %v1155_v55, %v1136_v63  ;;  %v779_v7 = vadd.f32 %v744_v4, %v445_v59  ;;  %v447_v9 = vpop.f32.mrf.mxu1 }
 0x110   :  { %v448_v10 = vadd.f32 %v447_v9, %v322_v8  ;;  %v2263_v55 = vpop.permute.xlu0 %1096 }
 0x111   :  { %v965_v11 = vadd.f32 %v930_v5, %v779_v7 }
 0x113   :  { %v2247_v13 = vadd.f32 %v2148_v24, %v965_v11 }
 0x115   :  { %v1137_v19 = vmul.f32 %v2249_v18, %v2247_v13 }
 0x116   :  { %v747_v20 = vpop.f32.mrf.mxu2  ;;  %v324_v25 = vpop.f32.mrf.mxu0 }
 0x117   :  { %v933_v21 = vpop.f32.mrf.mxu3  ;;  %v1157_v22 = vadd.f32 %v1156_v6, %v1137_v19  ;;  %v780_v23 = vadd.f32 %v747_v20, %v448_v10  ;;  %v449_v28 = vpop.f32.mrf.mxu1 }
 0x118   :  { %v450_v29 = vadd.f32 %v449_v28, %v324_v25 }
 0x119   :  { %v966_v32 = vadd.f32 %v933_v21, %v780_v23 }
 0x11b   :  { %v2254_v33 = vadd.f32 %v2148_v24, %v966_v32 }
 0x11d   :  { %v1138_v38 = vmul.f32 %v2256_v35, %v2254_v33 }
 0x11e   :  { %v749_v39 = vpop.f32.mrf.mxu2  ;;  %v327_v45 = vpop.f32.mrf.mxu0 }
 0x11f   :  { %v935_v42 = vpop.f32.mrf.mxu3  ;;  %v1158_v43 = vadd.f32 %v1157_v22, %v1138_v38  ;;  %v781_v44 = vadd.f32 %v749_v39, %v450_v29  ;;  %v452_v49 = vpop.f32.mrf.mxu1 }
 0x120   :  { %v453_v8 = vadd.f32 %v452_v49, %v327_v45  ;;  %v2267_v29 = vpop.permute.xlu1 %1101 }
 0x121   :  { %v967_v50 = vadd.f32 %v935_v42, %v781_v44 }
 0x123   :  { %v2261_v51 = vadd.f32 %v2148_v24, %v967_v50 }
 0x125   :  { %v1139_v56 = vmul.f32 %v2263_v55, %v2261_v51 }
 0x126   :  { %v752_v57 = vpop.f32.mrf.mxu2  ;;  %v329_v60 = vpop.f32.mrf.mxu0 }
 0x127   :  { %v938_v58 = vpop.f32.mrf.mxu3  ;;  %v1159_v59 = vadd.f32 %v1158_v43, %v1139_v56  ;;  %v454_v63 = vpop.f32.mrf.mxu1  ;;  %v782_v20 = vadd.f32 %v752_v57, %v453_v8 }
 0x128   :  { %v455_v21 = vadd.f32 %v454_v63, %v329_v60  ;;  %v2272_v56 = vpop.permute.xlu2 %1106 }
 0x129   :  { %v968_v25 = vadd.f32 %v938_v58, %v782_v20 }
 0x12b   :  { %v2270_v45 = vadd.f32 %v2148_v24, %v968_v25 }
 0x12d   :  { %v1140_v63 = vmul.f32 %v2267_v29, %v2270_v45 }
 0x12e   :  { %v754_v4 = vpop.f32.mrf.mxu2  ;;  %v332_v6 = vpop.f32.mrf.mxu0 }
 0x12f   :  { %v940_v5 = vpop.f32.mrf.mxu3  ;;  %v457_v7 = vpop.f32.mrf.mxu1  ;;  %v783_v23 = vadd.f32 %v754_v4, %v455_v21  ;;  %v1160_v20 = vadd.f32 %v1159_v59, %v1140_v63 }
 0x130   :  { %v458_v22 = vadd.f32 %v457_v7, %v332_v6 }
 0x131   :  { %v969_v38 = vadd.f32 %v940_v5, %v783_v23  ;;  %v2282_v5 = vpop.permute.xlu0 %1111 }
 0x133   :  { %v2275_v57 = vadd.f32 %v2148_v24, %v969_v38  ;;  %v2298_v38 = vpop.permute.xlu2 %1121 }
 0x135   :  { %v1141_v6 = vmul.f32 %v2272_v56, %v2275_v57 }
 0x136   :  { %v757_v9 = vpop.f32.mrf.mxu2  ;;  %v334_v11 = vpop.f32.mrf.mxu0 }
 0x137   :  { %v943_v10 = vpop.f32.mrf.mxu3  ;;  %v459_v19 = vpop.f32.mrf.mxu1  ;;  %v784_v28 = vadd.f32 %v757_v9, %v458_v22  ;;  %v1161_v25 = vadd.f32 %v1160_v20, %v1141_v6 }
 0x138   :  { %v460_v32 = vadd.f32 %v459_v19, %v334_v11  ;;  %v2291_v22 = vpop.permute.xlu1 %1116 }
 0x139   :  { %v970_v49 = vadd.f32 %v943_v10, %v784_v28 }
 0x13b   :  { %v2280_v4 = vadd.f32 %v2148_v24, %v970_v49 }
 0x13d   :  { %v1142_v21 = vmul.f32 %v2282_v5, %v2280_v4 }
 0x13e   :  { %v759_v39 = vpop.f32.mrf.mxu2  ;;  %v337_v44 = vpop.f32.mrf.mxu0 }
 0x13f   :  { %v945_v42 = vpop.f32.mrf.mxu3  ;;  %v785_v43 = vadd.f32 %v759_v39, %v460_v32  ;;  %v462_v50 = vpop.f32.mrf.mxu1  ;;  %v1162_v39 = vadd.f32 %v1161_v25, %v1142_v21 }
 0x140   :  { %v463_v60 = vadd.f32 %v462_v50, %v337_v44 }
 0x141   :  { %v971_v58 = vadd.f32 %v945_v42, %v785_v43 }
 0x143   :  { %v2287_v7 = vadd.f32 %v2148_v24, %v971_v58 }
 0x145   :  { %v1143_v28 = vmul.f32 %v2291_v22, %v2287_v7 }
 0x146   :  { %v762_v8 = vpop.f32.mrf.mxu2  ;;  %v339_v11 = vpop.f32.mrf.mxu0 }
 0x147   :  { %v948_v9 = vpop.f32.mrf.mxu3  ;;  %v786_v10 = vadd.f32 %v762_v8, %v463_v60  ;;  %v464_v19 = vpop.f32.mrf.mxu1  ;;  %v1163_v42 = vadd.f32 %v1162_v39, %v1143_v28 }
 0x149   :  { %v972_v23 = vadd.f32 %v948_v9, %v786_v10 }
 0x14b   :  { %v2296_v32 = vadd.f32 %v2148_v24, %v972_v23 }
 0x14d   :  { %v1144_v59 = vmul.f32 %v2298_v38, %v2296_v32 }
 0x14e   :  { %v764_v43 = vpop.f32.mrf.mxu2 }
 0x14f   :  { %v950_v44 = vpop.f32.mrf.mxu3  ;;  %v1165_v50 = vsel %vm1164_vm2, %v1144_v59, 0.0 }
 0x150   :  { %v1166_v49 = vadd.f32 %v1165_v50, %v1163_v42 }
 0x152   :  { %v1167_v58 = vrot.slane %v1166_v49, 4 }
 0x154   :  { %v1168_v60 = vadd.f32 %v1167_v58, %v1166_v49 }
 0x156   :  { %v1169_v63 = vrot.slane %v1168_v60, 2 }
 0x158   :  { %v1170_v6 = vadd.f32 %v1169_v63, %v1168_v60 }
 0x15a   :  { %v1171_v8 = vrot.slane %v1170_v6, 1 }
 0x15c   :  { %v1172_v24 = vadd.f32 %v1171_v8, %v1170_v6 }
 0x15e   :  { %v2303_v9 = vmul.f32 0.0078125, %v1172_v24 }
 0x160   :  { %v2307_v10 = vsub.f32 %v2154_v34, %v2303_v9  ;;  %v2311_v11 = vsub.f32 %v2159_v37, %v2303_v9  ;;  %v2315_v19 = vsub.f32 %v2171_v52, %v2303_v9  ;;  %v2319_v20 = vsub.f32 %v2179_v3, %v2303_v9 }
 0x161   :  { %v2323_v21 = vsub.f32 %v2186_v14, %v2303_v9  ;;  %v2327_v34 = vsub.f32 %v2193_v27, %v2303_v9  ;;  %v2331_v37 = vsub.f32 %v2200_v41, %v2303_v9  ;;  %v2335_v52 = vsub.f32 %v2207_v54, %v2303_v9 }
 0x162   :  { %v2339_v3 = vsub.f32 %v2214_v1, %v2303_v9  ;;  %v2343_v14 = vsub.f32 %v2221_v17, %v2303_v9  ;;  %v2347_v27 = vsub.f32 %v2228_v31, %v2303_v9  ;;  %v2351_v41 = vsub.f32 %v2235_v47, %v2303_v9 }
 0x163   :  { %v2355_v54 = vsub.f32 %v2240_v61, %v2303_v9  ;;  %v2359_v1 = vsub.f32 %v2247_v13, %v2303_v9  ;;  %v2363_v17 = vsub.f32 %v2254_v33, %v2303_v9  ;;  %v2367_v31 = vsub.f32 %v2261_v51, %v2303_v9 }
 0x164   :  { %v1195_v47 = vmul.f32 %v2307_v10, %v2141_v15  ;;  %v1196_v23 = vmul.f32 %v2311_v11, %v2156_v36  ;;  %v1206_v61 = vmul.f32 %v2351_v41, %v2232_v46  ;;  %v1197_v13 = vmul.f32 %v2315_v19, %v2168_v48 }
 0x165   :  { %v1198_v33 = vmul.f32 %v2319_v20, %v2176_v2  ;;  %v1199_v51 = vmul.f32 %v2323_v21, %v2183_v12  ;;  %v1200_v15 = vmul.f32 %v2327_v34, %v2190_v26  ;;  %v1201_v46 = vmul.f32 %v2331_v37, %v2197_v40 }
 0x166   :  { %v1216_v25 = vmul.f32 %v1195_v47, %v1195_v47  ;;  %v1217_v28 = vmul.f32 %v1196_v23, %v1196_v23  ;;  %v1218_v39 = vmul.f32 %v1197_v13, %v1197_v13  ;;  %v1202_v44 = vmul.f32 %v2335_v52, %v2204_v53 }
 0x167   :  { %v1219_v36 = vmul.f32 %v1198_v33, %v1198_v33  ;;  %v1220_v43 = vmul.f32 %v1199_v51, %v1199_v51  ;;  %v1221_v50 = vmul.f32 %v1200_v15, %v1200_v15  ;;  %v1203_v12 = vmul.f32 %v2339_v3, %v2211_v0 }
 0x168   :  { %v1237_v59 = vadd.f32 %v1217_v28, %v1216_v25  ;;  %v1222_v49 = vmul.f32 %v1201_v46, %v1201_v46  ;;  %v1204_v26 = vmul.f32 %v2343_v14, %v2218_v16  ;;  %v1223_v60 = vmul.f32 %v1202_v44, %v1202_v44 }
 0x169   :  { %v1205_v40 = vmul.f32 %v2347_v27, %v2225_v30  ;;  %v1224_v6 = vmul.f32 %v1203_v12, %v1203_v12  ;;  %v1207_v53 = vmul.f32 %v2355_v54, %v2242_v62  ;;  %v1208_v0 = vmul.f32 %v2359_v1, %v2249_v18 }
 0x16a   :  { %v1238_v42 = vadd.f32 %v1237_v59, %v1218_v39  ;;  %v1225_v24 = vmul.f32 %v1204_v26, %v1204_v26  ;;  %v1227_v25 = vmul.f32 %v1206_v61, %v1206_v61  ;;  %v2399_v16 = vsub.f32 %v2270_v45, %v2303_v9 }
 0x16b   :  { %v1226_v23 = vmul.f32 %v1205_v40, %v1205_v40  ;;  %v1209_v30 = vmul.f32 %v2363_v17, %v2256_v35  ;;  %v1228_v33 = vmul.f32 %v1207_v53, %v1207_v53  ;;  %v2405_v39 = vsub.f32 %v2275_v57, %v2303_v9 }
 0x16c   :  { %v1239_v48 = vadd.f32 %v1238_v42, %v1219_v36  ;;  %v1210_v62 = vmul.f32 %v2367_v31, %v2263_v55  ;;  %v1229_v59 = vmul.f32 %v1208_v0, %v1208_v0  ;;  %v1192_v61 = vsub.f32 %v2280_v4, %v2303_v9 }
 0x16d   :  { %v1211_v45 = vmul.f32 %v2399_v16, %v2267_v29  ;;  %v1230_v15 = vmul.f32 %v1209_v30, %v1209_v30  ;;  %v1194_v35 = vsub.f32 %v2296_v32, %v2303_v9  ;;  %v1193_v57 = vsub.f32 %v2287_v7, %v2303_v9 }
 0x16e   :  { %v1240_v2 = vadd.f32 %v1239_v48, %v1220_v43  ;;  %v1212_v42 = vmul.f32 %v2405_v39, %v2272_v56  ;;  %v1231_v55 = vmul.f32 %v1210_v62, %v1210_v62  ;;  %v1213_v43 = vmul.f32 %v1192_v61, %v2282_v5 }
 0x16f   :  { %v1232_v48 = vmul.f32 %v1211_v45, %v1211_v45  ;;  %v1215_v44 = vmul.f32 %v1194_v35, %v2298_v38  ;;  %v1214_v29 = vmul.f32 %v1193_v57, %v2291_v22 }
 0x170   :  { %v1241_v58 = vadd.f32 %v1240_v2, %v1221_v50  ;;  %v1233_v50 = vmul.f32 %v1212_v42, %v1212_v42  ;;  %v1234_v12 = vmul.f32 %v1213_v43, %v1213_v43 }
 0x172   :  { %v1242_v63 = vadd.f32 %v1241_v58, %v1222_v49  ;;  %v1236_v49 = vmul.f32 %v1215_v44, %v1215_v44  ;;  %v1235_v58 = vmul.f32 %v1214_v29, %v1214_v29 }
 0x174   :  { %v1243_v8 = vadd.f32 %v1242_v63, %v1223_v60  ;;  %v1256_v56 = vsel %vm1164_vm2, %v1236_v49, 0.0 }
 0x176   :  { %v1244_v47 = vadd.f32 %v1243_v8, %v1224_v6 }
 0x178   :  { %v1245_v13 = vadd.f32 %v1244_v47, %v1225_v24 }
 0x17a   :  { %v1246_v28 = vadd.f32 %v1245_v13, %v1226_v23 }
 0x17c   :  { %v1247_v51 = vadd.f32 %v1246_v28, %v1227_v25 }
 0x17e   :  { %v1248_v18 = vadd.f32 %v1247_v51, %v1228_v33 }
 0x180   :  { %v1249_v36 = vadd.f32 %v1248_v18, %v1229_v59 }
 0x182   :  { %v1250_v46 = vadd.f32 %v1249_v36, %v1230_v15 }
 0x184   :  { %v1251_v4 = vadd.f32 %v1250_v46, %v1231_v55 }
 0x186   :  { %v1252_v2 = vadd.f32 %v1251_v4, %v1232_v48 }
 0x188   :  { %v1253_v32 = vadd.f32 %v1252_v2, %v1233_v50 }
 0x18a   :  { %v1254_v7 = vadd.f32 %v1253_v32, %v1234_v12 }
 0x18c   :  { %v1255_v9 = vadd.f32 %v1254_v7, %v1235_v58 }
 0x18e   :  { %v1257_v26 = vadd.f32 %v1256_v56, %v1255_v9 }
 0x190   :  { %v1258_v60 = vrot.slane %v1257_v26, 4 }
 0x192   :  { %v1259_v63 = vadd.f32 %v1258_v60, %v1257_v26 }
 0x194   :  { %v1260_v5 = vrot.slane %v1259_v63, 2 }
 0x196   :  { %v1261_v40 = vadd.f32 %v1260_v5, %v1259_v63 }
 0x198   :  { %v1262_v6 = vrot.slane %v1261_v40, 1 }
 0x19a   :  { %v1263_v8 = vadd.f32 %v1262_v6, %v1261_v40 }
 0x19c   :  { %v1264_v38 = vmul.f32 0.0078125, %v1263_v8 }
 0x19e   :  { %v1265_v24 = vadd.f32 1e-05, %v1264_v38 }
 0x1a0   :  { %1825 = vrsqrt.f32 %v1265_v24  ;;  %vm1272_vm4 = vweird.f32 %v1265_v24 }
 0x1a6   :  { %v1826_v22 = vpop.eup %1825 }
 0x1a7   :  { %v1267_v47 = vmul.f32 %v1826_v22, %v1265_v24  ;;  %vm1273_vm3 = vweird.f32 %v1826_v22 }
 0x1a8   :  { %vm1274_vm5 = vmor %vm1272_vm4, %vm1273_vm3 }
 0x1a9   :  { %v1268_v53 = vmul.f32 %v1826_v22, %v1267_v47 }
 0x1ab   :  { %v1269_v23 = vmul.f32 0.5, %v1268_v53 }
 0x1ad   :  { %v1270_v13 = vsub.f32 1.5, %v1269_v23 }
 0x1af   :  { %v1271_v0 = vmul.f32 %v1826_v22, %v1270_v13 }
 0x1b1   :  { %v1275_v25 = vsel %vm1274_vm5, %v1826_v22, %v1271_v0 }
 0x1b2   :  { %v1276_v28 = vmul.f32 %v1275_v25, %v2307_v10  ;;  %v1277_v30 = vmul.f32 %v1275_v25, %v2311_v11  ;;  %v1278_v33 = vmul.f32 %v1275_v25, %v2315_v19  ;;  %v1279_v51 = vmul.f32 %v1275_v25, %v2319_v20  ;;  %v1823_v19 = vld [vmem:[%s2528_s3] ss:$0 sm:$0xff] }
 0x1b3   :  { %v1280_v62 = vmul.f32 %v1275_v25, %v2323_v21  ;;  %v1281_v59 = vmul.f32 %v1275_v25, %v2327_v34  ;;  %v1282_v18 = vmul.f32 %v1275_v25, %v2331_v37  ;;  %v1283_v45 = vmul.f32 %v1275_v25, %v2335_v52 }
 0x1b4   :  { %v1284_v15 = vmul.f32 %v1275_v25, %v2339_v3  ;;  %v1285_v36 = vmul.f32 %v1275_v25, %v2343_v14  ;;  %v1286_v10 = vmul.f32 %v1275_v25, %v2347_v27  ;;  %v1287_v11 = vmul.f32 %v1275_v25, %v2351_v41 }
 0x1b5   :  { %v1288_v20 = vmul.f32 %v1275_v25, %v2355_v54  ;;  %v1289_v21 = vmul.f32 %v1275_v25, %v2359_v1  ;;  %v1290_v34 = vmul.f32 %v1275_v25, %v2363_v17  ;;  %v1291_v37 = vmul.f32 %v1275_v25, %v2367_v31  ;;  %v1824_v1 = vld [vmem:[%s2529_s4] ss:$0 sm:$0xff] }
 0x1b6   :  { %v1292_v52 = vmul.f32 %v1275_v25, %v2399_v16  ;;  %v1293_v3 = vmul.f32 %v1275_v25, %v2405_v39  ;;  %v1294_v14 = vmul.f32 %v1275_v25, %v1192_v61  ;;  %v1295_v27 = vmul.f32 %v1275_v25, %v1193_v57 }
 0x1b7   :  { %v1296_v42 = vmul.f32 %v1275_v25, %v1194_v35  ;;  %v1301_v41 = vmul.f32 %v1823_v19, %v1276_v28  ;;  %v1302_v55 = vmul.f32 %v1823_v19, %v1277_v30  ;;  %v1303_v46 = vmul.f32 %v1823_v19, %v1278_v33 }
 0x1b8   :  { %v1304_v43 = vmul.f32 %v1823_v19, %v1279_v51  ;;  %v1305_v48 = vmul.f32 %v1823_v19, %v1280_v62  ;;  %v1306_v4 = vmul.f32 %v1823_v19, %v1281_v59  ;;  %v1307_v54 = vmul.f32 %v1823_v19, %v1282_v18 }
 0x1b9   :  { %v1308_v17 = vmul.f32 %v1823_v19, %v1283_v45  ;;  %v1309_v31 = vmul.f32 %v1823_v19, %v1284_v15  ;;  %v1310_v44 = vmul.f32 %v1823_v19, %v1285_v36  ;;  %v1311_v16 = vmul.f32 %v1823_v19, %v1286_v10 }
 0x1ba   :  { %v1312_v29 = vmul.f32 %v1823_v19, %v1287_v11  ;;  %v1313_v39 = vmul.f32 %v1823_v19, %v1288_v20  ;;  %v1314_v61 = vmul.f32 %v1823_v19, %v1289_v21  ;;  %v1315_v57 = vmul.f32 %v1823_v19, %v1290_v34 }
 0x1bb   :  { %v1316_v35 = vmul.f32 %v1823_v19, %v1291_v37  ;;  %v1317_v50 = vmul.f32 %v1823_v19, %v1292_v52  ;;  %v1318_v2 = vmul.f32 %v1823_v19, %v1293_v3  ;;  %v1319_v12 = vmul.f32 %v1823_v19, %v1294_v14 }
 0x1bc   :  { %v1320_v32 = vmul.f32 %v1823_v19, %v1295_v27  ;;  %v1321_v49 = vmul.f32 %v1823_v19, %v1296_v42  ;;  %v1326_v58 = vadd.f32 %v1824_v1, %v1301_v41  ;;  %v1327_v7 = vadd.f32 %v1824_v1, %v1302_v55 }
 0x1bd   :  { %v1328_v9 = vadd.f32 %v1824_v1, %v1303_v46  ;;  %v1329_v56 = vadd.f32 %v1824_v1, %v1304_v43  ;;  %v1330_v26 = vadd.f32 %v1824_v1, %v1305_v48  ;;  %v1331_v60 = vadd.f32 %v1824_v1, %v1306_v4 }
 0x1be   :  { %v1332_v63 = vadd.f32 %v1824_v1, %v1307_v54  ;;  %v1333_v5 = vadd.f32 %v1824_v1, %v1308_v17  ;;  %v1334_v40 = vadd.f32 %v1824_v1, %v1309_v31  ;;  %v1335_v6 = vadd.f32 %v1824_v1, %v1310_v44 }
 0x1bf   :  { %v1336_v8 = vadd.f32 %v1824_v1, %v1311_v16  ;;  %v1337_v38 = vadd.f32 %v1824_v1, %v1312_v29  ;;  %v1338_v24 = vadd.f32 %v1824_v1, %v1313_v39  ;;  %v1339_v22 = vadd.f32 %v1824_v1, %v1314_v61 }
 0x1c0   :  { %v1340_v47 = vadd.f32 %v1824_v1, %v1315_v57  ;;  %v1341_v53 = vadd.f32 %v1824_v1, %v1316_v35  ;;  %v2447_v23 = vadd.f32 %v1824_v1, %v1317_v50  ;;  %v2449_v13 = vadd.f32 %v1824_v1, %v1318_v2 }
 0x1c1   :  { %v2451_v0 = vadd.f32 %v1824_v1, %v1319_v12  ;;  %v2453_v25 = vadd.f32 %v1824_v1, %v1320_v32  ;;  %vm1351_vm10 = vcmp.gt.f32.partialorder %v1330_v26, 0.0  ;;  %vm1352_vm11 = vcmp.gt.f32.partialorder %v1331_v60, 0.0 }
 0x1c2   :  { %vm1353_vm12 = vcmp.gt.f32.partialorder %v1332_v63, 0.0  ;;  %vm1354_vm13 = vcmp.gt.f32.partialorder %v1333_v5, 0.0  ;;  %vm1355_vm14 = vcmp.gt.f32.partialorder %v1334_v40, 0.0  ;;  %vm1356_vm15 = vcmp.gt.f32.partialorder %v1335_v6, 0.0 }
 0x1c3   :  { %vm1357_vm0 = vcmp.gt.f32.partialorder %v1336_v8, 0.0  ;;  %vm1358_vm1 = vcmp.gt.f32.partialorder %v1337_v38, 0.0  ;;  %vm1359_vm2 = vcmp.gt.f32.partialorder %v1338_v24, 0.0  ;;  %vm1360_vm3 = vcmp.gt.f32.partialorder %v1339_v22, 0.0 }
 0x1c4   :  { %vm1361_vm4 = vcmp.gt.f32.partialorder %v1340_v47, 0.0  ;;  %vm1363_vm6 = vcmp.gt.f32.partialorder %v2447_v23, 0.0  ;;  %v1368_v28 = vmul.f32 0.2, %v1326_v58  ;;  %v1369_v30 = vmul.f32 0.2, %v1327_v7 }
 0x1c5   :  { %v1370_v33 = vmul.f32 0.2, %v1328_v9  ;;  %v1371_v51 = vmul.f32 0.2, %v1329_v56  ;;  %v1372_v62 = vmul.f32 0.2, %v1330_v26  ;;  %v1346_v59 = vadd.f32 %v1824_v1, %v1321_v49 }
 0x1c6   :  { %v1373_v18 = vmul.f32 0.2, %v1331_v60  ;;  %v1374_v45 = vmul.f32 0.2, %v1332_v63  ;;  %v1375_v15 = vmul.f32 0.2, %v1333_v5 }
 0x1c7   :  { %v1376_v36 = vmul.f32 0.2, %v1334_v40  ;;  %v1377_v10 = vmul.f32 0.2, %v1335_v6  ;;  %v1378_v11 = vmul.f32 0.2, %v1336_v8  ;;  %v1393_v43 = vsel %vm1351_vm10, %v1330_v26, %v1372_v62 }
 0x1c8   :  { %vm2531_vm5 = vcmp.gt.f32.partialorder %v1326_v58, 0.0  ;;  %v1379_v20 = vmul.f32 0.2, %v1337_v38  ;;  %v1380_v21 = vmul.f32 0.2, %v1338_v24  ;;  %vm2532_vm8 = vcmp.gt.f32.partialorder %v1327_v7, 0.0 }
 0x1c9   :  { %v1389_v19 = vsel %vm2531_vm5, %v1326_v58, %v1368_v28  ;;  %v1381_v34 = vmul.f32 0.2, %v1339_v22  ;;  %v1390_v37 = vsel %vm2532_vm8, %v1327_v7, %v1369_v30  ;;  %v1382_v52 = vmul.f32 0.2, %v1340_v47 }
 0x1ca   :  { %v1383_v3 = vmul.f32 0.2, %v1341_v53  ;;  %v1384_v14 = vmul.f32 0.2, %v2447_v23  ;;  %vm2533_vm9 = vcmp.gt.f32.partialorder %v1328_v9, 0.0  ;;  %vm2534_vm7 = vcmp.gt.f32.partialorder %v1329_v56, 0.0 }
 0x1cb   :  { %v1391_v27 = vsel %vm2533_vm9, %v1328_v9, %v1370_v33  ;;  %v1385_v42 = vmul.f32 0.2, %v2449_v13  ;;  %v1386_v41 = vmul.f32 0.2, %v2451_v0  ;;  %v1387_v55 = vmul.f32 0.2, %v2453_v25 }
 0x1cc   :  { %v1392_v46 = vsel %vm2534_vm7, %v1329_v56, %v1371_v51  ;;  %v1394_v48 = vsel %vm1352_vm11, %v1331_v60, %v1373_v18  ;;  %v1395_v4 = vsel %vm1353_vm12, %v1332_v63, %v1374_v45  ;;  %v1396_v54 = vsel %vm1354_vm13, %v1333_v5, %v1375_v15 }
 0x1cd   :  { %v1397_v1 = vsel %vm1355_vm14, %v1334_v40, %v1376_v36  ;;  %v1398_v17 = vsel %vm1356_vm15, %v1335_v6, %v1377_v10  ;;  %v1399_v31 = vsel %vm1357_vm0, %v1336_v8, %v1378_v11  ;;  %v1400_v44 = vsel %vm1358_vm1, %v1337_v38, %v1379_v20 }
 0x1ce   :  { %v1401_v16 = vsel %vm1359_vm2, %v1338_v24, %v1380_v21  ;;  %v1402_v29 = vsel %vm1360_vm3, %v1339_v22, %v1381_v34  ;;  %v1403_v39 = vsel %vm1361_vm4, %v1340_v47, %v1382_v52  ;;  %vm2535_vm7 = vcmp.gt.f32.partialorder %v1341_v53, 0.0 }
 0x1cf   :  { %v1404_v61 = vsel %vm2535_vm7, %v1341_v53, %v1383_v3  ;;  %v1405_v57 = vsel %vm1363_vm6, %v2447_v23, %v1384_v14  ;;  %vm2536_vm8 = vcmp.gt.f32.partialorder %v2449_v13, 0.0  ;;  %vm2537_vm9 = vcmp.gt.f32.partialorder %v2451_v0, 0.0 }
 0x1d0   :  { %v1406_v35 = vsel %vm2536_vm8, %v2449_v13, %v1385_v42  ;;  %v1407_v50 = vsel %vm2537_vm9, %v2451_v0, %v1386_v41  ;;  %vm2538_vm10 = vcmp.gt.f32.partialorder %v2453_v25, 0.0  ;;  %vm1367_vm11 = vcmp.gt.f32.partialorder %v1346_v59, 0.0 }
 0x1d1   :  { %v1408_v2 = vsel %vm2538_vm10, %v2453_v25, %v1387_v55  ;;  %v1762_v12 = vpack.c.bf16 %v1390_v37, %v1389_v19  ;;  %v1767_v32 = vpack.c.bf16 %v1392_v46, %v1391_v27  ;;  %v1772_v49 = vpack.c.bf16 %v1394_v48, %v1393_v43 }
 0x1d2   :  { %v1388_v58 = vmul.f32 0.2, %v1346_v59  ;;  %v1777_v7 = vpack.c.bf16 %v1396_v54, %v1395_v4  ;;  %v1787_v9 = vpack.c.bf16 %v1400_v44, %v1399_v31  ;;  %v1792_v56 = vpack.c.bf16 %v1402_v29, %v1401_v16 }
 0x1d3   :  { %1763 = vst [vmem:[%s2530_s6] sm:$0xff] %v1762_v12   ;;  %v1782_v26 = vpack.c.bf16 %v1398_v17, %v1397_v1  ;;  %v1797_v60 = vpack.c.bf16 %v1404_v61, %v1403_v39  ;;  %v1802_v63 = vpack.c.bf16 %v1406_v35, %v1405_v57  ;;  %v1807_v5 = vpack.c.bf16 %v1408_v2, %v1407_v50 }
 0x1d4   :  { %1809 = vst [vmem:[%s2530_s6 + $0x8] sm:$0xff] %v1767_v32   ;;  %v1409_v40 = vsel %vm1367_vm11, %v1346_v59, %v1388_v58 }
 0x1d5   :  { %1810 = vst [vmem:[%s2530_s6 + $0x10] sm:$0xff] %v1772_v49   ;;  %v1430_v6 = vpack.c.bf16 %v1409_v40, %v1409_v40 }
 0x1d6   :  { %1811 = vst [vmem:[%s2530_s6 + $0x18] sm:$0xff] %v1777_v7  }
 0x1d7   :  { %1812 = vst [vmem:[%s2530_s6 + $0x20] sm:$0xff] %v1782_v26  }
 0x1d8   :  { %1813 = vst [vmem:[%s2530_s6 + $0x28] sm:$0xff] %v1787_v9  }
 0x1d9   :  { %1814 = vst [vmem:[%s2530_s6 + $0x30] sm:$0xff] %v1792_v56  }
 0x1da   :  { %1815 = vst [vmem:[%s2530_s6 + $0x38] sm:$0xff] %v1797_v60  }
 0x1db   :  { %1816 = vst [vmem:[%s2530_s6 + $0x40] sm:$0xff] %v1802_v63  }
 0x1dc   :  { %1817 = vst [vmem:[%s2530_s6 + $0x48] sm:$0xff] %v1807_v5  }
 0x1dd   :  { %1451 = vst [vmem:[%s2530_s6 + $0x50] sm:$0x1] %v1430_v6 }

// kernel: discriminator_forward.5
= control target key start
LH: loop header
LB: loop body
LE: loop exit
PB: predicated region body
PF: predicated region fallthrough
CT: control target
= control target key end

     0   :  { %v1037_v38 = vmov 0   ;;  %vm93_vm0 = vsmask.f32 7424  ;;  %vm313_vm1 = vsmask.f32 5376  ;;  %vm447_vm2 = vcmask 1044480   ;;  %s1313_s1 = inlined_call_operand.vmem [shape: bf16[4,128,128], index: 1, kind: input, shape index: {}]   ;;  %s1314_s0 = inlined_call_operand.vmem [shape: bf16[56,128], index: 0, kind: input, shape index: {}]   ;;  %s1315_s5 = inlined_call_operand.vmem [shape: f32[50,1], index: 5, kind: input, shape index: {}]   ;;  %s1316_s2 = inlined_call_operand.vmem [shape: f32[1,128], index: 2, kind: input, shape index: {}]   ;;  %s1317_s3 = inlined_call_operand.vmem [shape: f32[1,128], index: 3, kind: input, shape index: {}]   ;;  %s1318_s4 = inlined_call_operand.vmem [shape: f32[1,128], index: 4, kind: input, shape index: {}]   ;;  %s1319_s6 = inlined_call_operand.vmem [shape: f32[50,128], index: 6, kind: input, shape index: {}]   ;;  %s1320_s8 = inlined_call_operand.<no memory space> [shape: f32[1,1], index: 8, kind: input, shape index: {}]   ;;  %s1321_s7 = inlined_call_operand.vmem [shape: f32[2,50], index: 7, kind: input, shape index: {}]   ;;  %s1322_s9 = inlined_call_operand.vmem [shape: f32[2,1], index: 9, kind: output, shape index: {}]  }
   0x1   :  { %v1002_v0 = vld [vmem:[%s1313_s1 + $0x78] sm:$0xff]  ;;  %v1001_v4 = vld [vmem:[%s1313_s1 + $0x70] sm:$0xff]  ;;  %v1000_v8 = vld [vmem:[%s1313_s1 + $0x68] sm:$0xff]  ;;  %1024 = vset.pattern.permute.xlu0 %v1037_v38  ;;  %1025 = vset.pattern.permute.xlu1 %v1037_v38  ;;  %vm607_vm3 = vcmask 1041408   ;;  %vm747_vm14 = vcmask 408576  }
   0x2   :  { %v994_v1 = vld [vmem:[%s1313_s1 + $0x38] sm:$0xff]  ;;  %177 = vmatpush.bf16.msra.mxu0 %v1002_v0  ;;  %v993_v5 = vld [vmem:[%s1313_s1 + $0x30] sm:$0xff]  ;;  %v992_v9 = vld [vmem:[%s1313_s1 + $0x28] sm:$0xff]  ;;  %1026 = vset.pattern.permute.xlu2 %v1037_v38 }
   0x3   :  { %v1010_v2 = vld [vmem:[%s1313_s1 + $0xb8] sm:$0xff]  ;;  %260 = vmatpush.bf16.msra.mxu1 %v994_v1  ;;  %v1009_v6 = vld [vmem:[%s1313_s1 + $0xb0] sm:$0xff]  ;;  %v1008_v10 = vld [vmem:[%s1313_s1 + $0xa8] sm:$0xff] }
   0x4   :  { %v1018_v3 = vld [vmem:[%s1313_s1 + $0xf8] sm:$0xff]  ;;  %391 = vmatpush.bf16.msra.mxu2 %v1010_v2  ;;  %v1017_v7 = vld [vmem:[%s1313_s1 + $0xf0] sm:$0xff]  ;;  %v1016_v11 = vld [vmem:[%s1313_s1 + $0xe8] sm:$0xff] }
   0x5   :  { %507 = vmatpush.bf16.msra.mxu3 %v1018_v3  ;;  %v999_v12 = vld [vmem:[%s1313_s1 + $0x60] sm:$0xff]  ;;  %v998_v20 = vld [vmem:[%s1313_s1 + $0x58] sm:$0xff]  ;;  %v1154_v22 = vld [vmem:[%s1314_s0 + $0x8] sm:$0xff] }
   0x6   :  { %178 = vmatpush.bf16.msra.mxu0 %v1001_v4  ;;  %v991_v13 = vld [vmem:[%s1313_s1 + $0x20] sm:$0xff]  ;;  %v990_v21 = vld [vmem:[%s1313_s1 + $0x18] sm:$0xff]  ;;  %v997_v27 = vld [vmem:[%s1313_s1 + $0x50] sm:$0xff]  ;;  %v102_v30 = vshll.u32 %v1154_v22, 16  ;;  %v106_v31 = vshrl.u32 %v1154_v22, 16  ;;  %v449_v60 = vrot.slane %v1154_v22, 3 }
   0x7   :  { %261 = vmatpush.bf16.msra.mxu1 %v993_v5  ;;  %v1133_v14 = vld [vmem:[%s1314_s0] sm:$0xff]   ;;  %v1006_v23 = vld [vmem:[%s1313_s1 + $0x98] sm:$0xff]  ;;  %v989_v28 = vld [vmem:[%s1313_s1 + $0x10] sm:$0xff] }
   0x8   :  { %392 = vmatpush.bf16.msra.mxu2 %v1009_v6  ;;  %v1007_v15 = vld [vmem:[%s1313_s1 + $0xa0] sm:$0xff]  ;;  %v1022_v17 = vunpack.c.h.b16 %v1133_v14  ;;  %v1014_v24 = vld [vmem:[%s1313_s1 + $0xd8] sm:$0xff]  ;;  %v97_v29 = vshll.u32 %v1133_v14, 16  ;;  %v1005_v33 = vld [vmem:[%s1313_s1 + $0x90] sm:$0xff]  ;;  %v95_v41 = vshrl.u32 %v1133_v14, 16  ;;  %v322_v43 = vrot.slane %v106_v31, 2 }
   0x9   :  { %508 = vmatpush.bf16.msra.mxu3 %v1017_v7  ;;  %v1015_v16 = vld [vmem:[%s1313_s1 + $0xe0] sm:$0xff]  ;;  %v1013_v34 = vld [vmem:[%s1313_s1 + $0xd0] sm:$0xff]  ;;  %v996_v39 = vld [vmem:[%s1313_s1 + $0x48] sm:$0xff]  ;;  %v323_v48 = vrot.slane %v102_v30, 3  ;;  %v104_v53 = vrot.slane %v102_v30, 1 }
   0xa   :  { %179 = vmatpush.bf16.msra.mxu0 %v1000_v8  ;;  %v288_v18 = vld [vmem:[%s1314_s0] sm:$0xc]  ;;  %v988_v40 = vld [vmem:[%s1313_s1 + $0x8] sm:$0xff]  ;;  %v99_v42 = vrot.slane %v97_v29, 1  ;;  %v986_v0 = vld [vmem:[%s1314_s0 + $0x10] sm:$0xff] }
   0xb   :  { %262 = vmatpush.bf16.msra.mxu1 %v992_v9  ;;  %v309_v19 = vunpack.c.l.b16 %v288_v18  ;;  %v426_v26 = vld [vmem:[%s1314_s0] sm:$0x8]  ;;  %v1004_v44 = vld [vmem:[%s1313_s1 + $0x88] sm:$0xff]  ;;  %v324_v58 = vor.u32 %v323_v48, %v322_v43  ;;  %v555_v1 = vld [vmem:[%s1315_s5 + $0x10] sm:$0xff]  ;;  %v110_v2 = vshll.u32 %v986_v0, 16  ;;  %v114_v3 = vshrl.u32 %v986_v0, 16 }
   0xc   :  { %393 = vmatpush.bf16.msra.mxu2 %v1008_v10  ;;  %v553_v32 = vld [vmem:[%s1315_s5] sm:$0xff]  ;;  %v445_v37 = vunpack.c.l.b16 %v426_v26  ;;  %v1012_v45 = vld [vmem:[%s1313_s1 + $0xc8] sm:$0xff]  ;;  %v100_v52 = vor.u32 %v99_v42, %v95_v41  ;;  %572 = vperm.xlu1 %1025, %v555_v1   ;;  %v289_v6 = vld [vmem:[%s1314_s0 + $0x18] sm:$0xf]  ;;  %v108_v8 = vor.u32 %v106_v31, %v104_v53 }
   0xd   :  { %509 = vmatpush.bf16.msra.mxu3 %v1016_v11  ;;  %v311_v25 = vpack.c.b16 %v1022_v17, %v309_v19  ;;  %562 = vperm.xlu0 %1024, %v553_v32   ;;  %v995_v50 = vld [vmem:[%s1313_s1 + $0x40] sm:$0xff]  ;;  %v554_v54 = vld [vmem:[%s1315_s5 + $0x8] sm:$0xff]  ;;  %v326_v4 = vrot.slane %v114_v3, 2  ;;  %v327_v5 = vrot.slane %v110_v2, 3  ;;  %v556_v7 = vld [vmem:[%s1315_s5 + $0x18] sm:$0xff]  ;;  %v112_v9 = vrot.slane %v110_v2, 1 }
   0xe   :  { %180 = vmatpush.bf16.msra.mxu0 %v999_v12  ;;  %v446_v49 = vpack.c.b16 %v1022_v17, %v445_v37  ;;  %v987_v51 = vld [vmem:[%s1313_s1] sm:$0xff]  ;;  %v105_v61 = vsel %vm93_vm0, %v100_v52, %v104_v53  ;;  %v451_v11 = vrot.slane %v986_v0, 3  ;;  %v57_v12 = vld [vmem:[%s1314_s0 + $0x18] sm:$0x3] }
   0xf   :  { %263 = vmatpush.bf16.msra.mxu1 %v991_v13  ;;  %v315_v35 = vshrl.u32 %v311_v25, 16  ;;  %v318_v36 = vshll.u32 %v311_v25, 16  ;;  %v1003_v55 = vld [vmem:[%s1313_s1 + $0x80] sm:$0xff]  ;;  %v328_v10 = vor.u32 %v327_v5, %v326_v4  ;;  %v310_v13 = vunpack.c.l.b16 %v289_v6 }
  0x10   :  { %394 = vmatpush.bf16.msra.mxu2 %v1007_v15  ;;  %v1011_v56 = vld [vmem:[%s1313_s1 + $0xc0] sm:$0xff]  ;;  %v448_v59 = vrot.slane %v446_v49, 3  ;;  %v88_v15 = vunpack.c.l.b16 %v57_v12  ;;  %v452_v17 = vsel %vm447_vm2, %v449_v60, %v451_v11 }
  0x11   :  { %510 = vmatpush.bf16.msra.mxu3 %v1015_v16  ;;  %v317_v46 = vrot.slane %v315_v35, 2  ;;  %v320_v47 = vrot.slane %v318_v36, 3  ;;  %v329_v16 = vsel %vm313_vm1, %v324_v58, %v328_v10  ;;  %v312_v18 = vpack.c.b16 %v310_v13, %v310_v13  ;;  %v40_v35 = vld [vmem:[%s1314_s0 + $0x18] sm:$0x1]  ;;  %v1027_v12 = vld [vmem:[%s1316_s2] ss:$0 sm:$0xff] }
  0x12   :  { %181 = vmatpush.bf16.msra.mxu0 %v998_v20  ;;  %v450_v63 = vsel %vm447_vm2, %v448_v59, %v449_v60  ;;  %v92_v19 = vpack.c.b16 %v88_v15, %v88_v15  ;;  %v559_v20 = vld [vmem:[%s1315_s5 + $0x30] sm:$0x3]  ;;  %v206_v37 = vunpack.c.l.b16 %v40_v35 }
  0x13   :  { %264 = vmatpush.bf16.msra.mxu1 %v990_v21  ;;  %v321_v57 = vor.u32 %v320_v47, %v317_v46  ;;  %v557_v21 = vld [vmem:[%s1315_s5 + $0x20] sm:$0xff]  ;;  %v453_v31 = vrot.slane %v312_v18, 3 }
  0x14   :  { %395 = vmatpush.bf16.msra.mxu2 %v1006_v23  ;;  %577 = vperm.xlu1 %1025, %v556_v7   ;;  %v331_v23 = vshrl.u32 %v312_v18, 16  ;;  %v118_v25 = vshll.u32 %v92_v19, 16  ;;  %v122_v36 = vshrl.u32 %v92_v19, 16 }
  0x15   :  { %511 = vmatpush.bf16.msra.mxu3 %v1014_v24  ;;  %567 = vperm.xlu0 %1024, %v554_v54   ;;  %v325_v62 = vsel %vm313_vm1, %v321_v57, %v324_v58  ;;  %v334_v24 = vshll.u32 %v312_v18, 16 }
  0x16   :  { %182 = vmatpush.bf16.msra.mxu0 %v997_v27  ;;  %582 = vperm.xlu2 %1026, %v557_v21   ;;  %v333_v26 = vrot.slane %v331_v23, 2  ;;  %v120_v29 = vrot.slane %v118_v25, 1 }
  0x17   :  { %265 = vmatpush.bf16.msra.mxu1 %v989_v28  ;;  %v336_v27 = vrot.slane %v334_v24, 3  ;;  %v116_v28 = vor.u32 %v114_v3, %v112_v9 }
  0x18   :  { %396 = vmatpush.bf16.msra.mxu2 %v1005_v33  ;;  %v124_v38 = vor.u32 %v122_v36, %v120_v29 }
  0x19   :  { %512 = vmatpush.bf16.msra.mxu3 %v1013_v34  ;;  %v337_v30 = vor.u32 %v336_v27, %v333_v26  ;;  %v121_v32 = vsel %vm93_vm0, %v116_v28, %v120_v29  ;;  %v454_v34 = vsel %vm447_vm2, %v451_v11, %v453_v31  ;;  %vm793_vm2 = vcmask 1024  }
  0x1a   :  { %183 = vmatpush.bf16.msra.mxu0 %v996_v39  ;;  %v207_v39 = vpack.c.b16 %v206_v37, %v206_v37 }
  0x1b   :  { %266 = vmatpush.bf16.msra.mxu1 %v988_v40  ;;  %v338_v33 = vsel %vm313_vm1, %v328_v10, %v337_v30 }
  0x1c   :  { %397 = vmatpush.bf16.msra.mxu2 %v1004_v44 }
  0x1d   :  { %513 = vmatpush.bf16.msra.mxu3 %v1012_v45  ;;  %592 = vperm.xlu0 %1024, %v559_v20  }
  0x1e   :  { %184 = vmatpush.bf16.msra.mxu0 %v995_v50 }
  0x1f   :  { %267 = vmatpush.bf16.msra.mxu1 %v987_v51 }
  0x20   :  { %398 = vmatpush.bf16.msra.mxu2 %v1003_v55 }
  0x21   :  { %514 = vmatpush.bf16.msra.mxu3 %v1011_v56  ;;  %185 = vmatmul.bf16.vlgmr.msra.gmra.mxu0 %v105_v61 }
  0x22   :  { %268 = vmatmul.bf16.vlgmr.msra.gmra.mxu1 %v1133_v14  ;;  %v113_v14 = vsel %vm93_vm0, %v108_v8, %v112_v9 }
  0x23   :  { %399 = vmatmul.bf16.vlgmr.msra.gmra.mxu2 %v325_v62 }
  0x24   :  { %515 = vmatmul.bf16.vlgmr.msra.gmra.mxu3 %v450_v63 }
  0x31   :  { %190 = vmatmul.bf16.gmra.mxu0 %v113_v14 }
  0x32   :  { %273 = vmatmul.bf16.gmra.mxu1 %v1154_v22  ;;  %v558_v22 = vld [vmem:[%s1315_s5 + $0x28] sm:$0xff] }
  0x33   :  { %404 = vmatmul.bf16.gmra.mxu2 %v329_v16  ;;  %587 = vperm.xlu2 %1026, %v558_v22  }
  0x34   :  { %520 = vmatmul.bf16.gmra.mxu3 %v452_v17 }
  0x41   :  { %195 = vmatmul.bf16.gmra.mxu0 %v121_v32 }
  0x42   :  { %278 = vmatmul.bf16.gmra.mxu1 %v986_v0 }
  0x43   :  { %409 = vmatmul.bf16.gmra.mxu2 %v338_v33 }
  0x44   :  { %525 = vmatmul.bf16.gmra.mxu3 %v454_v34 }
  0x51   :  { %200 = vmatmul.bf16.gmra.mxu0 %v124_v38 }
  0x52   :  { %283 = vmatmul.bf16.gmra.mxu1 %v207_v39 }
  0x53   :  { %414 = vmatmul.bf16.gmra.mxu2 %v337_v30 }
  0x54   :  { %530 = vmatmul.bf16.gmra.mxu3 %v453_v31 }
  0x70   :  { %v1258_v10 = vpop.permute.xlu2 %582 }
  0x7e   :  { %v1256_v7 = vpop.permute.xlu1 %572 }
  0x7f   :  { %v1254_v58 = vpop.permute.xlu0 %562 }
  0x86   :  { %v578_v30 = vpop.permute.xlu1 %577 }
  0x87   :  { %v568_v15 = vpop.permute.xlu0 %567 }
  0x8d   :  { %v588_v35 = vpop.permute.xlu2 %587 }
  0x9e   :  { %v186_v40 = vpop.f32.mrf.mxu0 }
  0x9f   :  { %v269_v41 = vpop.f32.mrf.mxu1 }
  0xa0   :  { %v270_v59 = vadd.f32 %v269_v41, %v186_v40 }
  0xa6   :  { %v400_v42 = vpop.f32.mrf.mxu2  ;;  %v188_v44 = vpop.f32.mrf.mxu0 }
  0xa7   :  { %v516_v43 = vpop.f32.mrf.mxu3  ;;  %v271_v45 = vpop.f32.mrf.mxu1  ;;  %v419_v3 = vadd.f32 %v400_v42, %v270_v59 }
  0xa8   :  { %v272_v60 = vadd.f32 %v271_v45, %v188_v44 }
  0xa9   :  { %v535_v11 = vadd.f32 %v516_v43, %v419_v3 }
  0xab   :  { %v546_v25 = vadd.f32 %v1027_v12, %v535_v11 }
  0xad   :  { %v595_v32 = vmul.f32 %v1254_v58, %v546_v25 }
  0xae   :  { %v402_v46 = vpop.f32.mrf.mxu2  ;;  %v191_v48 = vpop.f32.mrf.mxu0 }
  0xaf   :  { %v518_v47 = vpop.f32.mrf.mxu3  ;;  %v274_v49 = vpop.f32.mrf.mxu1  ;;  %v420_v62 = vadd.f32 %v402_v46, %v272_v60 }
  0xb0   :  { %v275_v61 = vadd.f32 %v274_v49, %v191_v48 }
  0xb1   :  { %v536_v8 = vadd.f32 %v518_v47, %v420_v62 }
  0xb3   :  { %v547_v17 = vadd.f32 %v1027_v12, %v536_v8 }
  0xb5   :  { %v596_v22 = vmul.f32 %v568_v15, %v547_v17 }
  0xb6   :  { %v405_v50 = vpop.f32.mrf.mxu2  ;;  %v193_v52 = vpop.f32.mrf.mxu0 }
  0xb7   :  { %v521_v51 = vpop.f32.mrf.mxu3  ;;  %v276_v53 = vpop.f32.mrf.mxu1  ;;  %v421_v4 = vadd.f32 %v405_v50, %v275_v61  ;;  %v602_v36 = vadd.f32 %v596_v22, %v595_v32 }
  0xb8   :  { %v277_v5 = vadd.f32 %v276_v53, %v193_v52 }
  0xb9   :  { %v537_v13 = vadd.f32 %v521_v51, %v421_v4  ;;  %v593_v51 = vpop.permute.xlu0 %592 }
  0xbb   :  { %v548_v26 = vadd.f32 %v1027_v12, %v537_v13 }
  0xbd   :  { %v597_v33 = vmul.f32 %v1256_v7, %v548_v26 }
  0xbe   :  { %v407_v54 = vpop.f32.mrf.mxu2  ;;  %v196_v56 = vpop.f32.mrf.mxu0 }
  0xbf   :  { %v523_v55 = vpop.f32.mrf.mxu3  ;;  %v279_v57 = vpop.f32.mrf.mxu1  ;;  %v422_v9 = vadd.f32 %v407_v54, %v277_v5  ;;  %v603_v44 = vadd.f32 %v602_v36, %v597_v33 }
  0xc0   :  { %v280_v6 = vadd.f32 %v279_v57, %v196_v56 }
  0xc1   :  { %v538_v18 = vadd.f32 %v523_v55, %v422_v9 }
  0xc3   :  { %v549_v28 = vadd.f32 %v1027_v12, %v538_v18 }
  0xc5   :  { %v598_v37 = vmul.f32 %v578_v30, %v549_v28 }
  0xc6   :  { %v410_v63 = vpop.f32.mrf.mxu2  ;;  %v198_v1 = vpop.f32.mrf.mxu0 }
  0xc7   :  { %v526_v0 = vpop.f32.mrf.mxu3  ;;  %v281_v2 = vpop.f32.mrf.mxu1  ;;  %v423_v14 = vadd.f32 %v410_v63, %v280_v6  ;;  %v604_v47 = vadd.f32 %v603_v44, %v598_v37 }
  0xc8   :  { %v282_v16 = vadd.f32 %v281_v2, %v198_v1 }
  0xc9   :  { %v539_v27 = vadd.f32 %v526_v0, %v423_v14 }
  0xcb   :  { %v550_v34 = vadd.f32 %v1027_v12, %v539_v27 }
  0xcd   :  { %v599_v45 = vmul.f32 %v1258_v10, %v550_v34 }
  0xce   :  { %v412_v19 = vpop.f32.mrf.mxu2  ;;  %v201_v23 = vpop.f32.mrf.mxu0 }
  0xcf   :  { %v528_v20 = vpop.f32.mrf.mxu3  ;;  %v424_v21 = vadd.f32 %v412_v19, %v282_v16  ;;  %v284_v24 = vpop.f32.mrf.mxu1  ;;  %v605_v50 = vadd.f32 %v604_v47, %v599_v45  ;;  %v1029_v47 = vld [vmem:[%s1318_s4] ss:$0 sm:$0xff] }
  0xd0   :  { %v285_v31 = vadd.f32 %v284_v24, %v201_v23 }
  0xd1   :  { %v540_v29 = vadd.f32 %v528_v20, %v424_v21 }
  0xd3   :  { %v551_v38 = vadd.f32 %v1027_v12, %v540_v29 }
  0xd5   :  { %v600_v48 = vmul.f32 %v588_v35, %v551_v38 }
  0xd6   :  { %v415_v39 = vpop.f32.mrf.mxu2  ;;  %v203_v42 = vpop.f32.mrf.mxu0 }
  0xd7   :  { %v531_v40 = vpop.f32.mrf.mxu3  ;;  %v425_v41 = vadd.f32 %v415_v39, %v285_v31  ;;  %v286_v43 = vpop.f32.mrf.mxu1  ;;  %v606_v53 = vadd.f32 %v605_v50, %v600_v48 }
  0xd8   :  { %v1028_v43 = vld [vmem:[%s1317_s3] ss:$0 sm:$0xff] }
  0xd9   :  { %v541_v46 = vadd.f32 %v531_v40, %v425_v41 }
  0xdb   :  { %v552_v49 = vadd.f32 %v1027_v12, %v541_v46 }
  0xdd   :  { %v601_v52 = vmul.f32 %v593_v51, %v552_v49 }
  0xde   :  { %v417_v54 = vpop.f32.mrf.mxu2 }
  0xdf   :  { %v533_v55 = vpop.f32.mrf.mxu3  ;;  %v608_v56 = vsel %vm607_vm3, %v601_v52, 0.0 }
  0xe0   :  { %v609_v57 = vadd.f32 %v608_v56, %v606_v53 }
  0xe2   :  { %v610_v59 = vrot.slane %v609_v57, 4 }
  0xe4   :  { %v611_v60 = vadd.f32 %v610_v59, %v609_v57 }
  0xe6   :  { %v612_v61 = vrot.slane %v611_v60, 2 }
  0xe8   :  { %v613_v62 = vadd.f32 %v612_v61, %v611_v60 }
  0xea   :  { %v614_v63 = vrot.slane %v613_v62, 1 }
  0xec   :  { %v615_v0 = vadd.f32 %v614_v63, %v613_v62  ;;  %v718_v62 = vld [vmem:[%s1319_s6 + $0x28] sm:$0xff]  ;;  %v717_v63 = vld [vmem:[%s1319_s6 + $0x20] sm:$0xff] }
  0xee   :  { %v616_v1 = vmul.f32 0.03125, %v615_v0 }
  0xf0   :  { %v617_v2 = vsub.f32 %v546_v25, %v616_v1  ;;  %v1267_v3 = vsub.f32 %v547_v17, %v616_v1  ;;  %v619_v4 = vsub.f32 %v548_v26, %v616_v1  ;;  %v620_v5 = vsub.f32 %v549_v28, %v616_v1 }
  0xf1   :  { %v621_v6 = vsub.f32 %v550_v34, %v616_v1  ;;  %v623_v12 = vsub.f32 %v552_v49, %v616_v1  ;;  %v622_v13 = vsub.f32 %v551_v38, %v616_v1 }
  0xf2   :  { %v624_v8 = vmul.f32 %v617_v2, %v1254_v58  ;;  %v625_v9 = vmul.f32 %v1267_v3, %v568_v15  ;;  %v626_v11 = vmul.f32 %v619_v4, %v1256_v7  ;;  %v627_v14 = vmul.f32 %v620_v5, %v578_v30 }
  0xf3   :  { %v628_v19 = vmul.f32 %v621_v6, %v1258_v10  ;;  %v630_v17 = vmul.f32 %v623_v12, %v593_v51  ;;  %v629_v23 = vmul.f32 %v622_v13, %v588_v35 }
  0xf4   :  { %v631_v16 = vmul.f32 %v624_v8, %v624_v8  ;;  %v632_v18 = vmul.f32 %v625_v9, %v625_v9  ;;  %v633_v20 = vmul.f32 %v626_v11, %v626_v11  ;;  %v634_v24 = vmul.f32 %v627_v14, %v627_v14  ;;  %v719_v8 = vld [vmem:[%s1319_s6 + $0x30] sm:$0x3] }
  0xf5   :  { %v635_v26 = vmul.f32 %v628_v19, %v628_v19  ;;  %v637_v58 = vmul.f32 %v630_v17, %v630_v17  ;;  %v636_v22 = vmul.f32 %v629_v23, %v629_v23 }
  0xf6   :  { %v638_v21 = vadd.f32 %v632_v18, %v631_v16 }
  0xf7   :  { %v643_v7 = vsel %vm607_vm3, %v637_v58, 0.0 }
  0xf8   :  { %v639_v25 = vadd.f32 %v638_v21, %v633_v20 }
  0xfa   :  { %v640_v27 = vadd.f32 %v639_v25, %v634_v24  ;;  %v716_v24 = vld [vmem:[%s1319_s6 + $0x18] sm:$0xff] }
  0xfc   :  { %v641_v15 = vadd.f32 %v640_v27, %v635_v26  ;;  %v713_v26 = vld [vmem:[%s1319_s6] sm:$0xff] }
  0xfe   :  { %v642_v28 = vadd.f32 %v641_v15, %v636_v22  ;;  %v715_v22 = vld [vmem:[%s1319_s6 + $0x10] sm:$0xff] }
 0x100   :  { %v644_v29 = vadd.f32 %v643_v7, %v642_v28 }
 0x102   :  { %v645_v30 = vrot.slane %v644_v29, 4 }
 0x104   :  { %v646_v31 = vadd.f32 %v645_v30, %v644_v29 }
 0x106   :  { %v647_v32 = vrot.slane %v646_v31, 2 }
 0x108   :  { %v648_v33 = vadd.f32 %v647_v32, %v646_v31  ;;  %v714_v31 = vld [vmem:[%s1319_s6 + $0x8] sm:$0xff] }
 0x10a   :  { %v649_v10 = vrot.slane %v648_v33, 1 }
 0x10c   :  { %v650_v34 = vadd.f32 %v649_v10, %v648_v33  ;;  %v14_v33 = vstv %s1320_s8 }
 0x10d   :  { %15 = vst [vmem:[#allocation2] sm:$0x1] %v14_v33 }
 0x10e   :  { %v651_v36 = vmul.f32 0.03125, %v650_v34 }
 0x110   :  { %v652_v37 = vadd.f32 1e-05, %v651_v36 }
 0x112   :  { %1031 = vrsqrt.f32 %v652_v37  ;;  %vm659_vm5 = vweird.f32 %v652_v37 }
 0x118   :  { %v1032_v35 = vpop.eup %1031 }
 0x119   :  { %v654_v38 = vmul.f32 %v1032_v35, %v652_v37  ;;  %vm660_vm4 = vweird.f32 %v1032_v35 }
 0x11a   :  { %vm661_vm6 = vmor %vm659_vm5, %vm660_vm4 }
 0x11b   :  { %v655_v39 = vmul.f32 %v1032_v35, %v654_v38 }
 0x11d   :  { %v656_v40 = vmul.f32 0.5, %v655_v39  ;;  %v742_v39 = vld [vmem:[%s1321_s7] sm:$0x3] }
 0x11f   :  { %v657_v41 = vsub.f32 1.5, %v656_v40 }
 0x121   :  { %v658_v42 = vmul.f32 %v1032_v35, %v657_v41  ;;  %v1030_v41 = vld [vmem:[#allocation2] ss:$0 sm:$0xff] }
 0x123   :  { %v662_v44 = vsel %vm661_vm6, %v1032_v35, %v658_v42 }
 0x124   :  { %v669_v45 = vmul.f32 %v662_v44, %v623_v12  ;;  %v668_v46 = vmul.f32 %v662_v44, %v622_v13  ;;  %v667_v48 = vmul.f32 %v662_v44, %v621_v6  ;;  %v666_v49 = vmul.f32 %v662_v44, %v620_v5 }
 0x125   :  { %v663_v50 = vmul.f32 %v662_v44, %v617_v2  ;;  %v665_v51 = vmul.f32 %v662_v44, %v619_v4  ;;  %v664_v2 = vmul.f32 %v662_v44, %v1267_v3 }
 0x126   :  { %v680_v52 = vmul.f32 %v1028_v43, %v669_v45  ;;  %v679_v53 = vmul.f32 %v1028_v43, %v668_v46  ;;  %v678_v54 = vmul.f32 %v1028_v43, %v667_v48  ;;  %v677_v55 = vmul.f32 %v1028_v43, %v666_v49 }
 0x127   :  { %v674_v56 = vmul.f32 %v1028_v43, %v663_v50  ;;  %v676_v61 = vmul.f32 %v1028_v43, %v665_v51  ;;  %v675_v3 = vmul.f32 %v1028_v43, %v664_v2 }
 0x128   :  { %v690_v57 = vadd.f32 %v1029_v47, %v679_v53  ;;  %v689_v59 = vadd.f32 %v1029_v47, %v678_v54  ;;  %v691_v60 = vadd.f32 %v1029_v47, %v680_v52  ;;  %v688_v0 = vadd.f32 %v1029_v47, %v677_v55 }
 0x129   :  { %v685_v1 = vadd.f32 %v1029_v47, %v674_v56  ;;  %v687_v12 = vadd.f32 %v1029_v47, %v676_v61  ;;  %v686_v27 = vadd.f32 %v1029_v47, %v675_v3 }
 0x12a   :  { %vm697_vm7 = vcmp.gt.f32.partialorder %v690_v57, 0.0  ;;  %v704_v4 = vmul.f32 0.2, %v690_v57  ;;  %vm696_vm8 = vcmp.gt.f32.partialorder %v689_v59, 0.0  ;;  %v703_v5 = vmul.f32 0.2, %v689_v59 }
 0x12b   :  { %vm698_vm9 = vcmp.gt.f32.partialorder %v691_v60, 0.0  ;;  %v705_v6 = vmul.f32 0.2, %v691_v60  ;;  %v702_v19 = vmul.f32 0.2, %v688_v0  ;;  %vm695_vm10 = vcmp.gt.f32.partialorder %v688_v0, 0.0 }
 0x12c   :  { %v711_v9 = vsel %vm697_vm7, %v690_v57, %v704_v4  ;;  %v710_v11 = vsel %vm696_vm8, %v689_v59, %v703_v5  ;;  %v699_v20 = vmul.f32 0.2, %v685_v1  ;;  %vm692_vm11 = vcmp.gt.f32.partialorder %v685_v1, 0.0 }
 0x12d   :  { %v725_v13 = vmul.f32 %v718_v62, %v711_v9  ;;  %v724_v14 = vmul.f32 %v717_v63, %v710_v11  ;;  %v712_v16 = vsel %vm698_vm9, %v691_v60, %v705_v6  ;;  %v701_v17 = vmul.f32 0.2, %v687_v12 }
 0x12e   :  { %v726_v18 = vmul.f32 %v719_v8, %v712_v16  ;;  %vm694_vm12 = vcmp.gt.f32.partialorder %v687_v12, 0.0  ;;  %v709_v23 = vsel %vm695_vm10, %v688_v0, %v702_v19  ;;  %v706_v25 = vsel %vm692_vm11, %v685_v1, %v699_v20 }
 0x12f   :  { %737 = vadd.xlane.f32.xlu2 %v725_v13  ;;  %735 = vadd.xlane.f32.xlu0 %v724_v14  ;;  %v708_v58 = vsel %vm694_vm12, %v687_v12, %v701_v17  ;;  %v723_v15 = vmul.f32 %v716_v24, %v709_v23  ;;  %v720_v28 = vmul.f32 %v713_v26, %v706_v25  ;;  %v700_v7 = vmul.f32 0.2, %v686_v27 }
 0x130   :  { %v739_v21 = vsel %vm607_vm3, %v726_v18, 0.0  ;;  %v722_v29 = vmul.f32 %v715_v22, %v708_v58  ;;  %vm693_vm13 = vcmp.gt.f32.partialorder %v686_v27, 0.0 }
 0x131   :  { %740 = vadd.xlane.f32.xlu1 %v739_v21  ;;  %v707_v30 = vsel %vm693_vm13, %v686_v27, %v700_v7 }
 0x132   :  { %v721_v32 = vmul.f32 %v714_v31, %v707_v30 }
 0x137   :  { %733 = vadd.xlane.f32.xlu2 %v723_v15  ;;  %727 = vadd.xlane.f32.xlu0 %v720_v28 }
 0x139   :  { %731 = vadd.xlane.f32.xlu1 %v722_v29 }
 0x13f   :  { %729 = vadd.xlane.f32.xlu2 %v721_v32 }
 0x1a2   :  { %v738_v10 = vpop.xlane.xlu2 %737  ;;  %v736_v36 = vpop.xlane.xlu0 %735 }
 0x1a4   :  { %v741_v34 = vpop.xlane.xlu1 %740 }
 0x1a5   :  { %983 = vmatpush.msk.msrb.mxu0 %vm607_vm3, %v741_v34 }
 0x1a7   :  { %764 = vmatpush.msrb.mxu0 %v738_v10 }
 0x1a9   :  { %765 = vmatpush.msrb.mxu0 %v736_v36 }
 0x1aa   :  { %v734_v37 = vpop.xlane.xlu2 %733  ;;  %v728_v40 = vpop.xlane.xlu0 %727 }
 0x1ab   :  { %766 = vmatpush.msrb.mxu0 %v734_v37 }
 0x1ac   :  { %v732_v35 = vpop.xlane.xlu1 %731 }
 0x1ad   :  { %767 = vmatpush.msrb.mxu0 %v732_v35 }
 0x1b2   :  { %v730_v38 = vpop.xlane.xlu2 %729 }
 0x1b3   :  { %768 = vmatpush.msrb.mxu0 %v730_v38 }
 0x1b5   :  { %769 = vmatpush.msrb.mxu0 %v728_v40 }
 0x1b6   :  { %984 = vmatmul.msk.f32.vlgmr.msrb.gmra.mxu0 %vm747_vm14, %v742_v39 }
 0x233   :  { %v771_v42 = vpop.f32.mrf.mxu0 }
 0x234   :  { %v772_v43 = vadd.f32 %v1030_v41, %v771_v42 }
 0x236   :  { %v774_v44 = vsub.f32 0.0, %v772_v43 }
 0x238   :  { %v775_v45 = vmul.f32 1.442695, %v774_v44 }
 0x23a   :  { %1033 = vpow2.f32 %v775_v45 }
 0x240   :  { %v1034_v46 = vpop.eup %1033 }
 0x241   :  { %v777_v47 = vadd.f32 1.0, %v1034_v46 }
 0x243   :  { %1035 = vrcp.f32 %v777_v47  ;;  %v789_v51 = vand.u32 2147483648, %v777_v47  ;;  %v787_v53 = vand.u32 2147483647, %v777_v47  ;;  %vm783_vm0 = vweird.f32 %v777_v47 }
 0x245   :  { %v790_v55 = vor.u32 1.1754944e-38, %v789_v51  ;;  %vm788_vm3 = vcmp.eq.f32.partialorder %v787_v53, 8.507059e+37 }
 0x249   :  { %v1036_v48 = vpop.eup %1035 }
 0x24a   :  { %v779_v49 = vmul.f32 %v1036_v48, %v777_v47  ;;  %vm784_vm15 = vweird.f32 %v1036_v48 }
 0x24b   :  { %vm785_vm1 = vmor %vm783_vm0, %vm784_vm15 }
 0x24c   :  { %v780_v50 = vsub.f32 1.0, %v779_v49 }
 0x24e   :  { %v781_v52 = vmul.f32 %v1036_v48, %v780_v50 }
 0x250   :  { %v782_v54 = vadd.f32 %v1036_v48, %v781_v52 }
 0x252   :  { %v786_v56 = vsel %vm785_vm1, %v1036_v48, %v782_v54 }
 0x253   :  { %v791_v57 = vsel %vm788_vm3, %v790_v55, %v786_v56 }
 0x254   :  { %794 = vst.msk [vmem:[%s1322_s9] sm:$0x3] %vm793_vm2, %v791_v57 }

</bundles_post_ra>
